<compile_context>
chip_gen: v7x
topology: tpu7x:2x2x1
jax: 0.10.0
libtpu: 0.0.40
codegen_flags: <defaults>
</compile_context>

<pallas_src>
import functools

import numpy as np

import jax
import jax.numpy as jnp
from jax.experimental import pallas as pl
from jax.experimental.pallas import tpu as pltpu  # noqa: F401  (TPU backend; kept for CompilerParams use if scaled up)


# ----------------------------- in-kernel helpers (trace-time, pure jnp) -----------------------------

def _lstm_cell(gates, c_prev, H):
    # PyTorch LSTM gate order: i, f, g, o
    i = jax.nn.sigmoid(gates[:, 0:H])
    f = jax.nn.sigmoid(gates[:, H:2 * H])
    g = jnp.tanh(gates[:, 2 * H:3 * H])
    o = jax.nn.sigmoid(gates[:, 3 * H:4 * H])
    c = f * c_prev + i * g
    h = o * jnp.tanh(c)
    return h, c


def _bilstm_unrolled(x_ref, wih, whh, b, H):
    """Fused fwd+bwd LSTM, fully unrolled.

    x_ref: [T, B, I] ref (time-major).
    wih:   [I, 8H]  (cols 0:4H fwd gates i,f,g,o; cols 4H:8H bwd gates)
    whh:   [2H, 8H] block-diagonal (rows 0:H -> fwd cols, rows H:2H -> bwd cols)
    b:     [1, 8H]  (b_ih + b_hh per direction)
    Returns list of T arrays [B, 2H] = concat(h_fwd[t], h_bwd[t]) (torch layout).
    """
    T, B, _ = x_ref.shape
    # input projection: T small MXU matmuls, everything stays in vregs/VMEM
    xp = [jnp.dot(x_ref[t], wih, preferred_element_type=jnp.float32) + b for t in range(T)]
    zeros = jnp.zeros((B, H), jnp.float32)
    h_f, c_f, h_b, c_b = zeros, zeros, zeros, zeros
    hs_f = [None] * T
    hs_b = [None] * T
    for t in range(T):
        # one recurrence matmul covers both directions
        gh = jnp.dot(jnp.concatenate([h_f, h_b], axis=1), whh,
                     preferred_element_type=jnp.float32)              # [B, 8H]
        tb = T - 1 - t                                                # backward reads reversed time
        gf = xp[t][:, 0:4 * H] + gh[:, 0:4 * H]
        gb = xp[tb][:, 4 * H:8 * H] + gh[:, 4 * H:8 * H]
        h_f, c_f = _lstm_cell(gf, c_f, H)
        h_b, c_b = _lstm_cell(gb, c_b, H)
        hs_f[t] = h_f
        hs_b[tb] = h_b
    return [jnp.concatenate([hs_f[t], hs_b[t]], axis=1) for t in range(T)]


# ----------------------------- Pallas kernels -----------------------------

def _scene_encoder_kernel(x_ref, wih_ref, whh_ref, b_ref, wa_ref, ba_ref, mask_ref, o_ref):
    """bi-LSTM over utterances + length-masked softmax attention pooling, all in one kernel.

    x_ref [T, N, I], mask_ref [N, T] additive (-1e9 past length), o_ref [N, 2H].
    """
    # TODO(synk): SelfAttention body is not given in the reference; implemented as
    #             Linear(d,1) energies + length-masked softmax pooling (same as before).
    H = whh_ref.shape[0] // 2
    T = x_ref.shape[0]
    hs = _bilstm_unrolled(x_ref, wih_ref[...], whh_ref[...], b_ref[...], H)   # T x [N, 2H]

    wa = wa_ref[...]                                                          # [1, 2H]
    e = jnp.concatenate(
        [jnp.sum(hs[t] * wa, axis=-1, keepdims=True) for t in range(T)], axis=1)  # [N, T]
    e = e + ba_ref[...] + mask_ref[...]
    e = e - jnp.max(e, axis=-1, keepdims=True)
    p = jnp.exp(e)
    p = p * pl.reciprocal(jnp.sum(p, axis=-1, keepdims=True), approx=True)    # [N, T]

    pooled = jnp.zeros_like(hs[0])
    for t in range(T):
        pooled = pooled + hs[t] * p[:, t:t + 1]
    o_ref[...] = pooled.astype(o_ref.dtype)


def _modality_kernel(x_ref, wp_ref, bp_ref, wa_ref, ba_ref, o_ref):
    """projection(+tanh) -> attention energy(+tanh) -> softmax pool, fused per modality.

    x_ref [N, T, D], wp [D, P], bp [1, P], wa [1, P], ba [1, 1], o_ref [N, P].
    """
    # TODO(synk): nn.Dropout(0.2) in the attention head is identity at inference; omitted.
    N = x_ref.shape[0]
    wp = wp_ref[...]
    bp = bp_ref[...]
    wa = wa_ref[...]
    ba = ba_ref[...]
    pooled = []
    for n in range(N):
        xp = jnp.tanh(jnp.dot(x_ref[n], wp, preferred_element_type=jnp.float32) + bp)  # [T, P]
        e = jnp.tanh(jnp.sum(xp * wa, axis=-1, keepdims=True) + ba)                    # [T, 1]
        e = e - jnp.max(e, axis=0, keepdims=True)
        w = jnp.exp(e)
        w = w * pl.reciprocal(jnp.sum(w, axis=0, keepdims=True), approx=True)
        pooled.append(jnp.sum(xp * w, axis=0, keepdims=True))                          # [1, P]
    o_ref[...] = jnp.concatenate(pooled, axis=0).astype(o_ref.dtype)


def _script_head_kernel(x_ref, wih_ref, whh_ref, b_ref, al_ref, ar_ref,
                        wtp_ref, btp_ref, y_ref):
    """script bi-LSTM over scenes + context-window matmuls + interaction + 5 TP heads + softmax.

    x_ref [S, 1, Din] (time-major, batch=1), al/ar [S, S] constant averaging matrices,
    wtp [U, 5], btp [1, 5], y_ref [S, 5] (softmax over scenes per head).
    """
    H = whh_ref.shape[0] // 2
    hs = _bilstm_unrolled(x_ref, wih_ref[...], whh_ref[...], b_ref[...], H)   # S x [1, 2H]
    se = jnp.concatenate(hs, axis=0)                                          # [S, 2H]

    # context windows as constant matmuls (replaces the per-scene Python loop)
    left = jnp.dot(al_ref[...], se, preferred_element_type=jnp.float32)       # [S, 2H]
    right = jnp.dot(ar_ref[...], se, preferred_element_type=jnp.float32)      # [S, 2H]

    eps = 1e-8

    def interact(ctx):
        prod = ctx * se
        diff = ctx - se
        num = jnp.sum(se * ctx, axis=1, keepdims=True)
        ns = jnp.sqrt(jnp.sum(se * se, axis=1, keepdims=True))
        nc = jnp.sqrt(jnp.sum(ctx * ctx, axis=1, keepdims=True))
        cos = num / (jnp.maximum(ns, eps) * jnp.maximum(nc, eps))
        return jnp.concatenate([se, ctx, prod, diff, cos], axis=1)

    u = jnp.concatenate([se, interact(left), interact(right)], axis=1)        # [S, U]
    logits = jnp.dot(u, wtp_ref[...], preferred_element_type=jnp.float32) + btp_ref[...]  # [S, 5]
    # softmax over scenes (axis 0) per head — exact division for the final distribution
    logits = logits - jnp.max(logits, axis=0, keepdims=True)
    p = jnp.exp(logits)
    y_ref[...] = (p / jnp.sum(p, axis=0, keepdims=True)).astype(y_ref.dtype)


# ----------------------------- JAX glue: parameter packing & wrappers -----------------------------

def _pack_bilstm_params(p_fwd, p_bwd):
    """Pack torch-layout per-direction LSTM params into fused matrices."""
    Wih_f, Whh_f, bih_f, bhh_f = p_fwd
    Wih_b, Whh_b, bih_b, bhh_b = p_bwd
    H = Whh_f.shape[1]
    wih = jnp.concatenate([Wih_f.T, Wih_b.T], axis=1).astype(jnp.float32)     # [I, 8H]
    whh = jnp.zeros((2 * H, 8 * H), jnp.float32)
    whh = whh.at[0:H, 0:4 * H].set(Whh_f.T.astype(jnp.float32))
    whh = whh.at[H:2 * H, 4 * H:8 * H].set(Whh_b.T.astype(jnp.float32))
    b = jnp.concatenate([bih_f + bhh_f, bih_b + bhh_b]).reshape(1, 8 * H).astype(jnp.float32)
    return wih, whh, b


def _context_matrices(S, window_length):
    """Constant [S, S] left/right context averaging matrices (trace-time, numpy)."""
    w = int(window_length * S)
    A_l = np.zeros((S, S), np.float32)
    A_r = np.zeros((S, S), np.float32)
    for i in range(S):
        if i == 0:
            pass
        elif i < w:
            A_l[i, 0:i] = 1.0 / i
        elif w > 0:
            A_l[i, i - w:i] = 1.0 / w
        if i == S - 1:
            pass
        elif i > S - 1 - w:
            A_r[i, i:S] = 1.0 / (S - i)
        elif w > 0:
            A_r[i, i:i + w] = 1.0 / w
    return jnp.asarray(A_l), jnp.asarray(A_r)


def scene_encoder_pallas(script, scene_lens, p_fwd, p_bwd, attn_w, attn_b):
    N, T, _ = script.shape
    H = p_fwd[1].shape[1]
    wih, whh, b = _pack_bilstm_params(p_fwd, p_bwd)
    x_tm = jnp.transpose(jnp.asarray(script, jnp.float32), (1, 0, 2))          # [T, N, I]
    mask = jnp.where(jnp.arange(T)[None, :] < scene_lens[:, None],
                     0.0, -1e9).astype(jnp.float32)                            # [N, T], f32
    wa = jnp.asarray(attn_w, jnp.float32).reshape(1, 2 * H)
    ba = jnp.asarray(attn_b, jnp.float32).reshape(1, 1)
    return pl.pallas_call(
        _scene_encoder_kernel,
        out_shape=jax.ShapeDtypeStruct((N, 2 * H), jnp.float32),
    )(x_tm, wih, whh, b, wa, ba, mask)


def modality_pool_pallas(x, w_proj, b_proj, w_attn, b_attn):
    N, _, _ = x.shape
    P = w_proj.shape[0]
    return pl.pallas_call(
        _modality_kernel,
        out_shape=jax.ShapeDtypeStruct((N, P), jnp.float32),
    )(jnp.asarray(x, jnp.float32),
      jnp.asarray(w_proj, jnp.float32).T,
      jnp.asarray(b_proj, jnp.float32).reshape(1, P),
      jnp.asarray(w_attn, jnp.float32).reshape(1, P),
      jnp.asarray(b_attn, jnp.float32).reshape(1, 1))


def script_head_pallas(scene_cat, p_fwd, p_bwd, w_tp, b_tp, window_length):
    S, _ = scene_cat.shape
    wih, whh, b = _pack_bilstm_params(p_fwd, p_bwd)
    A_l, A_r = _context_matrices(S, window_length)
    x3 = jnp.asarray(scene_cat, jnp.float32)[:, None, :]                       # [S, 1, Din]
    y_s5 = pl.pallas_call(
        _script_head_kernel,
        out_shape=jax.ShapeDtypeStruct((S, 5), jnp.float32),
    )(x3, wih, whh, b, A_l, A_r,
      jnp.asarray(w_tp, jnp.float32).T, jnp.asarray(b_tp, jnp.float32).reshape(1, 5))
    return y_s5.T                                                              # [5, S]


# ----------------------------- TAM forward -----------------------------

def tam_forward(params, cfg, window_length, script, scene_lens, audio, vision):
    # 1) scene encoder (bi-LSTM) + masked attention pooling  -> [N, scene_size]
    scene_emb = scene_encoder_pallas(script, scene_lens,
                                     params["scene_lstm_fwd"], params["scene_lstm_bwd"],
                                     params["attn_w"], params["attn_b"])

    # 2) audio / vision: projection + attention + pooling, one fused kernel each
    audio_v = modality_pool_pallas(audio, params["audio_w"], params["audio_b"],
                                   params["a_attn_w"], params["a_attn_b"])     # [N, script_size]
    vision_v = modality_pool_pallas(vision, params["vision_w"], params["vision_b"],
                                    params["v_attn_w"], params["v_attn_b"])    # [N, script_size]

    # 3) script encoder + context windows + interaction + 5 TP heads + softmax (one kernel)
    scene_cat = jnp.concatenate([scene_emb, audio_v, vision_v], axis=-1)       # [N, scene_size*3]
    y = script_head_pallas(scene_cat, params["script_lstm_fwd"], params["script_lstm_bwd"],
                           params["tp_w"], params["tp_b"], window_length)      # [5, S]
    return y


# ----------------------------- parameter init (deterministic, synthetic) -----------------------------

def _uinit(key, shape, scale):
    return jax.random.uniform(key, shape, jnp.float32, -scale, scale)


def _init_lstm_dir(key, in_size, H):
    k = jax.random.split(key, 4)
    s = 1.0 / (H ** 0.5)
    return (_uinit(k[0], (4 * H, in_size), s),   # W_ih
            _uinit(k[1], (4 * H, H), s),         # W_hh
            _uinit(k[2], (4 * H,), s),           # b_ih
            _uinit(k[3], (4 * H,), s))           # b_hh


def init_params(key, cfg):
    # TODO(synk): multi-layer LSTM stacking not implemented; config uses num_layers=1.
    Hs = cfg["scene_encoder_size"]
    scene_size = Hs * (2 if cfg["scene_encoder_bidirectional"] else 1)
    Hc = cfg["script_encoder_size"]
    script_size = Hc * (2 if cfg["script_encoder_bidirectional"] else 1)
    interaction_size = (script_size * 4 + 1) * 2 + script_size

    ks = jax.random.split(key, 16)
    p = {
        "scene_lstm_fwd": _init_lstm_dir(ks[0], cfg["input_size"], Hs),
        "scene_lstm_bwd": _init_lstm_dir(ks[1], cfg["input_size"], Hs),
        "attn_w": _uinit(ks[2], (1, scene_size), 0.1),
        "attn_b": _uinit(ks[3], (1,), 0.1),
        "audio_w": _uinit(ks[4], (script_size, cfg["audio_size"]), 0.1),
        "audio_b": _uinit(ks[5], (script_size,), 0.1),
        "vision_w": _uinit(ks[6], (script_size, cfg["vision_size"]), 0.1),
        "vision_b": _uinit(ks[7], (script_size,), 0.1),
        "a_attn_w": _uinit(ks[8], (1, script_size), 0.1),
        "a_attn_b": _uinit(ks[9], (1,), 0.1),
        "v_attn_w": _uinit(ks[10], (1, script_size), 0.1),
        "v_attn_b": _uinit(ks[11], (1,), 0.1),
        "script_lstm_fwd": _init_lstm_dir(ks[12], scene_size * 3, Hc),
        "script_lstm_bwd": _init_lstm_dir(ks[13], scene_size * 3, Hc),
        "tp_w": _uinit(ks[14], (5, interaction_size), 0.1),   # TP1..TP5 stacked
        "tp_b": _uinit(ks[15], (5,), 0.1),
    }
    return p


# ----------------------------- main -----------------------------

if __name__ == "__main__":
    cfg = dict(
        input_size=16,
        scene_encoder_size=16, scene_encoder_layers=1, scene_encoder_bidirectional=True,
        script_encoder_size=16, script_encoder_layers=1, script_encoder_bidirectional=True,
        audio_size=12, vision_size=20,
    )
    window_length = 0.5

    key = jax.random.PRNGKey(0)
    kp, ks_, ka, kv = jax.random.split(key, 4)

    N_scenes, T_utt, T_aud, T_vis = 6, 8, 5, 7
    script = jax.random.normal(ks_, (N_scenes, T_utt, cfg["input_size"]), jnp.float32)
    scene_lens = jnp.array([8, 5, 3, 8, 6, 4], dtype=jnp.int32)
    audio = jax.random.normal(ka, (N_scenes, T_aud, cfg["audio_size"]), jnp.float32)
    vision = jax.random.normal(kv, (N_scenes, T_vis, cfg["vision_size"]), jnp.float32)

    params = init_params(kp, cfg)

    fwd = jax.jit(functools.partial(tam_forward, params, cfg, window_length))
    y = jax.block_until_ready(fwd(script, scene_lens, audio, vision))

    assert y.shape == (5, N_scenes), y.shape
    assert bool(jnp.all(jnp.isfinite(y)))
    # each head's softmax over scenes sums to 1
    assert bool(jnp.allclose(jnp.sum(y, axis=-1), 1.0, atol=1e-4))
    print("KERNEL_OK")
</pallas_src>

<mosaic_0001>
module attributes {stable_mosaic.version = 11 : i64} {
  func.func @_scene_encoder_kernel(%arg0: memref<8x6x16xf32, #tpu.memory_space<vmem>>, %arg1: memref<16x128xf32, #tpu.memory_space<vmem>>, %arg2: memref<32x128xf32, #tpu.memory_space<vmem>>, %arg3: memref<1x128xf32, #tpu.memory_space<vmem>>, %arg4: memref<1x32xf32, #tpu.memory_space<vmem>>, %arg5: memref<1x1xf32, #tpu.memory_space<vmem>>, %arg6: memref<6x8xf32, #tpu.memory_space<vmem>>, %arg7: memref<6x32xf32, #tpu.memory_space<vmem>>) attributes {dimension_semantics = [], scalar_prefetch = 0 : i64, scratch_operands = 0 : i64, tpu.core_type = #tpu.core_type<tc>} {
    %c0 = arith.constant 0 : index
    %c0_0 = arith.constant 0 : index
    %0 = vector.load %arg1[%c0, %c0_0] : memref<16x128xf32, #tpu.memory_space<vmem>>, vector<16x128xf32>
    %c0_1 = arith.constant 0 : index
    %c0_2 = arith.constant 0 : index
    %1 = vector.load %arg2[%c0_1, %c0_2] : memref<32x128xf32, #tpu.memory_space<vmem>>, vector<32x128xf32>
    %c0_3 = arith.constant 0 : index
    %c0_4 = arith.constant 0 : index
    %2 = vector.load %arg3[%c0_3, %c0_4] : memref<1x128xf32, #tpu.memory_space<vmem>>, vector<1x128xf32>
    %c0_5 = arith.constant 0 : index
    %c0_6 = arith.constant 0 : index
    %c0_7 = arith.constant 0 : index
    %3 = vector.load %arg0[%c0_5, %c0_6, %c0_7] : memref<8x6x16xf32, #tpu.memory_space<vmem>>, vector<1x6x16xf32>
    %4 = vector.shape_cast %3 : vector<1x6x16xf32> to vector<6x16xf32>
    %cst = arith.constant dense<0.000000e+00> : vector<6x128xf32>
    %5 = tpu.matmul %4, %0, %cst {dimension_numbers = #tpu.dot_dimension_numbers<[1], [0], [0], [1], [0, 0, 1, 1], [], []>} : vector<6x16xf32>, vector<16x128xf32>, vector<6x128xf32> -> vector<6x128xf32>
    %6 = vector.broadcast %2 : vector<1x128xf32> to vector<6x128xf32>
    %7 = arith.addf %5, %6 : vector<6x128xf32>
    %c1 = arith.constant 1 : index
    %c0_8 = arith.constant 0 : index
    %c0_9 = arith.constant 0 : index
    %8 = vector.load %arg0[%c1, %c0_8, %c0_9] : memref<8x6x16xf32, #tpu.memory_space<vmem>>, vector<1x6x16xf32>
    %9 = vector.shape_cast %8 : vector<1x6x16xf32> to vector<6x16xf32>
    %cst_10 = arith.constant dense<0.000000e+00> : vector<6x128xf32>
    %10 = tpu.matmul %9, %0, %cst_10 {dimension_numbers = #tpu.dot_dimension_numbers<[1], [0], [0], [1], [0, 0, 1, 1], [], []>} : vector<6x16xf32>, vector<16x128xf32>, vector<6x128xf32> -> vector<6x128xf32>
    %11 = vector.broadcast %2 : vector<1x128xf32> to vector<6x128xf32>
    %12 = arith.addf %10, %11 : vector<6x128xf32>
    %c2 = arith.constant 2 : index
    %c0_11 = arith.constant 0 : index
    %c0_12 = arith.constant 0 : index
    %13 = vector.load %arg0[%c2, %c0_11, %c0_12] : memref<8x6x16xf32, #tpu.memory_space<vmem>>, vector<1x6x16xf32>
    %14 = vector.shape_cast %13 : vector<1x6x16xf32> to vector<6x16xf32>
    %cst_13 = arith.constant dense<0.000000e+00> : vector<6x128xf32>
    %15 = tpu.matmul %14, %0, %cst_13 {dimension_numbers = #tpu.dot_dimension_numbers<[1], [0], [0], [1], [0, 0, 1, 1], [], []>} : vector<6x16xf32>, vector<16x128xf32>, vector<6x128xf32> -> vector<6x128xf32>
    %16 = vector.broadcast %2 : vector<1x128xf32> to vector<6x128xf32>
    %17 = arith.addf %15, %16 : vector<6x128xf32>
    %c3 = arith.constant 3 : index
    %c0_14 = arith.constant 0 : index
    %c0_15 = arith.constant 0 : index
    %18 = vector.load %arg0[%c3, %c0_14, %c0_15] : memref<8x6x16xf32, #tpu.memory_space<vmem>>, vector<1x6x16xf32>
    %19 = vector.shape_cast %18 : vector<1x6x16xf32> to vector<6x16xf32>
    %cst_16 = arith.constant dense<0.000000e+00> : vector<6x128xf32>
    %20 = tpu.matmul %19, %0, %cst_16 {dimension_numbers = #tpu.dot_dimension_numbers<[1], [0], [0], [1], [0, 0, 1, 1], [], []>} : vector<6x16xf32>, vector<16x128xf32>, vector<6x128xf32> -> vector<6x128xf32>
    %21 = vector.broadcast %2 : vector<1x128xf32> to vector<6x128xf32>
    %22 = arith.addf %20, %21 : vector<6x128xf32>
    %c4 = arith.constant 4 : index
    %c0_17 = arith.constant 0 : index
    %c0_18 = arith.constant 0 : index
    %23 = vector.load %arg0[%c4, %c0_17, %c0_18] : memref<8x6x16xf32, #tpu.memory_space<vmem>>, vector<1x6x16xf32>
    %24 = vector.shape_cast %23 : vector<1x6x16xf32> to vector<6x16xf32>
    %cst_19 = arith.constant dense<0.000000e+00> : vector<6x128xf32>
    %25 = tpu.matmul %24, %0, %cst_19 {dimension_numbers = #tpu.dot_dimension_numbers<[1], [0], [0], [1], [0, 0, 1, 1], [], []>} : vector<6x16xf32>, vector<16x128xf32>, vector<6x128xf32> -> vector<6x128xf32>
    %26 = vector.broadcast %2 : vector<1x128xf32> to vector<6x128xf32>
    %27 = arith.addf %25, %26 : vector<6x128xf32>
    %c5 = arith.constant 5 : index
    %c0_20 = arith.constant 0 : index
    %c0_21 = arith.constant 0 : index
    %28 = vector.load %arg0[%c5, %c0_20, %c0_21] : memref<8x6x16xf32, #tpu.memory_space<vmem>>, vector<1x6x16xf32>
    %29 = vector.shape_cast %28 : vector<1x6x16xf32> to vector<6x16xf32>
    %cst_22 = arith.constant dense<0.000000e+00> : vector<6x128xf32>
    %30 = tpu.matmul %29, %0, %cst_22 {dimension_numbers = #tpu.dot_dimension_numbers<[1], [0], [0], [1], [0, 0, 1, 1], [], []>} : vector<6x16xf32>, vector<16x128xf32>, vector<6x128xf32> -> vector<6x128xf32>
    %31 = vector.broadcast %2 : vector<1x128xf32> to vector<6x128xf32>
    %32 = arith.addf %30, %31 : vector<6x128xf32>
    %c6 = arith.constant 6 : index
    %c0_23 = arith.constant 0 : index
    %c0_24 = arith.constant 0 : index
    %33 = vector.load %arg0[%c6, %c0_23, %c0_24] : memref<8x6x16xf32, #tpu.memory_space<vmem>>, vector<1x6x16xf32>
    %34 = vector.shape_cast %33 : vector<1x6x16xf32> to vector<6x16xf32>
    %cst_25 = arith.constant dense<0.000000e+00> : vector<6x128xf32>
    %35 = tpu.matmul %34, %0, %cst_25 {dimension_numbers = #tpu.dot_dimension_numbers<[1], [0], [0], [1], [0, 0, 1, 1], [], []>} : vector<6x16xf32>, vector<16x128xf32>, vector<6x128xf32> -> vector<6x128xf32>
    %36 = vector.broadcast %2 : vector<1x128xf32> to vector<6x128xf32>
    %37 = arith.addf %35, %36 : vector<6x128xf32>
    %c7 = arith.constant 7 : index
    %c0_26 = arith.constant 0 : index
    %c0_27 = arith.constant 0 : index
    %38 = vector.load %arg0[%c7, %c0_26, %c0_27] : memref<8x6x16xf32, #tpu.memory_space<vmem>>, vector<1x6x16xf32>
    %39 = vector.shape_cast %38 : vector<1x6x16xf32> to vector<6x16xf32>
    %cst_28 = arith.constant dense<0.000000e+00> : vector<6x128xf32>
    %40 = tpu.matmul %39, %0, %cst_28 {dimension_numbers = #tpu.dot_dimension_numbers<[1], [0], [0], [1], [0, 0, 1, 1], [], []>} : vector<6x16xf32>, vector<16x128xf32>, vector<6x128xf32> -> vector<6x128xf32>
    %41 = vector.broadcast %2 : vector<1x128xf32> to vector<6x128xf32>
    %42 = arith.addf %40, %41 : vector<6x128xf32>
    %cst_29 = arith.constant 0.000000e+00 : f32
    %43 = vector.broadcast %cst_29 : f32 to vector<6x16xf32>
    %44 = tpu.concatenate %43, %43 in 1 : vector<6x16xf32>, vector<6x16xf32> -> vector<6x32xf32>
    %cst_30 = arith.constant dense<0.000000e+00> : vector<6x128xf32>
    %45 = tpu.matmul %44, %1, %cst_30 {dimension_numbers = #tpu.dot_dimension_numbers<[1], [0], [0], [1], [0, 0, 1, 1], [], []>} : vector<6x32xf32>, vector<32x128xf32>, vector<6x128xf32> -> vector<6x128xf32>
    %46 = vector.extract_strided_slice %7 {offsets = [0, 0], sizes = [6, 64], strides = [1, 1]} : vector<6x128xf32> to vector<6x64xf32>
    %47 = vector.extract_strided_slice %45 {offsets = [0, 0], sizes = [6, 64], strides = [1, 1]} : vector<6x128xf32> to vector<6x64xf32>
    %48 = arith.addf %46, %47 : vector<6x64xf32>
    %49 = vector.extract_strided_slice %42 {offsets = [0, 64], sizes = [6, 64], strides = [1, 1]} : vector<6x128xf32> to vector<6x64xf32>
    %50 = vector.extract_strided_slice %45 {offsets = [0, 64], sizes = [6, 64], strides = [1, 1]} : vector<6x128xf32> to vector<6x64xf32>
    %51 = arith.addf %49, %50 : vector<6x64xf32>
    %52 = vector.extract_strided_slice %48 {offsets = [0, 0], sizes = [6, 16], strides = [1, 1]} : vector<6x64xf32> to vector<6x16xf32>
    %53 = arith.negf %52 : vector<6x16xf32>
    %54 = math.exp %53 : vector<6x16xf32>
    %cst_31 = arith.constant 1.000000e+00 : f32
    %55 = vector.broadcast %cst_31 : f32 to vector<6x16xf32>
    %56 = arith.addf %55, %54 : vector<6x16xf32>
    %57 = arith.divf %55, %56 : vector<6x16xf32>
    %58 = vector.extract_strided_slice %48 {offsets = [0, 16], sizes = [6, 16], strides = [1, 1]} : vector<6x64xf32> to vector<6x16xf32>
    %59 = arith.negf %58 : vector<6x16xf32>
    %60 = math.exp %59 : vector<6x16xf32>
    %cst_32 = arith.constant 1.000000e+00 : f32
    %61 = vector.broadcast %cst_32 : f32 to vector<6x16xf32>
    %62 = arith.addf %61, %60 : vector<6x16xf32>
    %63 = arith.divf %61, %62 : vector<6x16xf32>
    %64 = vector.extract_strided_slice %48 {offsets = [0, 32], sizes = [6, 16], strides = [1, 1]} : vector<6x64xf32> to vector<6x16xf32>
    %65 = math.tanh %64 : vector<6x16xf32>
    %66 = vector.extract_strided_slice %48 {offsets = [0, 48], sizes = [6, 16], strides = [1, 1]} : vector<6x64xf32> to vector<6x16xf32>
    %67 = arith.negf %66 : vector<6x16xf32>
    %68 = math.exp %67 : vector<6x16xf32>
    %cst_33 = arith.constant 1.000000e+00 : f32
    %69 = vector.broadcast %cst_33 : f32 to vector<6x16xf32>
    %70 = arith.addf %69, %68 : vector<6x16xf32>
    %71 = arith.divf %69, %70 : vector<6x16xf32>
    %72 = arith.mulf %63, %43 : vector<6x16xf32>
    %73 = arith.mulf %57, %65 : vector<6x16xf32>
    %74 = arith.addf %72, %73 : vector<6x16xf32>
    %75 = math.tanh %74 : vector<6x16xf32>
    %76 = arith.mulf %71, %75 : vector<6x16xf32>
    %77 = vector.extract_strided_slice %51 {offsets = [0, 0], sizes = [6, 16], strides = [1, 1]} : vector<6x64xf32> to vector<6x16xf32>
    %78 = arith.negf %77 : vector<6x16xf32>
    %79 = math.exp %78 : vector<6x16xf32>
    %cst_34 = arith.constant 1.000000e+00 : f32
    %80 = vector.broadcast %cst_34 : f32 to vector<6x16xf32>
    %81 = arith.addf %80, %79 : vector<6x16xf32>
    %82 = arith.divf %80, %81 : vector<6x16xf32>
    %83 = vector.extract_strided_slice %51 {offsets = [0, 16], sizes = [6, 16], strides = [1, 1]} : vector<6x64xf32> to vector<6x16xf32>
    %84 = arith.negf %83 : vector<6x16xf32>
    %85 = math.exp %84 : vector<6x16xf32>
    %cst_35 = arith.constant 1.000000e+00 : f32
    %86 = vector.broadcast %cst_35 : f32 to vector<6x16xf32>
    %87 = arith.addf %86, %85 : vector<6x16xf32>
    %88 = arith.divf %86, %87 : vector<6x16xf32>
    %89 = vector.extract_strided_slice %51 {offsets = [0, 32], sizes = [6, 16], strides = [1, 1]} : vector<6x64xf32> to vector<6x16xf32>
    %90 = math.tanh %89 : vector<6x16xf32>
    %91 = vector.extract_strided_slice %51 {offsets = [0, 48], sizes = [6, 16], strides = [1, 1]} : vector<6x64xf32> to vector<6x16xf32>
    %92 = arith.negf %91 : vector<6x16xf32>
    %93 = math.exp %92 : vector<6x16xf32>
    %cst_36 = arith.constant 1.000000e+00 : f32
    %94 = vector.broadcast %cst_36 : f32 to vector<6x16xf32>
    %95 = arith.addf %94, %93 : vector<6x16xf32>
    %96 = arith.divf %94, %95 : vector<6x16xf32>
    %97 = arith.mulf %88, %43 : vector<6x16xf32>
    %98 = arith.mulf %82, %90 : vector<6x16xf32>
    %99 = arith.addf %97, %98 : vector<6x16xf32>
    %100 = math.tanh %99 : vector<6x16xf32>
    %101 = arith.mulf %96, %100 : vector<6x16xf32>
    %102 = tpu.concatenate %76, %101 in 1 : vector<6x16xf32>, vector<6x16xf32> -> vector<6x32xf32>
    %cst_37 = arith.constant dense<0.000000e+00> : vector<6x128xf32>
    %103 = tpu.matmul %102, %1, %cst_37 {dimension_numbers = #tpu.dot_dimension_numbers<[1], [0], [0], [1], [0, 0, 1, 1], [], []>} : vector<6x32xf32>, vector<32x128xf32>, vector<6x128xf32> -> vector<6x128xf32>
    %104 = vector.extract_strided_slice %12 {offsets = [0, 0], sizes = [6, 64], strides = [1, 1]} : vector<6x128xf32> to vector<6x64xf32>
    %105 = vector.extract_strided_slice %103 {offsets = [0, 0], sizes = [6, 64], strides = [1, 1]} : vector<6x128xf32> to vector<6x64xf32>
    %106 = arith.addf %104, %105 : vector<6x64xf32>
    %107 = vector.extract_strided_slice %37 {offsets = [0, 64], sizes = [6, 64], strides = [1, 1]} : vector<6x128xf32> to vector<6x64xf32>
    %108 = vector.extract_strided_slice %103 {offsets = [0, 64], sizes = [6, 64], strides = [1, 1]} : vector<6x128xf32> to vector<6x64xf32>
    %109 = arith.addf %107, %108 : vector<6x64xf32>
    %110 = vector.extract_strided_slice %106 {offsets = [0, 0], sizes = [6, 16], strides = [1, 1]} : vector<6x64xf32> to vector<6x16xf32>
    %111 = arith.negf %110 : vector<6x16xf32>
    %112 = math.exp %111 : vector<6x16xf32>
    %cst_38 = arith.constant 1.000000e+00 : f32
    %113 = vector.broadcast %cst_38 : f32 to vector<6x16xf32>
    %114 = arith.addf %113, %112 : vector<6x16xf32>
    %115 = arith.divf %113, %114 : vector<6x16xf32>
    %116 = vector.extract_strided_slice %106 {offsets = [0, 16], sizes = [6, 16], strides = [1, 1]} : vector<6x64xf32> to vector<6x16xf32>
    %117 = arith.negf %116 : vector<6x16xf32>
    %118 = math.exp %117 : vector<6x16xf32>
    %cst_39 = arith.constant 1.000000e+00 : f32
    %119 = vector.broadcast %cst_39 : f32 to vector<6x16xf32>
    %120 = arith.addf %119, %118 : vector<6x16xf32>
    %121 = arith.divf %119, %120 : vector<6x16xf32>
    %122 = vector.extract_strided_slice %106 {offsets = [0, 32], sizes = [6, 16], strides = [1, 1]} : vector<6x64xf32> to vector<6x16xf32>
    %123 = math.tanh %122 : vector<6x16xf32>
    %124 = vector.extract_strided_slice %106 {offsets = [0, 48], sizes = [6, 16], strides = [1, 1]} : vector<6x64xf32> to vector<6x16xf32>
    %125 = arith.negf %124 : vector<6x16xf32>
    %126 = math.exp %125 : vector<6x16xf32>
    %cst_40 = arith.constant 1.000000e+00 : f32
    %127 = vector.broadcast %cst_40 : f32 to vector<6x16xf32>
    %128 = arith.addf %127, %126 : vector<6x16xf32>
    %129 = arith.divf %127, %128 : vector<6x16xf32>
    %130 = arith.mulf %121, %74 : vector<6x16xf32>
    %131 = arith.mulf %115, %123 : vector<6x16xf32>
    %132 = arith.addf %130, %131 : vector<6x16xf32>
    %133 = math.tanh %132 : vector<6x16xf32>
    %134 = arith.mulf %129, %133 : vector<6x16xf32>
    %135 = vector.extract_strided_slice %109 {offsets = [0, 0], sizes = [6, 16], strides = [1, 1]} : vector<6x64xf32> to vector<6x16xf32>
    %136 = arith.negf %135 : vector<6x16xf32>
    %137 = math.exp %136 : vector<6x16xf32>
    %cst_41 = arith.constant 1.000000e+00 : f32
    %138 = vector.broadcast %cst_41 : f32 to vector<6x16xf32>
    %139 = arith.addf %138, %137 : vector<6x16xf32>
    %140 = arith.divf %138, %139 : vector<6x16xf32>
    %141 = vector.extract_strided_slice %109 {offsets = [0, 16], sizes = [6, 16], strides = [1, 1]} : vector<6x64xf32> to vector<6x16xf32>
    %142 = arith.negf %141 : vector<6x16xf32>
    %143 = math.exp %142 : vector<6x16xf32>
    %cst_42 = arith.constant 1.000000e+00 : f32
    %144 = vector.broadcast %cst_42 : f32 to vector<6x16xf32>
    %145 = arith.addf %144, %143 : vector<6x16xf32>
    %146 = arith.divf %144, %145 : vector<6x16xf32>
    %147 = vector.extract_strided_slice %109 {offsets = [0, 32], sizes = [6, 16], strides = [1, 1]} : vector<6x64xf32> to vector<6x16xf32>
    %148 = math.tanh %147 : vector<6x16xf32>
    %149 = vector.extract_strided_slice %109 {offsets = [0, 48], sizes = [6, 16], strides = [1, 1]} : vector<6x64xf32> to vector<6x16xf32>
    %150 = arith.negf %149 : vector<6x16xf32>
    %151 = math.exp %150 : vector<6x16xf32>
    %cst_43 = arith.constant 1.000000e+00 : f32
    %152 = vector.broadcast %cst_43 : f32 to vector<6x16xf32>
    %153 = arith.addf %152, %151 : vector<6x16xf32>
    %154 = arith.divf %152, %153 : vector<6x16xf32>
    %155 = arith.mulf %146, %99 : vector<6x16xf32>
    %156 = arith.mulf %140, %148 : vector<6x16xf32>
    %157 = arith.addf %155, %156 : vector<6x16xf32>
    %158 = math.tanh %157 : vector<6x16xf32>
    %159 = arith.mulf %154, %158 : vector<6x16xf32>
    %160 = tpu.concatenate %134, %159 in 1 : vector<6x16xf32>, vector<6x16xf32> -> vector<6x32xf32>
    %cst_44 = arith.constant dense<0.000000e+00> : vector<6x128xf32>
    %161 = tpu.matmul %160, %1, %cst_44 {dimension_numbers = #tpu.dot_dimension_numbers<[1], [0], [0], [1], [0, 0, 1, 1], [], []>} : vector<6x32xf32>, vector<32x128xf32>, vector<6x128xf32> -> vector<6x128xf32>
    %162 = vector.extract_strided_slice %17 {offsets = [0, 0], sizes = [6, 64], strides = [1, 1]} : vector<6x128xf32> to vector<6x64xf32>
    %163 = vector.extract_strided_slice %161 {offsets = [0, 0], sizes = [6, 64], strides = [1, 1]} : vector<6x128xf32> to vector<6x64xf32>
    %164 = arith.addf %162, %163 : vector<6x64xf32>
    %165 = vector.extract_strided_slice %32 {offsets = [0, 64], sizes = [6, 64], strides = [1, 1]} : vector<6x128xf32> to vector<6x64xf32>
    %166 = vector.extract_strided_slice %161 {offsets = [0, 64], sizes = [6, 64], strides = [1, 1]} : vector<6x128xf32> to vector<6x64xf32>
    %167 = arith.addf %165, %166 : vector<6x64xf32>
    %168 = vector.extract_strided_slice %164 {offsets = [0, 0], sizes = [6, 16], strides = [1, 1]} : vector<6x64xf32> to vector<6x16xf32>
    %169 = arith.negf %168 : vector<6x16xf32>
    %170 = math.exp %169 : vector<6x16xf32>
    %cst_45 = arith.constant 1.000000e+00 : f32
    %171 = vector.broadcast %cst_45 : f32 to vector<6x16xf32>
    %172 = arith.addf %171, %170 : vector<6x16xf32>
    %173 = arith.divf %171, %172 : vector<6x16xf32>
    %174 = vector.extract_strided_slice %164 {offsets = [0, 16], sizes = [6, 16], strides = [1, 1]} : vector<6x64xf32> to vector<6x16xf32>
    %175 = arith.negf %174 : vector<6x16xf32>
    %176 = math.exp %175 : vector<6x16xf32>
    %cst_46 = arith.constant 1.000000e+00 : f32
    %177 = vector.broadcast %cst_46 : f32 to vector<6x16xf32>
    %178 = arith.addf %177, %176 : vector<6x16xf32>
    %179 = arith.divf %177, %178 : vector<6x16xf32>
    %180 = vector.extract_strided_slice %164 {offsets = [0, 32], sizes = [6, 16], strides = [1, 1]} : vector<6x64xf32> to vector<6x16xf32>
    %181 = math.tanh %180 : vector<6x16xf32>
    %182 = vector.extract_strided_slice %164 {offsets = [0, 48], sizes = [6, 16], strides = [1, 1]} : vector<6x64xf32> to vector<6x16xf32>
    %183 = arith.negf %182 : vector<6x16xf32>
    %184 = math.exp %183 : vector<6x16xf32>
    %cst_47 = arith.constant 1.000000e+00 : f32
    %185 = vector.broadcast %cst_47 : f32 to vector<6x16xf32>
    %186 = arith.addf %185, %184 : vector<6x16xf32>
    %187 = arith.divf %185, %186 : vector<6x16xf32>
    %188 = arith.mulf %179, %132 : vector<6x16xf32>
    %189 = arith.mulf %173, %181 : vector<6x16xf32>
    %190 = arith.addf %188, %189 : vector<6x16xf32>
    %191 = math.tanh %190 : vector<6x16xf32>
    %192 = arith.mulf %187, %191 : vector<6x16xf32>
    %193 = vector.extract_strided_slice %167 {offsets = [0, 0], sizes = [6, 16], strides = [1, 1]} : vector<6x64xf32> to vector<6x16xf32>
    %194 = arith.negf %193 : vector<6x16xf32>
    %195 = math.exp %194 : vector<6x16xf32>
    %cst_48 = arith.constant 1.000000e+00 : f32
    %196 = vector.broadcast %cst_48 : f32 to vector<6x16xf32>
    %197 = arith.addf %196, %195 : vector<6x16xf32>
    %198 = arith.divf %196, %197 : vector<6x16xf32>
    %199 = vector.extract_strided_slice %167 {offsets = [0, 16], sizes = [6, 16], strides = [1, 1]} : vector<6x64xf32> to vector<6x16xf32>
    %200 = arith.negf %199 : vector<6x16xf32>
    %201 = math.exp %200 : vector<6x16xf32>
    %cst_49 = arith.constant 1.000000e+00 : f32
    %202 = vector.broadcast %cst_49 : f32 to vector<6x16xf32>
    %203 = arith.addf %202, %201 : vector<6x16xf32>
    %204 = arith.divf %202, %203 : vector<6x16xf32>
    %205 = vector.extract_strided_slice %167 {offsets = [0, 32], sizes = [6, 16], strides = [1, 1]} : vector<6x64xf32> to vector<6x16xf32>
    %206 = math.tanh %205 : vector<6x16xf32>
    %207 = vector.extract_strided_slice %167 {offsets = [0, 48], sizes = [6, 16], strides = [1, 1]} : vector<6x64xf32> to vector<6x16xf32>
    %208 = arith.negf %207 : vector<6x16xf32>
    %209 = math.exp %208 : vector<6x16xf32>
    %cst_50 = arith.constant 1.000000e+00 : f32
    %210 = vector.broadcast %cst_50 : f32 to vector<6x16xf32>
    %211 = arith.addf %210, %209 : vector<6x16xf32>
    %212 = arith.divf %210, %211 : vector<6x16xf32>
    %213 = arith.mulf %204, %157 : vector<6x16xf32>
    %214 = arith.mulf %198, %206 : vector<6x16xf32>
    %215 = arith.addf %213, %214 : vector<6x16xf32>
    %216 = math.tanh %215 : vector<6x16xf32>
    %217 = arith.mulf %212, %216 : vector<6x16xf32>
    %218 = tpu.concatenate %192, %217 in 1 : vector<6x16xf32>, vector<6x16xf32> -> vector<6x32xf32>
    %cst_51 = arith.constant dense<0.000000e+00> : vector<6x128xf32>
    %219 = tpu.matmul %218, %1, %cst_51 {dimension_numbers = #tpu.dot_dimension_numbers<[1], [0], [0], [1], [0, 0, 1, 1], [], []>} : vector<6x32xf32>, vector<32x128xf32>, vector<6x128xf32> -> vector<6x128xf32>
    %220 = vector.extract_strided_slice %22 {offsets = [0, 0], sizes = [6, 64], strides = [1, 1]} : vector<6x128xf32> to vector<6x64xf32>
    %221 = vector.extract_strided_slice %219 {offsets = [0, 0], sizes = [6, 64], strides = [1, 1]} : vector<6x128xf32> to vector<6x64xf32>
    %222 = arith.addf %220, %221 : vector<6x64xf32>
    %223 = vector.extract_strided_slice %27 {offsets = [0, 64], sizes = [6, 64], strides = [1, 1]} : vector<6x128xf32> to vector<6x64xf32>
    %224 = vector.extract_strided_slice %219 {offsets = [0, 64], sizes = [6, 64], strides = [1, 1]} : vector<6x128xf32> to vector<6x64xf32>
    %225 = arith.addf %223, %224 : vector<6x64xf32>
    %226 = vector.extract_strided_slice %222 {offsets = [0, 0], sizes = [6, 16], strides = [1, 1]} : vector<6x64xf32> to vector<6x16xf32>
    %227 = arith.negf %226 : vector<6x16xf32>
    %228 = math.exp %227 : vector<6x16xf32>
    %cst_52 = arith.constant 1.000000e+00 : f32
    %229 = vector.broadcast %cst_52 : f32 to vector<6x16xf32>
    %230 = arith.addf %229, %228 : vector<6x16xf32>
    %231 = arith.divf %229, %230 : vector<6x16xf32>
    %232 = vector.extract_strided_slice %222 {offsets = [0, 16], sizes = [6, 16], strides = [1, 1]} : vector<6x64xf32> to vector<6x16xf32>
    %233 = arith.negf %232 : vector<6x16xf32>
    %234 = math.exp %233 : vector<6x16xf32>
    %cst_53 = arith.constant 1.000000e+00 : f32
    %235 = vector.broadcast %cst_53 : f32 to vector<6x16xf32>
    %236 = arith.addf %235, %234 : vector<6x16xf32>
    %237 = arith.divf %235, %236 : vector<6x16xf32>
    %238 = vector.extract_strided_slice %222 {offsets = [0, 32], sizes = [6, 16], strides = [1, 1]} : vector<6x64xf32> to vector<6x16xf32>
    %239 = math.tanh %238 : vector<6x16xf32>
    %240 = vector.extract_strided_slice %222 {offsets = [0, 48], sizes = [6, 16], strides = [1, 1]} : vector<6x64xf32> to vector<6x16xf32>
    %241 = arith.negf %240 : vector<6x16xf32>
    %242 = math.exp %241 : vector<6x16xf32>
    %cst_54 = arith.constant 1.000000e+00 : f32
    %243 = vector.broadcast %cst_54 : f32 to vector<6x16xf32>
    %244 = arith.addf %243, %242 : vector<6x16xf32>
    %245 = arith.divf %243, %244 : vector<6x16xf32>
    %246 = arith.mulf %237, %190 : vector<6x16xf32>
    %247 = arith.mulf %231, %239 : vector<6x16xf32>
    %248 = arith.addf %246, %247 : vector<6x16xf32>
    %249 = math.tanh %248 : vector<6x16xf32>
    %250 = arith.mulf %245, %249 : vector<6x16xf32>
    %251 = vector.extract_strided_slice %225 {offsets = [0, 0], sizes = [6, 16], strides = [1, 1]} : vector<6x64xf32> to vector<6x16xf32>
    %252 = arith.negf %251 : vector<6x16xf32>
    %253 = math.exp %252 : vector<6x16xf32>
    %cst_55 = arith.constant 1.000000e+00 : f32
    %254 = vector.broadcast %cst_55 : f32 to vector<6x16xf32>
    %255 = arith.addf %254, %253 : vector<6x16xf32>
    %256 = arith.divf %254, %255 : vector<6x16xf32>
    %257 = vector.extract_strided_slice %225 {offsets = [0, 16], sizes = [6, 16], strides = [1, 1]} : vector<6x64xf32> to vector<6x16xf32>
    %258 = arith.negf %257 : vector<6x16xf32>
    %259 = math.exp %258 : vector<6x16xf32>
    %cst_56 = arith.constant 1.000000e+00 : f32
    %260 = vector.broadcast %cst_56 : f32 to vector<6x16xf32>
    %261 = arith.addf %260, %259 : vector<6x16xf32>
    %262 = arith.divf %260, %261 : vector<6x16xf32>
    %263 = vector.extract_strided_slice %225 {offsets = [0, 32], sizes = [6, 16], strides = [1, 1]} : vector<6x64xf32> to vector<6x16xf32>
    %264 = math.tanh %263 : vector<6x16xf32>
    %265 = vector.extract_strided_slice %225 {offsets = [0, 48], sizes = [6, 16], strides = [1, 1]} : vector<6x64xf32> to vector<6x16xf32>
    %266 = arith.negf %265 : vector<6x16xf32>
    %267 = math.exp %266 : vector<6x16xf32>
    %cst_57 = arith.constant 1.000000e+00 : f32
    %268 = vector.broadcast %cst_57 : f32 to vector<6x16xf32>
    %269 = arith.addf %268, %267 : vector<6x16xf32>
    %270 = arith.divf %268, %269 : vector<6x16xf32>
    %271 = arith.mulf %262, %215 : vector<6x16xf32>
    %272 = arith.mulf %256, %264 : vector<6x16xf32>
    %273 = arith.addf %271, %272 : vector<6x16xf32>
    %274 = math.tanh %273 : vector<6x16xf32>
    %275 = arith.mulf %270, %274 : vector<6x16xf32>
    %276 = tpu.concatenate %250, %275 in 1 : vector<6x16xf32>, vector<6x16xf32> -> vector<6x32xf32>
    %cst_58 = arith.constant dense<0.000000e+00> : vector<6x128xf32>
    %277 = tpu.matmul %276, %1, %cst_58 {dimension_numbers = #tpu.dot_dimension_numbers<[1], [0], [0], [1], [0, 0, 1, 1], [], []>} : vector<6x32xf32>, vector<32x128xf32>, vector<6x128xf32> -> vector<6x128xf32>
    %278 = vector.extract_strided_slice %27 {offsets = [0, 0], sizes = [6, 64], strides = [1, 1]} : vector<6x128xf32> to vector<6x64xf32>
    %279 = vector.extract_strided_slice %277 {offsets = [0, 0], sizes = [6, 64], strides = [1, 1]} : vector<6x128xf32> to vector<6x64xf32>
    %280 = arith.addf %278, %279 : vector<6x64xf32>
    %281 = vector.extract_strided_slice %22 {offsets = [0, 64], sizes = [6, 64], strides = [1, 1]} : vector<6x128xf32> to vector<6x64xf32>
    %282 = vector.extract_strided_slice %277 {offsets = [0, 64], sizes = [6, 64], strides = [1, 1]} : vector<6x128xf32> to vector<6x64xf32>
    %283 = arith.addf %281, %282 : vector<6x64xf32>
    %284 = vector.extract_strided_slice %280 {offsets = [0, 0], sizes = [6, 16], strides = [1, 1]} : vector<6x64xf32> to vector<6x16xf32>
    %285 = arith.negf %284 : vector<6x16xf32>
    %286 = math.exp %285 : vector<6x16xf32>
    %cst_59 = arith.constant 1.000000e+00 : f32
    %287 = vector.broadcast %cst_59 : f32 to vector<6x16xf32>
    %288 = arith.addf %287, %286 : vector<6x16xf32>
    %289 = arith.divf %287, %288 : vector<6x16xf32>
    %290 = vector.extract_strided_slice %280 {offsets = [0, 16], sizes = [6, 16], strides = [1, 1]} : vector<6x64xf32> to vector<6x16xf32>
    %291 = arith.negf %290 : vector<6x16xf32>
    %292 = math.exp %291 : vector<6x16xf32>
    %cst_60 = arith.constant 1.000000e+00 : f32
    %293 = vector.broadcast %cst_60 : f32 to vector<6x16xf32>
    %294 = arith.addf %293, %292 : vector<6x16xf32>
    %295 = arith.divf %293, %294 : vector<6x16xf32>
    %296 = vector.extract_strided_slice %280 {offsets = [0, 32], sizes = [6, 16], strides = [1, 1]} : vector<6x64xf32> to vector<6x16xf32>
    %297 = math.tanh %296 : vector<6x16xf32>
    %298 = vector.extract_strided_slice %280 {offsets = [0, 48], sizes = [6, 16], strides = [1, 1]} : vector<6x64xf32> to vector<6x16xf32>
    %299 = arith.negf %298 : vector<6x16xf32>
    %300 = math.exp %299 : vector<6x16xf32>
    %cst_61 = arith.constant 1.000000e+00 : f32
    %301 = vector.broadcast %cst_61 : f32 to vector<6x16xf32>
    %302 = arith.addf %301, %300 : vector<6x16xf32>
    %303 = arith.divf %301, %302 : vector<6x16xf32>
    %304 = arith.mulf %295, %248 : vector<6x16xf32>
    %305 = arith.mulf %289, %297 : vector<6x16xf32>
    %306 = arith.addf %304, %305 : vector<6x16xf32>
    %307 = math.tanh %306 : vector<6x16xf32>
    %308 = arith.mulf %303, %307 : vector<6x16xf32>
    %309 = vector.extract_strided_slice %283 {offsets = [0, 0], sizes = [6, 16], strides = [1, 1]} : vector<6x64xf32> to vector<6x16xf32>
    %310 = arith.negf %309 : vector<6x16xf32>
    %311 = math.exp %310 : vector<6x16xf32>
    %cst_62 = arith.constant 1.000000e+00 : f32
    %312 = vector.broadcast %cst_62 : f32 to vector<6x16xf32>
    %313 = arith.addf %312, %311 : vector<6x16xf32>
    %314 = arith.divf %312, %313 : vector<6x16xf32>
    %315 = vector.extract_strided_slice %283 {offsets = [0, 16], sizes = [6, 16], strides = [1, 1]} : vector<6x64xf32> to vector<6x16xf32>
    %316 = arith.negf %315 : vector<6x16xf32>
    %317 = math.exp %316 : vector<6x16xf32>
    %cst_63 = arith.constant 1.000000e+00 : f32
    %318 = vector.broadcast %cst_63 : f32 to vector<6x16xf32>
    %319 = arith.addf %318, %317 : vector<6x16xf32>
    %320 = arith.divf %318, %319 : vector<6x16xf32>
    %321 = vector.extract_strided_slice %283 {offsets = [0, 32], sizes = [6, 16], strides = [1, 1]} : vector<6x64xf32> to vector<6x16xf32>
    %322 = math.tanh %321 : vector<6x16xf32>
    %323 = vector.extract_strided_slice %283 {offsets = [0, 48], sizes = [6, 16], strides = [1, 1]} : vector<6x64xf32> to vector<6x16xf32>
    %324 = arith.negf %323 : vector<6x16xf32>
    %325 = math.exp %324 : vector<6x16xf32>
    %cst_64 = arith.constant 1.000000e+00 : f32
    %326 = vector.broadcast %cst_64 : f32 to vector<6x16xf32>
    %327 = arith.addf %326, %325 : vector<6x16xf32>
    %328 = arith.divf %326, %327 : vector<6x16xf32>
    %329 = arith.mulf %320, %273 : vector<6x16xf32>
    %330 = arith.mulf %314, %322 : vector<6x16xf32>
    %331 = arith.addf %329, %330 : vector<6x16xf32>
    %332 = math.tanh %331 : vector<6x16xf32>
    %333 = arith.mulf %328, %332 : vector<6x16xf32>
    %334 = tpu.concatenate %308, %333 in 1 : vector<6x16xf32>, vector<6x16xf32> -> vector<6x32xf32>
    %cst_65 = arith.constant dense<0.000000e+00> : vector<6x128xf32>
    %335 = tpu.matmul %334, %1, %cst_65 {dimension_numbers = #tpu.dot_dimension_numbers<[1], [0], [0], [1], [0, 0, 1, 1], [], []>} : vector<6x32xf32>, vector<32x128xf32>, vector<6x128xf32> -> vector<6x128xf32>
    %336 = vector.extract_strided_slice %32 {offsets = [0, 0], sizes = [6, 64], strides = [1, 1]} : vector<6x128xf32> to vector<6x64xf32>
    %337 = vector.extract_strided_slice %335 {offsets = [0, 0], sizes = [6, 64], strides = [1, 1]} : vector<6x128xf32> to vector<6x64xf32>
    %338 = arith.addf %336, %337 : vector<6x64xf32>
    %339 = vector.extract_strided_slice %17 {offsets = [0, 64], sizes = [6, 64], strides = [1, 1]} : vector<6x128xf32> to vector<6x64xf32>
    %340 = vector.extract_strided_slice %335 {offsets = [0, 64], sizes = [6, 64], strides = [1, 1]} : vector<6x128xf32> to vector<6x64xf32>
    %341 = arith.addf %339, %340 : vector<6x64xf32>
    %342 = vector.extract_strided_slice %338 {offsets = [0, 0], sizes = [6, 16], strides = [1, 1]} : vector<6x64xf32> to vector<6x16xf32>
    %343 = arith.negf %342 : vector<6x16xf32>
    %344 = math.exp %343 : vector<6x16xf32>
    %cst_66 = arith.constant 1.000000e+00 : f32
    %345 = vector.broadcast %cst_66 : f32 to vector<6x16xf32>
    %346 = arith.addf %345, %344 : vector<6x16xf32>
    %347 = arith.divf %345, %346 : vector<6x16xf32>
    %348 = vector.extract_strided_slice %338 {offsets = [0, 16], sizes = [6, 16], strides = [1, 1]} : vector<6x64xf32> to vector<6x16xf32>
    %349 = arith.negf %348 : vector<6x16xf32>
    %350 = math.exp %349 : vector<6x16xf32>
    %cst_67 = arith.constant 1.000000e+00 : f32
    %351 = vector.broadcast %cst_67 : f32 to vector<6x16xf32>
    %352 = arith.addf %351, %350 : vector<6x16xf32>
    %353 = arith.divf %351, %352 : vector<6x16xf32>
    %354 = vector.extract_strided_slice %338 {offsets = [0, 32], sizes = [6, 16], strides = [1, 1]} : vector<6x64xf32> to vector<6x16xf32>
    %355 = math.tanh %354 : vector<6x16xf32>
    %356 = vector.extract_strided_slice %338 {offsets = [0, 48], sizes = [6, 16], strides = [1, 1]} : vector<6x64xf32> to vector<6x16xf32>
    %357 = arith.negf %356 : vector<6x16xf32>
    %358 = math.exp %357 : vector<6x16xf32>
    %cst_68 = arith.constant 1.000000e+00 : f32
    %359 = vector.broadcast %cst_68 : f32 to vector<6x16xf32>
    %360 = arith.addf %359, %358 : vector<6x16xf32>
    %361 = arith.divf %359, %360 : vector<6x16xf32>
    %362 = arith.mulf %353, %306 : vector<6x16xf32>
    %363 = arith.mulf %347, %355 : vector<6x16xf32>
    %364 = arith.addf %362, %363 : vector<6x16xf32>
    %365 = math.tanh %364 : vector<6x16xf32>
    %366 = arith.mulf %361, %365 : vector<6x16xf32>
    %367 = vector.extract_strided_slice %341 {offsets = [0, 0], sizes = [6, 16], strides = [1, 1]} : vector<6x64xf32> to vector<6x16xf32>
    %368 = arith.negf %367 : vector<6x16xf32>
    %369 = math.exp %368 : vector<6x16xf32>
    %cst_69 = arith.constant 1.000000e+00 : f32
    %370 = vector.broadcast %cst_69 : f32 to vector<6x16xf32>
    %371 = arith.addf %370, %369 : vector<6x16xf32>
    %372 = arith.divf %370, %371 : vector<6x16xf32>
    %373 = vector.extract_strided_slice %341 {offsets = [0, 16], sizes = [6, 16], strides = [1, 1]} : vector<6x64xf32> to vector<6x16xf32>
    %374 = arith.negf %373 : vector<6x16xf32>
    %375 = math.exp %374 : vector<6x16xf32>
    %cst_70 = arith.constant 1.000000e+00 : f32
    %376 = vector.broadcast %cst_70 : f32 to vector<6x16xf32>
    %377 = arith.addf %376, %375 : vector<6x16xf32>
    %378 = arith.divf %376, %377 : vector<6x16xf32>
    %379 = vector.extract_strided_slice %341 {offsets = [0, 32], sizes = [6, 16], strides = [1, 1]} : vector<6x64xf32> to vector<6x16xf32>
    %380 = math.tanh %379 : vector<6x16xf32>
    %381 = vector.extract_strided_slice %341 {offsets = [0, 48], sizes = [6, 16], strides = [1, 1]} : vector<6x64xf32> to vector<6x16xf32>
    %382 = arith.negf %381 : vector<6x16xf32>
    %383 = math.exp %382 : vector<6x16xf32>
    %cst_71 = arith.constant 1.000000e+00 : f32
    %384 = vector.broadcast %cst_71 : f32 to vector<6x16xf32>
    %385 = arith.addf %384, %383 : vector<6x16xf32>
    %386 = arith.divf %384, %385 : vector<6x16xf32>
    %387 = arith.mulf %378, %331 : vector<6x16xf32>
    %388 = arith.mulf %372, %380 : vector<6x16xf32>
    %389 = arith.addf %387, %388 : vector<6x16xf32>
    %390 = math.tanh %389 : vector<6x16xf32>
    %391 = arith.mulf %386, %390 : vector<6x16xf32>
    %392 = tpu.concatenate %366, %391 in 1 : vector<6x16xf32>, vector<6x16xf32> -> vector<6x32xf32>
    %cst_72 = arith.constant dense<0.000000e+00> : vector<6x128xf32>
    %393 = tpu.matmul %392, %1, %cst_72 {dimension_numbers = #tpu.dot_dimension_numbers<[1], [0], [0], [1], [0, 0, 1, 1], [], []>} : vector<6x32xf32>, vector<32x128xf32>, vector<6x128xf32> -> vector<6x128xf32>
    %394 = vector.extract_strided_slice %37 {offsets = [0, 0], sizes = [6, 64], strides = [1, 1]} : vector<6x128xf32> to vector<6x64xf32>
    %395 = vector.extract_strided_slice %393 {offsets = [0, 0], sizes = [6, 64], strides = [1, 1]} : vector<6x128xf32> to vector<6x64xf32>
    %396 = arith.addf %394, %395 : vector<6x64xf32>
    %397 = vector.extract_strided_slice %12 {offsets = [0, 64], sizes = [6, 64], strides = [1, 1]} : vector<6x128xf32> to vector<6x64xf32>
    %398 = vector.extract_strided_slice %393 {offsets = [0, 64], sizes = [6, 64], strides = [1, 1]} : vector<6x128xf32> to vector<6x64xf32>
    %399 = arith.addf %397, %398 : vector<6x64xf32>
    %400 = vector.extract_strided_slice %396 {offsets = [0, 0], sizes = [6, 16], strides = [1, 1]} : vector<6x64xf32> to vector<6x16xf32>
    %401 = arith.negf %400 : vector<6x16xf32>
    %402 = math.exp %401 : vector<6x16xf32>
    %cst_73 = arith.constant 1.000000e+00 : f32
    %403 = vector.broadcast %cst_73 : f32 to vector<6x16xf32>
    %404 = arith.addf %403, %402 : vector<6x16xf32>
    %405 = arith.divf %403, %404 : vector<6x16xf32>
    %406 = vector.extract_strided_slice %396 {offsets = [0, 16], sizes = [6, 16], strides = [1, 1]} : vector<6x64xf32> to vector<6x16xf32>
    %407 = arith.negf %406 : vector<6x16xf32>
    %408 = math.exp %407 : vector<6x16xf32>
    %cst_74 = arith.constant 1.000000e+00 : f32
    %409 = vector.broadcast %cst_74 : f32 to vector<6x16xf32>
    %410 = arith.addf %409, %408 : vector<6x16xf32>
    %411 = arith.divf %409, %410 : vector<6x16xf32>
    %412 = vector.extract_strided_slice %396 {offsets = [0, 32], sizes = [6, 16], strides = [1, 1]} : vector<6x64xf32> to vector<6x16xf32>
    %413 = math.tanh %412 : vector<6x16xf32>
    %414 = vector.extract_strided_slice %396 {offsets = [0, 48], sizes = [6, 16], strides = [1, 1]} : vector<6x64xf32> to vector<6x16xf32>
    %415 = arith.negf %414 : vector<6x16xf32>
    %416 = math.exp %415 : vector<6x16xf32>
    %cst_75 = arith.constant 1.000000e+00 : f32
    %417 = vector.broadcast %cst_75 : f32 to vector<6x16xf32>
    %418 = arith.addf %417, %416 : vector<6x16xf32>
    %419 = arith.divf %417, %418 : vector<6x16xf32>
    %420 = arith.mulf %411, %364 : vector<6x16xf32>
    %421 = arith.mulf %405, %413 : vector<6x16xf32>
    %422 = arith.addf %420, %421 : vector<6x16xf32>
    %423 = math.tanh %422 : vector<6x16xf32>
    %424 = arith.mulf %419, %423 : vector<6x16xf32>
    %425 = vector.extract_strided_slice %399 {offsets = [0, 0], sizes = [6, 16], strides = [1, 1]} : vector<6x64xf32> to vector<6x16xf32>
    %426 = arith.negf %425 : vector<6x16xf32>
    %427 = math.exp %426 : vector<6x16xf32>
    %cst_76 = arith.constant 1.000000e+00 : f32
    %428 = vector.broadcast %cst_76 : f32 to vector<6x16xf32>
    %429 = arith.addf %428, %427 : vector<6x16xf32>
    %430 = arith.divf %428, %429 : vector<6x16xf32>
    %431 = vector.extract_strided_slice %399 {offsets = [0, 16], sizes = [6, 16], strides = [1, 1]} : vector<6x64xf32> to vector<6x16xf32>
    %432 = arith.negf %431 : vector<6x16xf32>
    %433 = math.exp %432 : vector<6x16xf32>
    %cst_77 = arith.constant 1.000000e+00 : f32
    %434 = vector.broadcast %cst_77 : f32 to vector<6x16xf32>
    %435 = arith.addf %434, %433 : vector<6x16xf32>
    %436 = arith.divf %434, %435 : vector<6x16xf32>
    %437 = vector.extract_strided_slice %399 {offsets = [0, 32], sizes = [6, 16], strides = [1, 1]} : vector<6x64xf32> to vector<6x16xf32>
    %438 = math.tanh %437 : vector<6x16xf32>
    %439 = vector.extract_strided_slice %399 {offsets = [0, 48], sizes = [6, 16], strides = [1, 1]} : vector<6x64xf32> to vector<6x16xf32>
    %440 = arith.negf %439 : vector<6x16xf32>
    %441 = math.exp %440 : vector<6x16xf32>
    %cst_78 = arith.constant 1.000000e+00 : f32
    %442 = vector.broadcast %cst_78 : f32 to vector<6x16xf32>
    %443 = arith.addf %442, %441 : vector<6x16xf32>
    %444 = arith.divf %442, %443 : vector<6x16xf32>
    %445 = arith.mulf %436, %389 : vector<6x16xf32>
    %446 = arith.mulf %430, %438 : vector<6x16xf32>
    %447 = arith.addf %445, %446 : vector<6x16xf32>
    %448 = math.tanh %447 : vector<6x16xf32>
    %449 = arith.mulf %444, %448 : vector<6x16xf32>
    %450 = tpu.concatenate %424, %449 in 1 : vector<6x16xf32>, vector<6x16xf32> -> vector<6x32xf32>
    %cst_79 = arith.constant dense<0.000000e+00> : vector<6x128xf32>
    %451 = tpu.matmul %450, %1, %cst_79 {dimension_numbers = #tpu.dot_dimension_numbers<[1], [0], [0], [1], [0, 0, 1, 1], [], []>} : vector<6x32xf32>, vector<32x128xf32>, vector<6x128xf32> -> vector<6x128xf32>
    %452 = vector.extract_strided_slice %42 {offsets = [0, 0], sizes = [6, 64], strides = [1, 1]} : vector<6x128xf32> to vector<6x64xf32>
    %453 = vector.extract_strided_slice %451 {offsets = [0, 0], sizes = [6, 64], strides = [1, 1]} : vector<6x128xf32> to vector<6x64xf32>
    %454 = arith.addf %452, %453 : vector<6x64xf32>
    %455 = vector.extract_strided_slice %7 {offsets = [0, 64], sizes = [6, 64], strides = [1, 1]} : vector<6x128xf32> to vector<6x64xf32>
    %456 = vector.extract_strided_slice %451 {offsets = [0, 64], sizes = [6, 64], strides = [1, 1]} : vector<6x128xf32> to vector<6x64xf32>
    %457 = arith.addf %455, %456 : vector<6x64xf32>
    %458 = vector.extract_strided_slice %454 {offsets = [0, 0], sizes = [6, 16], strides = [1, 1]} : vector<6x64xf32> to vector<6x16xf32>
    %459 = arith.negf %458 : vector<6x16xf32>
    %460 = math.exp %459 : vector<6x16xf32>
    %cst_80 = arith.constant 1.000000e+00 : f32
    %461 = vector.broadcast %cst_80 : f32 to vector<6x16xf32>
    %462 = arith.addf %461, %460 : vector<6x16xf32>
    %463 = arith.divf %461, %462 : vector<6x16xf32>
    %464 = vector.extract_strided_slice %454 {offsets = [0, 16], sizes = [6, 16], strides = [1, 1]} : vector<6x64xf32> to vector<6x16xf32>
    %465 = arith.negf %464 : vector<6x16xf32>
    %466 = math.exp %465 : vector<6x16xf32>
    %cst_81 = arith.constant 1.000000e+00 : f32
    %467 = vector.broadcast %cst_81 : f32 to vector<6x16xf32>
    %468 = arith.addf %467, %466 : vector<6x16xf32>
    %469 = arith.divf %467, %468 : vector<6x16xf32>
    %470 = vector.extract_strided_slice %454 {offsets = [0, 32], sizes = [6, 16], strides = [1, 1]} : vector<6x64xf32> to vector<6x16xf32>
    %471 = math.tanh %470 : vector<6x16xf32>
    %472 = vector.extract_strided_slice %454 {offsets = [0, 48], sizes = [6, 16], strides = [1, 1]} : vector<6x64xf32> to vector<6x16xf32>
    %473 = arith.negf %472 : vector<6x16xf32>
    %474 = math.exp %473 : vector<6x16xf32>
    %cst_82 = arith.constant 1.000000e+00 : f32
    %475 = vector.broadcast %cst_82 : f32 to vector<6x16xf32>
    %476 = arith.addf %475, %474 : vector<6x16xf32>
    %477 = arith.divf %475, %476 : vector<6x16xf32>
    %478 = arith.mulf %469, %422 : vector<6x16xf32>
    %479 = arith.mulf %463, %471 : vector<6x16xf32>
    %480 = arith.addf %478, %479 : vector<6x16xf32>
    %481 = math.tanh %480 : vector<6x16xf32>
    %482 = arith.mulf %477, %481 : vector<6x16xf32>
    %483 = vector.extract_strided_slice %457 {offsets = [0, 0], sizes = [6, 16], strides = [1, 1]} : vector<6x64xf32> to vector<6x16xf32>
    %484 = arith.negf %483 : vector<6x16xf32>
    %485 = math.exp %484 : vector<6x16xf32>
    %cst_83 = arith.constant 1.000000e+00 : f32
    %486 = vector.broadcast %cst_83 : f32 to vector<6x16xf32>
    %487 = arith.addf %486, %485 : vector<6x16xf32>
    %488 = arith.divf %486, %487 : vector<6x16xf32>
    %489 = vector.extract_strided_slice %457 {offsets = [0, 16], sizes = [6, 16], strides = [1, 1]} : vector<6x64xf32> to vector<6x16xf32>
    %490 = arith.negf %489 : vector<6x16xf32>
    %491 = math.exp %490 : vector<6x16xf32>
    %cst_84 = arith.constant 1.000000e+00 : f32
    %492 = vector.broadcast %cst_84 : f32 to vector<6x16xf32>
    %493 = arith.addf %492, %491 : vector<6x16xf32>
    %494 = arith.divf %492, %493 : vector<6x16xf32>
    %495 = vector.extract_strided_slice %457 {offsets = [0, 32], sizes = [6, 16], strides = [1, 1]} : vector<6x64xf32> to vector<6x16xf32>
    %496 = math.tanh %495 : vector<6x16xf32>
    %497 = vector.extract_strided_slice %457 {offsets = [0, 48], sizes = [6, 16], strides = [1, 1]} : vector<6x64xf32> to vector<6x16xf32>
    %498 = arith.negf %497 : vector<6x16xf32>
    %499 = math.exp %498 : vector<6x16xf32>
    %cst_85 = arith.constant 1.000000e+00 : f32
    %500 = vector.broadcast %cst_85 : f32 to vector<6x16xf32>
    %501 = arith.addf %500, %499 : vector<6x16xf32>
    %502 = arith.divf %500, %501 : vector<6x16xf32>
    %503 = arith.mulf %494, %447 : vector<6x16xf32>
    %504 = arith.mulf %488, %496 : vector<6x16xf32>
    %505 = arith.addf %503, %504 : vector<6x16xf32>
    %506 = math.tanh %505 : vector<6x16xf32>
    %507 = arith.mulf %502, %506 : vector<6x16xf32>
    %508 = tpu.concatenate %76, %507 in 1 : vector<6x16xf32>, vector<6x16xf32> -> vector<6x32xf32>
    %509 = tpu.concatenate %134, %449 in 1 : vector<6x16xf32>, vector<6x16xf32> -> vector<6x32xf32>
    %510 = tpu.concatenate %192, %391 in 1 : vector<6x16xf32>, vector<6x16xf32> -> vector<6x32xf32>
    %511 = tpu.concatenate %250, %333 in 1 : vector<6x16xf32>, vector<6x16xf32> -> vector<6x32xf32>
    %512 = tpu.concatenate %308, %275 in 1 : vector<6x16xf32>, vector<6x16xf32> -> vector<6x32xf32>
    %513 = tpu.concatenate %366, %217 in 1 : vector<6x16xf32>, vector<6x16xf32> -> vector<6x32xf32>
    %514 = tpu.concatenate %424, %159 in 1 : vector<6x16xf32>, vector<6x16xf32> -> vector<6x32xf32>
    %515 = tpu.concatenate %482, %101 in 1 : vector<6x16xf32>, vector<6x16xf32> -> vector<6x32xf32>
    %c0_86 = arith.constant 0 : index
    %c0_87 = arith.constant 0 : index
    %516 = vector.load %arg4[%c0_86, %c0_87] : memref<1x32xf32, #tpu.memory_space<vmem>>, vector<1x32xf32>
    %517 = vector.broadcast %516 : vector<1x32xf32> to vector<6x32xf32>
    %518 = arith.mulf %508, %517 : vector<6x32xf32>
    %cst_88 = arith.constant dense<0.000000e+00> : vector<6xf32>
    %519 = vector.multi_reduction <add>, %518, %cst_88 [1] : vector<6x32xf32> to vector<6xf32>
    %520 = vector.shape_cast %519 : vector<6xf32> to vector<6x1xf32>
    %521 = vector.broadcast %516 : vector<1x32xf32> to vector<6x32xf32>
    %522 = arith.mulf %509, %521 : vector<6x32xf32>
    %cst_89 = arith.constant dense<0.000000e+00> : vector<6xf32>
    %523 = vector.multi_reduction <add>, %522, %cst_89 [1] : vector<6x32xf32> to vector<6xf32>
    %524 = vector.shape_cast %523 : vector<6xf32> to vector<6x1xf32>
    %525 = vector.broadcast %516 : vector<1x32xf32> to vector<6x32xf32>
    %526 = arith.mulf %510, %525 : vector<6x32xf32>
    %cst_90 = arith.constant dense<0.000000e+00> : vector<6xf32>
    %527 = vector.multi_reduction <add>, %526, %cst_90 [1] : vector<6x32xf32> to vector<6xf32>
    %528 = vector.shape_cast %527 : vector<6xf32> to vector<6x1xf32>
    %529 = vector.broadcast %516 : vector<1x32xf32> to vector<6x32xf32>
    %530 = arith.mulf %511, %529 : vector<6x32xf32>
    %cst_91 = arith.constant dense<0.000000e+00> : vector<6xf32>
    %531 = vector.multi_reduction <add>, %530, %cst_91 [1] : vector<6x32xf32> to vector<6xf32>
    %532 = vector.shape_cast %531 : vector<6xf32> to vector<6x1xf32>
    %533 = vector.broadcast %516 : vector<1x32xf32> to vector<6x32xf32>
    %534 = arith.mulf %512, %533 : vector<6x32xf32>
    %cst_92 = arith.constant dense<0.000000e+00> : vector<6xf32>
    %535 = vector.multi_reduction <add>, %534, %cst_92 [1] : vector<6x32xf32> to vector<6xf32>
    %536 = vector.shape_cast %535 : vector<6xf32> to vector<6x1xf32>
    %537 = vector.broadcast %516 : vector<1x32xf32> to vector<6x32xf32>
    %538 = arith.mulf %513, %537 : vector<6x32xf32>
    %cst_93 = arith.constant dense<0.000000e+00> : vector<6xf32>
    %539 = vector.multi_reduction <add>, %538, %cst_93 [1] : vector<6x32xf32> to vector<6xf32>
    %540 = vector.shape_cast %539 : vector<6xf32> to vector<6x1xf32>
    %541 = vector.broadcast %516 : vector<1x32xf32> to vector<6x32xf32>
    %542 = arith.mulf %514, %541 : vector<6x32xf32>
    %cst_94 = arith.constant dense<0.000000e+00> : vector<6xf32>
    %543 = vector.multi_reduction <add>, %542, %cst_94 [1] : vector<6x32xf32> to vector<6xf32>
    %544 = vector.shape_cast %543 : vector<6xf32> to vector<6x1xf32>
    %545 = vector.broadcast %516 : vector<1x32xf32> to vector<6x32xf32>
    %546 = arith.mulf %515, %545 : vector<6x32xf32>
    %cst_95 = arith.constant dense<0.000000e+00> : vector<6xf32>
    %547 = vector.multi_reduction <add>, %546, %cst_95 [1] : vector<6x32xf32> to vector<6xf32>
    %548 = vector.shape_cast %547 : vector<6xf32> to vector<6x1xf32>
    %549 = tpu.concatenate %520, %524, %528, %532, %536, %540, %544, %548 in 1 : vector<6x1xf32>, vector<6x1xf32>, vector<6x1xf32>, vector<6x1xf32>, vector<6x1xf32>, vector<6x1xf32>, vector<6x1xf32>, vector<6x1xf32> -> vector<6x8xf32>
    %c0_96 = arith.constant 0 : index
    %c0_97 = arith.constant 0 : index
    %550 = vector.load %arg5[%c0_96, %c0_97] : memref<1x1xf32, #tpu.memory_space<vmem>>, vector<1x1xf32>
    %551 = vector.broadcast %550 : vector<1x1xf32> to vector<6x8xf32>
    %552 = arith.addf %549, %551 : vector<6x8xf32>
    %c0_98 = arith.constant 0 : index
    %c0_99 = arith.constant 0 : index
    %553 = vector.load %arg6[%c0_98, %c0_99] : memref<6x8xf32, #tpu.memory_space<vmem>>, vector<6x8xf32>
    %554 = arith.addf %552, %553 : vector<6x8xf32>
    %cst_100 = arith.constant dense<0xFF800000> : vector<6xf32>
    %555 = vector.multi_reduction <maximumf>, %554, %cst_100 [1] : vector<6x8xf32> to vector<6xf32>
    %556 = vector.shape_cast %555 : vector<6xf32> to vector<6x1xf32>
    %557 = vector.broadcast %556 : vector<6x1xf32> to vector<6x8xf32>
    %558 = arith.subf %554, %557 : vector<6x8xf32>
    %559 = math.exp %558 : vector<6x8xf32>
    %cst_101 = arith.constant dense<0.000000e+00> : vector<6xf32>
    %560 = vector.multi_reduction <add>, %559, %cst_101 [1] : vector<6x8xf32> to vector<6xf32>
    %561 = vector.shape_cast %560 : vector<6xf32> to vector<6x1xf32>
    %562 = tpu.reciprocal %561 {approx = true} : vector<6x1xf32> -> vector<6x1xf32>
    %563 = vector.broadcast %562 : vector<6x1xf32> to vector<6x8xf32>
    %564 = arith.mulf %559, %563 : vector<6x8xf32>
    %cst_102 = arith.constant 0.000000e+00 : f32
    %565 = vector.broadcast %cst_102 : f32 to vector<6x32xf32>
    %566 = vector.extract_strided_slice %564 {offsets = [0, 0], sizes = [6, 1], strides = [1, 1]} : vector<6x8xf32> to vector<6x1xf32>
    %567 = vector.broadcast %566 : vector<6x1xf32> to vector<6x32xf32>
    %568 = arith.mulf %508, %567 : vector<6x32xf32>
    %569 = arith.addf %565, %568 : vector<6x32xf32>
    %570 = vector.extract_strided_slice %564 {offsets = [0, 1], sizes = [6, 1], strides = [1, 1]} : vector<6x8xf32> to vector<6x1xf32>
    %571 = vector.broadcast %570 : vector<6x1xf32> to vector<6x32xf32>
    %572 = arith.mulf %509, %571 : vector<6x32xf32>
    %573 = arith.addf %569, %572 : vector<6x32xf32>
    %574 = vector.extract_strided_slice %564 {offsets = [0, 2], sizes = [6, 1], strides = [1, 1]} : vector<6x8xf32> to vector<6x1xf32>
    %575 = vector.broadcast %574 : vector<6x1xf32> to vector<6x32xf32>
    %576 = arith.mulf %510, %575 : vector<6x32xf32>
    %577 = arith.addf %573, %576 : vector<6x32xf32>
    %578 = vector.extract_strided_slice %564 {offsets = [0, 3], sizes = [6, 1], strides = [1, 1]} : vector<6x8xf32> to vector<6x1xf32>
    %579 = vector.broadcast %578 : vector<6x1xf32> to vector<6x32xf32>
    %580 = arith.mulf %511, %579 : vector<6x32xf32>
    %581 = arith.addf %577, %580 : vector<6x32xf32>
    %582 = vector.extract_strided_slice %564 {offsets = [0, 4], sizes = [6, 1], strides = [1, 1]} : vector<6x8xf32> to vector<6x1xf32>
    %583 = vector.broadcast %582 : vector<6x1xf32> to vector<6x32xf32>
    %584 = arith.mulf %512, %583 : vector<6x32xf32>
    %585 = arith.addf %581, %584 : vector<6x32xf32>
    %586 = vector.extract_strided_slice %564 {offsets = [0, 5], sizes = [6, 1], strides = [1, 1]} : vector<6x8xf32> to vector<6x1xf32>
    %587 = vector.broadcast %586 : vector<6x1xf32> to vector<6x32xf32>
    %588 = arith.mulf %513, %587 : vector<6x32xf32>
    %589 = arith.addf %585, %588 : vector<6x32xf32>
    %590 = vector.extract_strided_slice %564 {offsets = [0, 6], sizes = [6, 1], strides = [1, 1]} : vector<6x8xf32> to vector<6x1xf32>
    %591 = vector.broadcast %590 : vector<6x1xf32> to vector<6x32xf32>
    %592 = arith.mulf %514, %591 : vector<6x32xf32>
    %593 = arith.addf %589, %592 : vector<6x32xf32>
    %594 = vector.extract_strided_slice %564 {offsets = [0, 7], sizes = [6, 1], strides = [1, 1]} : vector<6x8xf32> to vector<6x1xf32>
    %595 = vector.broadcast %594 : vector<6x1xf32> to vector<6x32xf32>
    %596 = arith.mulf %515, %595 : vector<6x32xf32>
    %597 = arith.addf %593, %596 : vector<6x32xf32>
    %c0_103 = arith.constant 0 : index
    %c0_104 = arith.constant 0 : index
    %598 = vector.load %arg7[%c0_103, %c0_104] : memref<6x32xf32, #tpu.memory_space<vmem>>, vector<6x32xf32>
    tpu.vector_store %arg7[%c0_103, %c0_104], %597 {strides = array<i32>} : memref<6x32xf32, #tpu.memory_space<vmem>>, vector<6x32xf32>,
    return
  }
}

module attributes {stable_mosaic.version = 11 : i64} {
  func.func @_modality_kernel(%arg0: memref<6x5x12xf32, #tpu.memory_space<vmem>>, %arg1: memref<12x32xf32, #tpu.memory_space<vmem>>, %arg2: memref<1x32xf32, #tpu.memory_space<vmem>>, %arg3: memref<1x32xf32, #tpu.memory_space<vmem>>, %arg4: memref<1x1xf32, #tpu.memory_space<vmem>>, %arg5: memref<6x32xf32, #tpu.memory_space<vmem>>) attributes {dimension_semantics = [], scalar_prefetch = 0 : i64, scratch_operands = 0 : i64, tpu.core_type = #tpu.core_type<tc>} {
    %c0 = arith.constant 0 : index
    %c0_0 = arith.constant 0 : index
    %0 = vector.load %arg1[%c0, %c0_0] : memref<12x32xf32, #tpu.memory_space<vmem>>, vector<12x32xf32>
    %c0_1 = arith.constant 0 : index
    %c0_2 = arith.constant 0 : index
    %1 = vector.load %arg2[%c0_1, %c0_2] : memref<1x32xf32, #tpu.memory_space<vmem>>, vector<1x32xf32>
    %c0_3 = arith.constant 0 : index
    %c0_4 = arith.constant 0 : index
    %2 = vector.load %arg3[%c0_3, %c0_4] : memref<1x32xf32, #tpu.memory_space<vmem>>, vector<1x32xf32>
    %c0_5 = arith.constant 0 : index
    %c0_6 = arith.constant 0 : index
    %3 = vector.load %arg4[%c0_5, %c0_6] : memref<1x1xf32, #tpu.memory_space<vmem>>, vector<1x1xf32>
    %c0_7 = arith.constant 0 : index
    %c0_8 = arith.constant 0 : index
    %c0_9 = arith.constant 0 : index
    %4 = vector.load %arg0[%c0_7, %c0_8, %c0_9] : memref<6x5x12xf32, #tpu.memory_space<vmem>>, vector<1x5x12xf32>
    %5 = vector.shape_cast %4 : vector<1x5x12xf32> to vector<5x12xf32>
    %cst = arith.constant dense<0.000000e+00> : vector<5x32xf32>
    %6 = tpu.matmul %5, %0, %cst {dimension_numbers = #tpu.dot_dimension_numbers<[1], [0], [0], [1], [0, 0, 1, 1], [], []>} : vector<5x12xf32>, vector<12x32xf32>, vector<5x32xf32> -> vector<5x32xf32>
    %7 = vector.broadcast %1 : vector<1x32xf32> to vector<5x32xf32>
    %8 = arith.addf %6, %7 : vector<5x32xf32>
    %9 = math.tanh %8 : vector<5x32xf32>
    %10 = vector.broadcast %2 : vector<1x32xf32> to vector<5x32xf32>
    %11 = arith.mulf %9, %10 : vector<5x32xf32>
    %cst_10 = arith.constant dense<0.000000e+00> : vector<5xf32>
    %12 = vector.multi_reduction <add>, %11, %cst_10 [1] : vector<5x32xf32> to vector<5xf32>
    %13 = vector.shape_cast %12 : vector<5xf32> to vector<5x1xf32>
    %14 = vector.broadcast %3 : vector<1x1xf32> to vector<5x1xf32>
    %15 = arith.addf %13, %14 : vector<5x1xf32>
    %16 = math.tanh %15 : vector<5x1xf32>
    %cst_11 = arith.constant dense<0xFF800000> : vector<1xf32>
    %17 = vector.multi_reduction <maximumf>, %16, %cst_11 [0] : vector<5x1xf32> to vector<1xf32>
    %18 = vector.shape_cast %17 : vector<1xf32> to vector<1x1xf32>
    %19 = vector.broadcast %18 : vector<1x1xf32> to vector<5x1xf32>
    %20 = arith.subf %16, %19 : vector<5x1xf32>
    %21 = math.exp %20 : vector<5x1xf32>
    %cst_12 = arith.constant dense<0.000000e+00> : vector<1xf32>
    %22 = vector.multi_reduction <add>, %21, %cst_12 [0] : vector<5x1xf32> to vector<1xf32>
    %23 = vector.shape_cast %22 : vector<1xf32> to vector<1x1xf32>
    %24 = tpu.reciprocal %23 {approx = true} : vector<1x1xf32> -> vector<1x1xf32>
    %25 = vector.broadcast %24 : vector<1x1xf32> to vector<5x1xf32>
    %26 = arith.mulf %21, %25 : vector<5x1xf32>
    %27 = vector.broadcast %26 : vector<5x1xf32> to vector<5x32xf32>
    %28 = arith.mulf %9, %27 : vector<5x32xf32>
    %cst_13 = arith.constant dense<0.000000e+00> : vector<32xf32>
    %29 = vector.multi_reduction <add>, %28, %cst_13 [0] : vector<5x32xf32> to vector<32xf32>
    %30 = vector.shape_cast %29 : vector<32xf32> to vector<1x32xf32>
    %c1 = arith.constant 1 : index
    %c0_14 = arith.constant 0 : index
    %c0_15 = arith.constant 0 : index
    %31 = vector.load %arg0[%c1, %c0_14, %c0_15] : memref<6x5x12xf32, #tpu.memory_space<vmem>>, vector<1x5x12xf32>
    %32 = vector.shape_cast %31 : vector<1x5x12xf32> to vector<5x12xf32>
    %cst_16 = arith.constant dense<0.000000e+00> : vector<5x32xf32>
    %33 = tpu.matmul %32, %0, %cst_16 {dimension_numbers = #tpu.dot_dimension_numbers<[1], [0], [0], [1], [0, 0, 1, 1], [], []>} : vector<5x12xf32>, vector<12x32xf32>, vector<5x32xf32> -> vector<5x32xf32>
    %34 = vector.broadcast %1 : vector<1x32xf32> to vector<5x32xf32>
    %35 = arith.addf %33, %34 : vector<5x32xf32>
    %36 = math.tanh %35 : vector<5x32xf32>
    %37 = vector.broadcast %2 : vector<1x32xf32> to vector<5x32xf32>
    %38 = arith.mulf %36, %37 : vector<5x32xf32>
    %cst_17 = arith.constant dense<0.000000e+00> : vector<5xf32>
    %39 = vector.multi_reduction <add>, %38, %cst_17 [1] : vector<5x32xf32> to vector<5xf32>
    %40 = vector.shape_cast %39 : vector<5xf32> to vector<5x1xf32>
    %41 = vector.broadcast %3 : vector<1x1xf32> to vector<5x1xf32>
    %42 = arith.addf %40, %41 : vector<5x1xf32>
    %43 = math.tanh %42 : vector<5x1xf32>
    %cst_18 = arith.constant dense<0xFF800000> : vector<1xf32>
    %44 = vector.multi_reduction <maximumf>, %43, %cst_18 [0] : vector<5x1xf32> to vector<1xf32>
    %45 = vector.shape_cast %44 : vector<1xf32> to vector<1x1xf32>
    %46 = vector.broadcast %45 : vector<1x1xf32> to vector<5x1xf32>
    %47 = arith.subf %43, %46 : vector<5x1xf32>
    %48 = math.exp %47 : vector<5x1xf32>
    %cst_19 = arith.constant dense<0.000000e+00> : vector<1xf32>
    %49 = vector.multi_reduction <add>, %48, %cst_19 [0] : vector<5x1xf32> to vector<1xf32>
    %50 = vector.shape_cast %49 : vector<1xf32> to vector<1x1xf32>
    %51 = tpu.reciprocal %50 {approx = true} : vector<1x1xf32> -> vector<1x1xf32>
    %52 = vector.broadcast %51 : vector<1x1xf32> to vector<5x1xf32>
    %53 = arith.mulf %48, %52 : vector<5x1xf32>
    %54 = vector.broadcast %53 : vector<5x1xf32> to vector<5x32xf32>
    %55 = arith.mulf %36, %54 : vector<5x32xf32>
    %cst_20 = arith.constant dense<0.000000e+00> : vector<32xf32>
    %56 = vector.multi_reduction <add>, %55, %cst_20 [0] : vector<5x32xf32> to vector<32xf32>
    %57 = vector.shape_cast %56 : vector<32xf32> to vector<1x32xf32>
    %c2 = arith.constant 2 : index
    %c0_21 = arith.constant 0 : index
    %c0_22 = arith.constant 0 : index
    %58 = vector.load %arg0[%c2, %c0_21, %c0_22] : memref<6x5x12xf32, #tpu.memory_space<vmem>>, vector<1x5x12xf32>
    %59 = vector.shape_cast %58 : vector<1x5x12xf32> to vector<5x12xf32>
    %cst_23 = arith.constant dense<0.000000e+00> : vector<5x32xf32>
    %60 = tpu.matmul %59, %0, %cst_23 {dimension_numbers = #tpu.dot_dimension_numbers<[1], [0], [0], [1], [0, 0, 1, 1], [], []>} : vector<5x12xf32>, vector<12x32xf32>, vector<5x32xf32> -> vector<5x32xf32>
    %61 = vector.broadcast %1 : vector<1x32xf32> to vector<5x32xf32>
    %62 = arith.addf %60, %61 : vector<5x32xf32>
    %63 = math.tanh %62 : vector<5x32xf32>
    %64 = vector.broadcast %2 : vector<1x32xf32> to vector<5x32xf32>
    %65 = arith.mulf %63, %64 : vector<5x32xf32>
    %cst_24 = arith.constant dense<0.000000e+00> : vector<5xf32>
    %66 = vector.multi_reduction <add>, %65, %cst_24 [1] : vector<5x32xf32> to vector<5xf32>
    %67 = vector.shape_cast %66 : vector<5xf32> to vector<5x1xf32>
    %68 = vector.broadcast %3 : vector<1x1xf32> to vector<5x1xf32>
    %69 = arith.addf %67, %68 : vector<5x1xf32>
    %70 = math.tanh %69 : vector<5x1xf32>
    %cst_25 = arith.constant dense<0xFF800000> : vector<1xf32>
    %71 = vector.multi_reduction <maximumf>, %70, %cst_25 [0] : vector<5x1xf32> to vector<1xf32>
    %72 = vector.shape_cast %71 : vector<1xf32> to vector<1x1xf32>
    %73 = vector.broadcast %72 : vector<1x1xf32> to vector<5x1xf32>
    %74 = arith.subf %70, %73 : vector<5x1xf32>
    %75 = math.exp %74 : vector<5x1xf32>
    %cst_26 = arith.constant dense<0.000000e+00> : vector<1xf32>
    %76 = vector.multi_reduction <add>, %75, %cst_26 [0] : vector<5x1xf32> to vector<1xf32>
    %77 = vector.shape_cast %76 : vector<1xf32> to vector<1x1xf32>
    %78 = tpu.reciprocal %77 {approx = true} : vector<1x1xf32> -> vector<1x1xf32>
    %79 = vector.broadcast %78 : vector<1x1xf32> to vector<5x1xf32>
    %80 = arith.mulf %75, %79 : vector<5x1xf32>
    %81 = vector.broadcast %80 : vector<5x1xf32> to vector<5x32xf32>
    %82 = arith.mulf %63, %81 : vector<5x32xf32>
    %cst_27 = arith.constant dense<0.000000e+00> : vector<32xf32>
    %83 = vector.multi_reduction <add>, %82, %cst_27 [0] : vector<5x32xf32> to vector<32xf32>
    %84 = vector.shape_cast %83 : vector<32xf32> to vector<1x32xf32>
    %c3 = arith.constant 3 : index
    %c0_28 = arith.constant 0 : index
    %c0_29 = arith.constant 0 : index
    %85 = vector.load %arg0[%c3, %c0_28, %c0_29] : memref<6x5x12xf32, #tpu.memory_space<vmem>>, vector<1x5x12xf32>
    %86 = vector.shape_cast %85 : vector<1x5x12xf32> to vector<5x12xf32>
    %cst_30 = arith.constant dense<0.000000e+00> : vector<5x32xf32>
    %87 = tpu.matmul %86, %0, %cst_30 {dimension_numbers = #tpu.dot_dimension_numbers<[1], [0], [0], [1], [0, 0, 1, 1], [], []>} : vector<5x12xf32>, vector<12x32xf32>, vector<5x32xf32> -> vector<5x32xf32>
    %88 = vector.broadcast %1 : vector<1x32xf32> to vector<5x32xf32>
    %89 = arith.addf %87, %88 : vector<5x32xf32>
    %90 = math.tanh %89 : vector<5x32xf32>
    %91 = vector.broadcast %2 : vector<1x32xf32> to vector<5x32xf32>
    %92 = arith.mulf %90, %91 : vector<5x32xf32>
    %cst_31 = arith.constant dense<0.000000e+00> : vector<5xf32>
    %93 = vector.multi_reduction <add>, %92, %cst_31 [1] : vector<5x32xf32> to vector<5xf32>
    %94 = vector.shape_cast %93 : vector<5xf32> to vector<5x1xf32>
    %95 = vector.broadcast %3 : vector<1x1xf32> to vector<5x1xf32>
    %96 = arith.addf %94, %95 : vector<5x1xf32>
    %97 = math.tanh %96 : vector<5x1xf32>
    %cst_32 = arith.constant dense<0xFF800000> : vector<1xf32>
    %98 = vector.multi_reduction <maximumf>, %97, %cst_32 [0] : vector<5x1xf32> to vector<1xf32>
    %99 = vector.shape_cast %98 : vector<1xf32> to vector<1x1xf32>
    %100 = vector.broadcast %99 : vector<1x1xf32> to vector<5x1xf32>
    %101 = arith.subf %97, %100 : vector<5x1xf32>
    %102 = math.exp %101 : vector<5x1xf32>
    %cst_33 = arith.constant dense<0.000000e+00> : vector<1xf32>
    %103 = vector.multi_reduction <add>, %102, %cst_33 [0] : vector<5x1xf32> to vector<1xf32>
    %104 = vector.shape_cast %103 : vector<1xf32> to vector<1x1xf32>
    %105 = tpu.reciprocal %104 {approx = true} : vector<1x1xf32> -> vector<1x1xf32>
    %106 = vector.broadcast %105 : vector<1x1xf32> to vector<5x1xf32>
    %107 = arith.mulf %102, %106 : vector<5x1xf32>
    %108 = vector.broadcast %107 : vector<5x1xf32> to vector<5x32xf32>
    %109 = arith.mulf %90, %108 : vector<5x32xf32>
    %cst_34 = arith.constant dense<0.000000e+00> : vector<32xf32>
    %110 = vector.multi_reduction <add>, %109, %cst_34 [0] : vector<5x32xf32> to vector<32xf32>
    %111 = vector.shape_cast %110 : vector<32xf32> to vector<1x32xf32>
    %c4 = arith.constant 4 : index
    %c0_35 = arith.constant 0 : index
    %c0_36 = arith.constant 0 : index
    %112 = vector.load %arg0[%c4, %c0_35, %c0_36] : memref<6x5x12xf32, #tpu.memory_space<vmem>>, vector<1x5x12xf32>
    %113 = vector.shape_cast %112 : vector<1x5x12xf32> to vector<5x12xf32>
    %cst_37 = arith.constant dense<0.000000e+00> : vector<5x32xf32>
    %114 = tpu.matmul %113, %0, %cst_37 {dimension_numbers = #tpu.dot_dimension_numbers<[1], [0], [0], [1], [0, 0, 1, 1], [], []>} : vector<5x12xf32>, vector<12x32xf32>, vector<5x32xf32> -> vector<5x32xf32>
    %115 = vector.broadcast %1 : vector<1x32xf32> to vector<5x32xf32>
    %116 = arith.addf %114, %115 : vector<5x32xf32>
    %117 = math.tanh %116 : vector<5x32xf32>
    %118 = vector.broadcast %2 : vector<1x32xf32> to vector<5x32xf32>
    %119 = arith.mulf %117, %118 : vector<5x32xf32>
    %cst_38 = arith.constant dense<0.000000e+00> : vector<5xf32>
    %120 = vector.multi_reduction <add>, %119, %cst_38 [1] : vector<5x32xf32> to vector<5xf32>
    %121 = vector.shape_cast %120 : vector<5xf32> to vector<5x1xf32>
    %122 = vector.broadcast %3 : vector<1x1xf32> to vector<5x1xf32>
    %123 = arith.addf %121, %122 : vector<5x1xf32>
    %124 = math.tanh %123 : vector<5x1xf32>
    %cst_39 = arith.constant dense<0xFF800000> : vector<1xf32>
    %125 = vector.multi_reduction <maximumf>, %124, %cst_39 [0] : vector<5x1xf32> to vector<1xf32>
    %126 = vector.shape_cast %125 : vector<1xf32> to vector<1x1xf32>
    %127 = vector.broadcast %126 : vector<1x1xf32> to vector<5x1xf32>
    %128 = arith.subf %124, %127 : vector<5x1xf32>
    %129 = math.exp %128 : vector<5x1xf32>
    %cst_40 = arith.constant dense<0.000000e+00> : vector<1xf32>
    %130 = vector.multi_reduction <add>, %129, %cst_40 [0] : vector<5x1xf32> to vector<1xf32>
    %131 = vector.shape_cast %130 : vector<1xf32> to vector<1x1xf32>
    %132 = tpu.reciprocal %131 {approx = true} : vector<1x1xf32> -> vector<1x1xf32>
    %133 = vector.broadcast %132 : vector<1x1xf32> to vector<5x1xf32>
    %134 = arith.mulf %129, %133 : vector<5x1xf32>
    %135 = vector.broadcast %134 : vector<5x1xf32> to vector<5x32xf32>
    %136 = arith.mulf %117, %135 : vector<5x32xf32>
    %cst_41 = arith.constant dense<0.000000e+00> : vector<32xf32>
    %137 = vector.multi_reduction <add>, %136, %cst_41 [0] : vector<5x32xf32> to vector<32xf32>
    %138 = vector.shape_cast %137 : vector<32xf32> to vector<1x32xf32>
    %c5 = arith.constant 5 : index
    %c0_42 = arith.constant 0 : index
    %c0_43 = arith.constant 0 : index
    %139 = vector.load %arg0[%c5, %c0_42, %c0_43] : memref<6x5x12xf32, #tpu.memory_space<vmem>>, vector<1x5x12xf32>
    %140 = vector.shape_cast %139 : vector<1x5x12xf32> to vector<5x12xf32>
    %cst_44 = arith.constant dense<0.000000e+00> : vector<5x32xf32>
    %141 = tpu.matmul %140, %0, %cst_44 {dimension_numbers = #tpu.dot_dimension_numbers<[1], [0], [0], [1], [0, 0, 1, 1], [], []>} : vector<5x12xf32>, vector<12x32xf32>, vector<5x32xf32> -> vector<5x32xf32>
    %142 = vector.broadcast %1 : vector<1x32xf32> to vector<5x32xf32>
    %143 = arith.addf %141, %142 : vector<5x32xf32>
    %144 = math.tanh %143 : vector<5x32xf32>
    %145 = vector.broadcast %2 : vector<1x32xf32> to vector<5x32xf32>
    %146 = arith.mulf %144, %145 : vector<5x32xf32>
    %cst_45 = arith.constant dense<0.000000e+00> : vector<5xf32>
    %147 = vector.multi_reduction <add>, %146, %cst_45 [1] : vector<5x32xf32> to vector<5xf32>
    %148 = vector.shape_cast %147 : vector<5xf32> to vector<5x1xf32>
    %149 = vector.broadcast %3 : vector<1x1xf32> to vector<5x1xf32>
    %150 = arith.addf %148, %149 : vector<5x1xf32>
    %151 = math.tanh %150 : vector<5x1xf32>
    %cst_46 = arith.constant dense<0xFF800000> : vector<1xf32>
    %152 = vector.multi_reduction <maximumf>, %151, %cst_46 [0] : vector<5x1xf32> to vector<1xf32>
    %153 = vector.shape_cast %152 : vector<1xf32> to vector<1x1xf32>
    %154 = vector.broadcast %153 : vector<1x1xf32> to vector<5x1xf32>
    %155 = arith.subf %151, %154 : vector<5x1xf32>
    %156 = math.exp %155 : vector<5x1xf32>
    %cst_47 = arith.constant dense<0.000000e+00> : vector<1xf32>
    %157 = vector.multi_reduction <add>, %156, %cst_47 [0] : vector<5x1xf32> to vector<1xf32>
    %158 = vector.shape_cast %157 : vector<1xf32> to vector<1x1xf32>
    %159 = tpu.reciprocal %158 {approx = true} : vector<1x1xf32> -> vector<1x1xf32>
    %160 = vector.broadcast %159 : vector<1x1xf32> to vector<5x1xf32>
    %161 = arith.mulf %156, %160 : vector<5x1xf32>
    %162 = vector.broadcast %161 : vector<5x1xf32> to vector<5x32xf32>
    %163 = arith.mulf %144, %162 : vector<5x32xf32>
    %cst_48 = arith.constant dense<0.000000e+00> : vector<32xf32>
    %164 = vector.multi_reduction <add>, %163, %cst_48 [0] : vector<5x32xf32> to vector<32xf32>
    %165 = vector.shape_cast %164 : vector<32xf32> to vector<1x32xf32>
    %166 = tpu.concatenate %30, %57, %84, %111, %138, %165 in 0 : vector<1x32xf32>, vector<1x32xf32>, vector<1x32xf32>, vector<1x32xf32>, vector<1x32xf32>, vector<1x32xf32> -> vector<6x32xf32>
    %c0_49 = arith.constant 0 : index
    %c0_50 = arith.constant 0 : index
    %167 = vector.load %arg5[%c0_49, %c0_50] : memref<6x32xf32, #tpu.memory_space<vmem>>, vector<6x32xf32>
    tpu.vector_store %arg5[%c0_49, %c0_50], %166 {strides = array<i32>} : memref<6x32xf32, #tpu.memory_space<vmem>>, vector<6x32xf32>,
    return
  }
}

module attributes {stable_mosaic.version = 11 : i64} {
  func.func @_modality_kernel(%arg0: memref<6x7x20xf32, #tpu.memory_space<vmem>>, %arg1: memref<20x32xf32, #tpu.memory_space<vmem>>, %arg2: memref<1x32xf32, #tpu.memory_space<vmem>>, %arg3: memref<1x32xf32, #tpu.memory_space<vmem>>, %arg4: memref<1x1xf32, #tpu.memory_space<vmem>>, %arg5: memref<6x32xf32, #tpu.memory_space<vmem>>) attributes {dimension_semantics = [], scalar_prefetch = 0 : i64, scratch_operands = 0 : i64, tpu.core_type = #tpu.core_type<tc>} {
    %c0 = arith.constant 0 : index
    %c0_0 = arith.constant 0 : index
    %0 = vector.load %arg1[%c0, %c0_0] : memref<20x32xf32, #tpu.memory_space<vmem>>, vector<20x32xf32>
    %c0_1 = arith.constant 0 : index
    %c0_2 = arith.constant 0 : index
    %1 = vector.load %arg2[%c0_1, %c0_2] : memref<1x32xf32, #tpu.memory_space<vmem>>, vector<1x32xf32>
    %c0_3 = arith.constant 0 : index
    %c0_4 = arith.constant 0 : index
    %2 = vector.load %arg3[%c0_3, %c0_4] : memref<1x32xf32, #tpu.memory_space<vmem>>, vector<1x32xf32>
    %c0_5 = arith.constant 0 : index
    %c0_6 = arith.constant 0 : index
    %3 = vector.load %arg4[%c0_5, %c0_6] : memref<1x1xf32, #tpu.memory_space<vmem>>, vector<1x1xf32>
    %c0_7 = arith.constant 0 : index
    %c0_8 = arith.constant 0 : index
    %c0_9 = arith.constant 0 : index
    %4 = vector.load %arg0[%c0_7, %c0_8, %c0_9] : memref<6x7x20xf32, #tpu.memory_space<vmem>>, vector<1x7x20xf32>
    %5 = vector.shape_cast %4 : vector<1x7x20xf32> to vector<7x20xf32>
    %cst = arith.constant dense<0.000000e+00> : vector<7x32xf32>
    %6 = tpu.matmul %5, %0, %cst {dimension_numbers = #tpu.dot_dimension_numbers<[1], [0], [0], [1], [0, 0, 1, 1], [], []>} : vector<7x20xf32>, vector<20x32xf32>, vector<7x32xf32> -> vector<7x32xf32>
    %7 = vector.broadcast %1 : vector<1x32xf32> to vector<7x32xf32>
    %8 = arith.addf %6, %7 : vector<7x32xf32>
    %9 = math.tanh %8 : vector<7x32xf32>
    %10 = vector.broadcast %2 : vector<1x32xf32> to vector<7x32xf32>
    %11 = arith.mulf %9, %10 : vector<7x32xf32>
    %cst_10 = arith.constant dense<0.000000e+00> : vector<7xf32>
    %12 = vector.multi_reduction <add>, %11, %cst_10 [1] : vector<7x32xf32> to vector<7xf32>
    %13 = vector.shape_cast %12 : vector<7xf32> to vector<7x1xf32>
    %14 = vector.broadcast %3 : vector<1x1xf32> to vector<7x1xf32>
    %15 = arith.addf %13, %14 : vector<7x1xf32>
    %16 = math.tanh %15 : vector<7x1xf32>
    %cst_11 = arith.constant dense<0xFF800000> : vector<1xf32>
    %17 = vector.multi_reduction <maximumf>, %16, %cst_11 [0] : vector<7x1xf32> to vector<1xf32>
    %18 = vector.shape_cast %17 : vector<1xf32> to vector<1x1xf32>
    %19 = vector.broadcast %18 : vector<1x1xf32> to vector<7x1xf32>
    %20 = arith.subf %16, %19 : vector<7x1xf32>
    %21 = math.exp %20 : vector<7x1xf32>
    %cst_12 = arith.constant dense<0.000000e+00> : vector<1xf32>
    %22 = vector.multi_reduction <add>, %21, %cst_12 [0] : vector<7x1xf32> to vector<1xf32>
    %23 = vector.shape_cast %22 : vector<1xf32> to vector<1x1xf32>
    %24 = tpu.reciprocal %23 {approx = true} : vector<1x1xf32> -> vector<1x1xf32>
    %25 = vector.broadcast %24 : vector<1x1xf32> to vector<7x1xf32>
    %26 = arith.mulf %21, %25 : vector<7x1xf32>
    %27 = vector.broadcast %26 : vector<7x1xf32> to vector<7x32xf32>
    %28 = arith.mulf %9, %27 : vector<7x32xf32>
    %cst_13 = arith.constant dense<0.000000e+00> : vector<32xf32>
    %29 = vector.multi_reduction <add>, %28, %cst_13 [0] : vector<7x32xf32> to vector<32xf32>
    %30 = vector.shape_cast %29 : vector<32xf32> to vector<1x32xf32>
    %c1 = arith.constant 1 : index
    %c0_14 = arith.constant 0 : index
    %c0_15 = arith.constant 0 : index
    %31 = vector.load %arg0[%c1, %c0_14, %c0_15] : memref<6x7x20xf32, #tpu.memory_space<vmem>>, vector<1x7x20xf32>
    %32 = vector.shape_cast %31 : vector<1x7x20xf32> to vector<7x20xf32>
    %cst_16 = arith.constant dense<0.000000e+00> : vector<7x32xf32>
    %33 = tpu.matmul %32, %0, %cst_16 {dimension_numbers = #tpu.dot_dimension_numbers<[1], [0], [0], [1], [0, 0, 1, 1], [], []>} : vector<7x20xf32>, vector<20x32xf32>, vector<7x32xf32> -> vector<7x32xf32>
    %34 = vector.broadcast %1 : vector<1x32xf32> to vector<7x32xf32>
    %35 = arith.addf %33, %34 : vector<7x32xf32>
    %36 = math.tanh %35 : vector<7x32xf32>
    %37 = vector.broadcast %2 : vector<1x32xf32> to vector<7x32xf32>
    %38 = arith.mulf %36, %37 : vector<7x32xf32>
    %cst_17 = arith.constant dense<0.000000e+00> : vector<7xf32>
    %39 = vector.multi_reduction <add>, %38, %cst_17 [1] : vector<7x32xf32> to vector<7xf32>
    %40 = vector.shape_cast %39 : vector<7xf32> to vector<7x1xf32>
    %41 = vector.broadcast %3 : vector<1x1xf32> to vector<7x1xf32>
    %42 = arith.addf %40, %41 : vector<7x1xf32>
    %43 = math.tanh %42 : vector<7x1xf32>
    %cst_18 = arith.constant dense<0xFF800000> : vector<1xf32>
    %44 = vector.multi_reduction <maximumf>, %43, %cst_18 [0] : vector<7x1xf32> to vector<1xf32>
    %45 = vector.shape_cast %44 : vector<1xf32> to vector<1x1xf32>
    %46 = vector.broadcast %45 : vector<1x1xf32> to vector<7x1xf32>
    %47 = arith.subf %43, %46 : vector<7x1xf32>
    %48 = math.exp %47 : vector<7x1xf32>
    %cst_19 = arith.constant dense<0.000000e+00> : vector<1xf32>
    %49 = vector.multi_reduction <add>, %48, %cst_19 [0] : vector<7x1xf32> to vector<1xf32>
    %50 = vector.shape_cast %49 : vector<1xf32> to vector<1x1xf32>
    %51 = tpu.reciprocal %50 {approx = true} : vector<1x1xf32> -> vector<1x1xf32>
    %52 = vector.broadcast %51 : vector<1x1xf32> to vector<7x1xf32>
    %53 = arith.mulf %48, %52 : vector<7x1xf32>
    %54 = vector.broadcast %53 : vector<7x1xf32> to vector<7x32xf32>
    %55 = arith.mulf %36, %54 : vector<7x32xf32>
    %cst_20 = arith.constant dense<0.000000e+00> : vector<32xf32>
    %56 = vector.multi_reduction <add>, %55, %cst_20 [0] : vector<7x32xf32> to vector<32xf32>
    %57 = vector.shape_cast %56 : vector<32xf32> to vector<1x32xf32>
    %c2 = arith.constant 2 : index
    %c0_21 = arith.constant 0 : index
    %c0_22 = arith.constant 0 : index
    %58 = vector.load %arg0[%c2, %c0_21, %c0_22] : memref<6x7x20xf32, #tpu.memory_space<vmem>>, vector<1x7x20xf32>
    %59 = vector.shape_cast %58 : vector<1x7x20xf32> to vector<7x20xf32>
    %cst_23 = arith.constant dense<0.000000e+00> : vector<7x32xf32>
    %60 = tpu.matmul %59, %0, %cst_23 {dimension_numbers = #tpu.dot_dimension_numbers<[1], [0], [0], [1], [0, 0, 1, 1], [], []>} : vector<7x20xf32>, vector<20x32xf32>, vector<7x32xf32> -> vector<7x32xf32>
    %61 = vector.broadcast %1 : vector<1x32xf32> to vector<7x32xf32>
    %62 = arith.addf %60, %61 : vector<7x32xf32>
    %63 = math.tanh %62 : vector<7x32xf32>
    %64 = vector.broadcast %2 : vector<1x32xf32> to vector<7x32xf32>
    %65 = arith.mulf %63, %64 : vector<7x32xf32>
    %cst_24 = arith.constant dense<0.000000e+00> : vector<7xf32>
    %66 = vector.multi_reduction <add>, %65, %cst_24 [1] : vector<7x32xf32> to vector<7xf32>
    %67 = vector.shape_cast %66 : vector<7xf32> to vector<7x1xf32>
    %68 = vector.broadcast %3 : vector<1x1xf32> to vector<7x1xf32>
    %69 = arith.addf %67, %68 : vector<7x1xf32>
    %70 = math.tanh %69 : vector<7x1xf32>
    %cst_25 = arith.constant dense<0xFF800000> : vector<1xf32>
    %71 = vector.multi_reduction <maximumf>, %70, %cst_25 [0] : vector<7x1xf32> to vector<1xf32>
    %72 = vector.shape_cast %71 : vector<1xf32> to vector<1x1xf32>
    %73 = vector.broadcast %72 : vector<1x1xf32> to vector<7x1xf32>
    %74 = arith.subf %70, %73 : vector<7x1xf32>
    %75 = math.exp %74 : vector<7x1xf32>
    %cst_26 = arith.constant dense<0.000000e+00> : vector<1xf32>
    %76 = vector.multi_reduction <add>, %75, %cst_26 [0] : vector<7x1xf32> to vector<1xf32>
    %77 = vector.shape_cast %76 : vector<1xf32> to vector<1x1xf32>
    %78 = tpu.reciprocal %77 {approx = true} : vector<1x1xf32> -> vector<1x1xf32>
    %79 = vector.broadcast %78 : vector<1x1xf32> to vector<7x1xf32>
    %80 = arith.mulf %75, %79 : vector<7x1xf32>
    %81 = vector.broadcast %80 : vector<7x1xf32> to vector<7x32xf32>
    %82 = arith.mulf %63, %81 : vector<7x32xf32>
    %cst_27 = arith.constant dense<0.000000e+00> : vector<32xf32>
    %83 = vector.multi_reduction <add>, %82, %cst_27 [0] : vector<7x32xf32> to vector<32xf32>
    %84 = vector.shape_cast %83 : vector<32xf32> to vector<1x32xf32>
    %c3 = arith.constant 3 : index
    %c0_28 = arith.constant 0 : index
    %c0_29 = arith.constant 0 : index
    %85 = vector.load %arg0[%c3, %c0_28, %c0_29] : memref<6x7x20xf32, #tpu.memory_space<vmem>>, vector<1x7x20xf32>
    %86 = vector.shape_cast %85 : vector<1x7x20xf32> to vector<7x20xf32>
    %cst_30 = arith.constant dense<0.000000e+00> : vector<7x32xf32>
    %87 = tpu.matmul %86, %0, %cst_30 {dimension_numbers = #tpu.dot_dimension_numbers<[1], [0], [0], [1], [0, 0, 1, 1], [], []>} : vector<7x20xf32>, vector<20x32xf32>, vector<7x32xf32> -> vector<7x32xf32>
    %88 = vector.broadcast %1 : vector<1x32xf32> to vector<7x32xf32>
    %89 = arith.addf %87, %88 : vector<7x32xf32>
    %90 = math.tanh %89 : vector<7x32xf32>
    %91 = vector.broadcast %2 : vector<1x32xf32> to vector<7x32xf32>
    %92 = arith.mulf %90, %91 : vector<7x32xf32>
    %cst_31 = arith.constant dense<0.000000e+00> : vector<7xf32>
    %93 = vector.multi_reduction <add>, %92, %cst_31 [1] : vector<7x32xf32> to vector<7xf32>
    %94 = vector.shape_cast %93 : vector<7xf32> to vector<7x1xf32>
    %95 = vector.broadcast %3 : vector<1x1xf32> to vector<7x1xf32>
    %96 = arith.addf %94, %95 : vector<7x1xf32>
    %97 = math.tanh %96 : vector<7x1xf32>
    %cst_32 = arith.constant dense<0xFF800000> : vector<1xf32>
    %98 = vector.multi_reduction <maximumf>, %97, %cst_32 [0] : vector<7x1xf32> to vector<1xf32>
    %99 = vector.shape_cast %98 : vector<1xf32> to vector<1x1xf32>
    %100 = vector.broadcast %99 : vector<1x1xf32> to vector<7x1xf32>
    %101 = arith.subf %97, %100 : vector<7x1xf32>
    %102 = math.exp %101 : vector<7x1xf32>
    %cst_33 = arith.constant dense<0.000000e+00> : vector<1xf32>
    %103 = vector.multi_reduction <add>, %102, %cst_33 [0] : vector<7x1xf32> to vector<1xf32>
    %104 = vector.shape_cast %103 : vector<1xf32> to vector<1x1xf32>
    %105 = tpu.reciprocal %104 {approx = true} : vector<1x1xf32> -> vector<1x1xf32>
    %106 = vector.broadcast %105 : vector<1x1xf32> to vector<7x1xf32>
    %107 = arith.mulf %102, %106 : vector<7x1xf32>
    %108 = vector.broadcast %107 : vector<7x1xf32> to vector<7x32xf32>
    %109 = arith.mulf %90, %108 : vector<7x32xf32>
    %cst_34 = arith.constant dense<0.000000e+00> : vector<32xf32>
    %110 = vector.multi_reduction <add>, %109, %cst_34 [0] : vector<7x32xf32> to vector<32xf32>
    %111 = vector.shape_cast %110 : vector<32xf32> to vector<1x32xf32>
    %c4 = arith.constant 4 : index
    %c0_35 = arith.constant 0 : index
    %c0_36 = arith.constant 0 : index
    %112 = vector.load %arg0[%c4, %c0_35, %c0_36] : memref<6x7x20xf32, #tpu.memory_space<vmem>>, vector<1x7x20xf32>
    %113 = vector.shape_cast %112 : vector<1x7x20xf32> to vector<7x20xf32>
    %cst_37 = arith.constant dense<0.000000e+00> : vector<7x32xf32>
    %114 = tpu.matmul %113, %0, %cst_37 {dimension_numbers = #tpu.dot_dimension_numbers<[1], [0], [0], [1], [0, 0, 1, 1], [], []>} : vector<7x20xf32>, vector<20x32xf32>, vector<7x32xf32> -> vector<7x32xf32>
    %115 = vector.broadcast %1 : vector<1x32xf32> to vector<7x32xf32>
    %116 = arith.addf %114, %115 : vector<7x32xf32>
    %117 = math.tanh %116 : vector<7x32xf32>
    %118 = vector.broadcast %2 : vector<1x32xf32> to vector<7x32xf32>
    %119 = arith.mulf %117, %118 : vector<7x32xf32>
    %cst_38 = arith.constant dense<0.000000e+00> : vector<7xf32>
    %120 = vector.multi_reduction <add>, %119, %cst_38 [1] : vector<7x32xf32> to vector<7xf32>
    %121 = vector.shape_cast %120 : vector<7xf32> to vector<7x1xf32>
    %122 = vector.broadcast %3 : vector<1x1xf32> to vector<7x1xf32>
    %123 = arith.addf %121, %122 : vector<7x1xf32>
    %124 = math.tanh %123 : vector<7x1xf32>
    %cst_39 = arith.constant dense<0xFF800000> : vector<1xf32>
    %125 = vector.multi_reduction <maximumf>, %124, %cst_39 [0] : vector<7x1xf32> to vector<1xf32>
    %126 = vector.shape_cast %125 : vector<1xf32> to vector<1x1xf32>
    %127 = vector.broadcast %126 : vector<1x1xf32> to vector<7x1xf32>
    %128 = arith.subf %124, %127 : vector<7x1xf32>
    %129 = math.exp %128 : vector<7x1xf32>
    %cst_40 = arith.constant dense<0.000000e+00> : vector<1xf32>
    %130 = vector.multi_reduction <add>, %129, %cst_40 [0] : vector<7x1xf32> to vector<1xf32>
    %131 = vector.shape_cast %130 : vector<1xf32> to vector<1x1xf32>
    %132 = tpu.reciprocal %131 {approx = true} : vector<1x1xf32> -> vector<1x1xf32>
    %133 = vector.broadcast %132 : vector<1x1xf32> to vector<7x1xf32>
    %134 = arith.mulf %129, %133 : vector<7x1xf32>
    %135 = vector.broadcast %134 : vector<7x1xf32> to vector<7x32xf32>
    %136 = arith.mulf %117, %135 : vector<7x32xf32>
    %cst_41 = arith.constant dense<0.000000e+00> : vector<32xf32>
    %137 = vector.multi_reduction <add>, %136, %cst_41 [0] : vector<7x32xf32> to vector<32xf32>
    %138 = vector.shape_cast %137 : vector<32xf32> to vector<1x32xf32>
    %c5 = arith.constant 5 : index
    %c0_42 = arith.constant 0 : index
    %c0_43 = arith.constant 0 : index
    %139 = vector.load %arg0[%c5, %c0_42, %c0_43] : memref<6x7x20xf32, #tpu.memory_space<vmem>>, vector<1x7x20xf32>
    %140 = vector.shape_cast %139 : vector<1x7x20xf32> to vector<7x20xf32>
    %cst_44 = arith.constant dense<0.000000e+00> : vector<7x32xf32>
    %141 = tpu.matmul %140, %0, %cst_44 {dimension_numbers = #tpu.dot_dimension_numbers<[1], [0], [0], [1], [0, 0, 1, 1], [], []>} : vector<7x20xf32>, vector<20x32xf32>, vector<7x32xf32> -> vector<7x32xf32>
    %142 = vector.broadcast %1 : vector<1x32xf32> to vector<7x32xf32>
    %143 = arith.addf %141, %142 : vector<7x32xf32>
    %144 = math.tanh %143 : vector<7x32xf32>
    %145 = vector.broadcast %2 : vector<1x32xf32> to vector<7x32xf32>
    %146 = arith.mulf %144, %145 : vector<7x32xf32>
    %cst_45 = arith.constant dense<0.000000e+00> : vector<7xf32>
    %147 = vector.multi_reduction <add>, %146, %cst_45 [1] : vector<7x32xf32> to vector<7xf32>
    %148 = vector.shape_cast %147 : vector<7xf32> to vector<7x1xf32>
    %149 = vector.broadcast %3 : vector<1x1xf32> to vector<7x1xf32>
    %150 = arith.addf %148, %149 : vector<7x1xf32>
    %151 = math.tanh %150 : vector<7x1xf32>
    %cst_46 = arith.constant dense<0xFF800000> : vector<1xf32>
    %152 = vector.multi_reduction <maximumf>, %151, %cst_46 [0] : vector<7x1xf32> to vector<1xf32>
    %153 = vector.shape_cast %152 : vector<1xf32> to vector<1x1xf32>
    %154 = vector.broadcast %153 : vector<1x1xf32> to vector<7x1xf32>
    %155 = arith.subf %151, %154 : vector<7x1xf32>
    %156 = math.exp %155 : vector<7x1xf32>
    %cst_47 = arith.constant dense<0.000000e+00> : vector<1xf32>
    %157 = vector.multi_reduction <add>, %156, %cst_47 [0] : vector<7x1xf32> to vector<1xf32>
    %158 = vector.shape_cast %157 : vector<1xf32> to vector<1x1xf32>
    %159 = tpu.reciprocal %158 {approx = true} : vector<1x1xf32> -> vector<1x1xf32>
    %160 = vector.broadcast %159 : vector<1x1xf32> to vector<7x1xf32>
    %161 = arith.mulf %156, %160 : vector<7x1xf32>
    %162 = vector.broadcast %161 : vector<7x1xf32> to vector<7x32xf32>
    %163 = arith.mulf %144, %162 : vector<7x32xf32>
    %cst_48 = arith.constant dense<0.000000e+00> : vector<32xf32>
    %164 = vector.multi_reduction <add>, %163, %cst_48 [0] : vector<7x32xf32> to vector<32xf32>
    %165 = vector.shape_cast %164 : vector<32xf32> to vector<1x32xf32>
    %166 = tpu.concatenate %30, %57, %84, %111, %138, %165 in 0 : vector<1x32xf32>, vector<1x32xf32>, vector<1x32xf32>, vector<1x32xf32>, vector<1x32xf32>, vector<1x32xf32> -> vector<6x32xf32>
    %c0_49 = arith.constant 0 : index
    %c0_50 = arith.constant 0 : index
    %167 = vector.load %arg5[%c0_49, %c0_50] : memref<6x32xf32, #tpu.memory_space<vmem>>, vector<6x32xf32>
    tpu.vector_store %arg5[%c0_49, %c0_50], %166 {strides = array<i32>} : memref<6x32xf32, #tpu.memory_space<vmem>>, vector<6x32xf32>,
    return
  }
}

module attributes {stable_mosaic.version = 11 : i64} {
  func.func @_script_head_kernel(%arg0: memref<6x1x96xf32, #tpu.memory_space<vmem>>, %arg1: memref<96x128xf32, #tpu.memory_space<vmem>>, %arg2: memref<32x128xf32, #tpu.memory_space<vmem>>, %arg3: memref<1x128xf32, #tpu.memory_space<vmem>>, %arg4: memref<6x6xf32, #tpu.memory_space<vmem>>, %arg5: memref<6x6xf32, #tpu.memory_space<vmem>>, %arg6: memref<290x5xf32, #tpu.memory_space<vmem>>, %arg7: memref<1x5xf32, #tpu.memory_space<vmem>>, %arg8: memref<6x5xf32, #tpu.memory_space<vmem>>) attributes {dimension_semantics = [], scalar_prefetch = 0 : i64, scratch_operands = 0 : i64, tpu.core_type = #tpu.core_type<tc>} {
    %c0 = arith.constant 0 : index
    %c0_0 = arith.constant 0 : index
    %0 = vector.load %arg1[%c0, %c0_0] : memref<96x128xf32, #tpu.memory_space<vmem>>, vector<96x128xf32>
    %c0_1 = arith.constant 0 : index
    %c0_2 = arith.constant 0 : index
    %1 = vector.load %arg2[%c0_1, %c0_2] : memref<32x128xf32, #tpu.memory_space<vmem>>, vector<32x128xf32>
    %c0_3 = arith.constant 0 : index
    %c0_4 = arith.constant 0 : index
    %2 = vector.load %arg3[%c0_3, %c0_4] : memref<1x128xf32, #tpu.memory_space<vmem>>, vector<1x128xf32>
    %c0_5 = arith.constant 0 : index
    %c0_6 = arith.constant 0 : index
    %c0_7 = arith.constant 0 : index
    %3 = vector.load %arg0[%c0_5, %c0_6, %c0_7] : memref<6x1x96xf32, #tpu.memory_space<vmem>>, vector<1x1x96xf32>
    %4 = vector.shape_cast %3 : vector<1x1x96xf32> to vector<1x96xf32>
    %cst = arith.constant dense<0.000000e+00> : vector<1x128xf32>
    %5 = tpu.matmul %4, %0, %cst {dimension_numbers = #tpu.dot_dimension_numbers<[1], [0], [0], [1], [0, 0, 1, 1], [], []>} : vector<1x96xf32>, vector<96x128xf32>, vector<1x128xf32> -> vector<1x128xf32>
    %6 = arith.addf %5, %2 : vector<1x128xf32>
    %c1 = arith.constant 1 : index
    %c0_8 = arith.constant 0 : index
    %c0_9 = arith.constant 0 : index
    %7 = vector.load %arg0[%c1, %c0_8, %c0_9] : memref<6x1x96xf32, #tpu.memory_space<vmem>>, vector<1x1x96xf32>
    %8 = vector.shape_cast %7 : vector<1x1x96xf32> to vector<1x96xf32>
    %cst_10 = arith.constant dense<0.000000e+00> : vector<1x128xf32>
    %9 = tpu.matmul %8, %0, %cst_10 {dimension_numbers = #tpu.dot_dimension_numbers<[1], [0], [0], [1], [0, 0, 1, 1], [], []>} : vector<1x96xf32>, vector<96x128xf32>, vector<1x128xf32> -> vector<1x128xf32>
    %10 = arith.addf %9, %2 : vector<1x128xf32>
    %c2 = arith.constant 2 : index
    %c0_11 = arith.constant 0 : index
    %c0_12 = arith.constant 0 : index
    %11 = vector.load %arg0[%c2, %c0_11, %c0_12] : memref<6x1x96xf32, #tpu.memory_space<vmem>>, vector<1x1x96xf32>
    %12 = vector.shape_cast %11 : vector<1x1x96xf32> to vector<1x96xf32>
    %cst_13 = arith.constant dense<0.000000e+00> : vector<1x128xf32>
    %13 = tpu.matmul %12, %0, %cst_13 {dimension_numbers = #tpu.dot_dimension_numbers<[1], [0], [0], [1], [0, 0, 1, 1], [], []>} : vector<1x96xf32>, vector<96x128xf32>, vector<1x128xf32> -> vector<1x128xf32>
    %14 = arith.addf %13, %2 : vector<1x128xf32>
    %c3 = arith.constant 3 : index
    %c0_14 = arith.constant 0 : index
    %c0_15 = arith.constant 0 : index
    %15 = vector.load %arg0[%c3, %c0_14, %c0_15] : memref<6x1x96xf32, #tpu.memory_space<vmem>>, vector<1x1x96xf32>
    %16 = vector.shape_cast %15 : vector<1x1x96xf32> to vector<1x96xf32>
    %cst_16 = arith.constant dense<0.000000e+00> : vector<1x128xf32>
    %17 = tpu.matmul %16, %0, %cst_16 {dimension_numbers = #tpu.dot_dimension_numbers<[1], [0], [0], [1], [0, 0, 1, 1], [], []>} : vector<1x96xf32>, vector<96x128xf32>, vector<1x128xf32> -> vector<1x128xf32>
    %18 = arith.addf %17, %2 : vector<1x128xf32>
    %c4 = arith.constant 4 : index
    %c0_17 = arith.constant 0 : index
    %c0_18 = arith.constant 0 : index
    %19 = vector.load %arg0[%c4, %c0_17, %c0_18] : memref<6x1x96xf32, #tpu.memory_space<vmem>>, vector<1x1x96xf32>
    %20 = vector.shape_cast %19 : vector<1x1x96xf32> to vector<1x96xf32>
    %cst_19 = arith.constant dense<0.000000e+00> : vector<1x128xf32>
    %21 = tpu.matmul %20, %0, %cst_19 {dimension_numbers = #tpu.dot_dimension_numbers<[1], [0], [0], [1], [0, 0, 1, 1], [], []>} : vector<1x96xf32>, vector<96x128xf32>, vector<1x128xf32> -> vector<1x128xf32>
    %22 = arith.addf %21, %2 : vector<1x128xf32>
    %c5 = arith.constant 5 : index
    %c0_20 = arith.constant 0 : index
    %c0_21 = arith.constant 0 : index
    %23 = vector.load %arg0[%c5, %c0_20, %c0_21] : memref<6x1x96xf32, #tpu.memory_space<vmem>>, vector<1x1x96xf32>
    %24 = vector.shape_cast %23 : vector<1x1x96xf32> to vector<1x96xf32>
    %cst_22 = arith.constant dense<0.000000e+00> : vector<1x128xf32>
    %25 = tpu.matmul %24, %0, %cst_22 {dimension_numbers = #tpu.dot_dimension_numbers<[1], [0], [0], [1], [0, 0, 1, 1], [], []>} : vector<1x96xf32>, vector<96x128xf32>, vector<1x128xf32> -> vector<1x128xf32>
    %26 = arith.addf %25, %2 : vector<1x128xf32>
    %cst_23 = arith.constant 0.000000e+00 : f32
    %27 = vector.broadcast %cst_23 : f32 to vector<1x16xf32>
    %28 = tpu.concatenate %27, %27 in 1 : vector<1x16xf32>, vector<1x16xf32> -> vector<1x32xf32>
    %cst_24 = arith.constant dense<0.000000e+00> : vector<1x128xf32>
    %29 = tpu.matmul %28, %1, %cst_24 {dimension_numbers = #tpu.dot_dimension_numbers<[1], [0], [0], [1], [0, 0, 1, 1], [], []>} : vector<1x32xf32>, vector<32x128xf32>, vector<1x128xf32> -> vector<1x128xf32>
    %30 = vector.extract_strided_slice %6 {offsets = [0, 0], sizes = [1, 64], strides = [1, 1]} : vector<1x128xf32> to vector<1x64xf32>
    %31 = vector.extract_strided_slice %29 {offsets = [0, 0], sizes = [1, 64], strides = [1, 1]} : vector<1x128xf32> to vector<1x64xf32>
    %32 = arith.addf %30, %31 : vector<1x64xf32>
    %33 = vector.extract_strided_slice %26 {offsets = [0, 64], sizes = [1, 64], strides = [1, 1]} : vector<1x128xf32> to vector<1x64xf32>
    %34 = vector.extract_strided_slice %29 {offsets = [0, 64], sizes = [1, 64], strides = [1, 1]} : vector<1x128xf32> to vector<1x64xf32>
    %35 = arith.addf %33, %34 : vector<1x64xf32>
    %36 = vector.extract_strided_slice %32 {offsets = [0, 0], sizes = [1, 16], strides = [1, 1]} : vector<1x64xf32> to vector<1x16xf32>
    %37 = arith.negf %36 : vector<1x16xf32>
    %38 = math.exp %37 : vector<1x16xf32>
    %cst_25 = arith.constant 1.000000e+00 : f32
    %39 = vector.broadcast %cst_25 : f32 to vector<1x16xf32>
    %40 = arith.addf %39, %38 : vector<1x16xf32>
    %41 = arith.divf %39, %40 : vector<1x16xf32>
    %42 = vector.extract_strided_slice %32 {offsets = [0, 16], sizes = [1, 16], strides = [1, 1]} : vector<1x64xf32> to vector<1x16xf32>
    %43 = arith.negf %42 : vector<1x16xf32>
    %44 = math.exp %43 : vector<1x16xf32>
    %cst_26 = arith.constant 1.000000e+00 : f32
    %45 = vector.broadcast %cst_26 : f32 to vector<1x16xf32>
    %46 = arith.addf %45, %44 : vector<1x16xf32>
    %47 = arith.divf %45, %46 : vector<1x16xf32>
    %48 = vector.extract_strided_slice %32 {offsets = [0, 32], sizes = [1, 16], strides = [1, 1]} : vector<1x64xf32> to vector<1x16xf32>
    %49 = math.tanh %48 : vector<1x16xf32>
    %50 = vector.extract_strided_slice %32 {offsets = [0, 48], sizes = [1, 16], strides = [1, 1]} : vector<1x64xf32> to vector<1x16xf32>
    %51 = arith.negf %50 : vector<1x16xf32>
    %52 = math.exp %51 : vector<1x16xf32>
    %cst_27 = arith.constant 1.000000e+00 : f32
    %53 = vector.broadcast %cst_27 : f32 to vector<1x16xf32>
    %54 = arith.addf %53, %52 : vector<1x16xf32>
    %55 = arith.divf %53, %54 : vector<1x16xf32>
    %56 = arith.mulf %47, %27 : vector<1x16xf32>
    %57 = arith.mulf %41, %49 : vector<1x16xf32>
    %58 = arith.addf %56, %57 : vector<1x16xf32>
    %59 = math.tanh %58 : vector<1x16xf32>
    %60 = arith.mulf %55, %59 : vector<1x16xf32>
    %61 = vector.extract_strided_slice %35 {offsets = [0, 0], sizes = [1, 16], strides = [1, 1]} : vector<1x64xf32> to vector<1x16xf32>
    %62 = arith.negf %61 : vector<1x16xf32>
    %63 = math.exp %62 : vector<1x16xf32>
    %cst_28 = arith.constant 1.000000e+00 : f32
    %64 = vector.broadcast %cst_28 : f32 to vector<1x16xf32>
    %65 = arith.addf %64, %63 : vector<1x16xf32>
    %66 = arith.divf %64, %65 : vector<1x16xf32>
    %67 = vector.extract_strided_slice %35 {offsets = [0, 16], sizes = [1, 16], strides = [1, 1]} : vector<1x64xf32> to vector<1x16xf32>
    %68 = arith.negf %67 : vector<1x16xf32>
    %69 = math.exp %68 : vector<1x16xf32>
    %cst_29 = arith.constant 1.000000e+00 : f32
    %70 = vector.broadcast %cst_29 : f32 to vector<1x16xf32>
    %71 = arith.addf %70, %69 : vector<1x16xf32>
    %72 = arith.divf %70, %71 : vector<1x16xf32>
    %73 = vector.extract_strided_slice %35 {offsets = [0, 32], sizes = [1, 16], strides = [1, 1]} : vector<1x64xf32> to vector<1x16xf32>
    %74 = math.tanh %73 : vector<1x16xf32>
    %75 = vector.extract_strided_slice %35 {offsets = [0, 48], sizes = [1, 16], strides = [1, 1]} : vector<1x64xf32> to vector<1x16xf32>
    %76 = arith.negf %75 : vector<1x16xf32>
    %77 = math.exp %76 : vector<1x16xf32>
    %cst_30 = arith.constant 1.000000e+00 : f32
    %78 = vector.broadcast %cst_30 : f32 to vector<1x16xf32>
    %79 = arith.addf %78, %77 : vector<1x16xf32>
    %80 = arith.divf %78, %79 : vector<1x16xf32>
    %81 = arith.mulf %72, %27 : vector<1x16xf32>
    %82 = arith.mulf %66, %74 : vector<1x16xf32>
    %83 = arith.addf %81, %82 : vector<1x16xf32>
    %84 = math.tanh %83 : vector<1x16xf32>
    %85 = arith.mulf %80, %84 : vector<1x16xf32>
    %86 = tpu.concatenate %60, %85 in 1 : vector<1x16xf32>, vector<1x16xf32> -> vector<1x32xf32>
    %cst_31 = arith.constant dense<0.000000e+00> : vector<1x128xf32>
    %87 = tpu.matmul %86, %1, %cst_31 {dimension_numbers = #tpu.dot_dimension_numbers<[1], [0], [0], [1], [0, 0, 1, 1], [], []>} : vector<1x32xf32>, vector<32x128xf32>, vector<1x128xf32> -> vector<1x128xf32>
    %88 = vector.extract_strided_slice %10 {offsets = [0, 0], sizes = [1, 64], strides = [1, 1]} : vector<1x128xf32> to vector<1x64xf32>
    %89 = vector.extract_strided_slice %87 {offsets = [0, 0], sizes = [1, 64], strides = [1, 1]} : vector<1x128xf32> to vector<1x64xf32>
    %90 = arith.addf %88, %89 : vector<1x64xf32>
    %91 = vector.extract_strided_slice %22 {offsets = [0, 64], sizes = [1, 64], strides = [1, 1]} : vector<1x128xf32> to vector<1x64xf32>
    %92 = vector.extract_strided_slice %87 {offsets = [0, 64], sizes = [1, 64], strides = [1, 1]} : vector<1x128xf32> to vector<1x64xf32>
    %93 = arith.addf %91, %92 : vector<1x64xf32>
    %94 = vector.extract_strided_slice %90 {offsets = [0, 0], sizes = [1, 16], strides = [1, 1]} : vector<1x64xf32> to vector<1x16xf32>
    %95 = arith.negf %94 : vector<1x16xf32>
    %96 = math.exp %95 : vector<1x16xf32>
    %cst_32 = arith.constant 1.000000e+00 : f32
    %97 = vector.broadcast %cst_32 : f32 to vector<1x16xf32>
    %98 = arith.addf %97, %96 : vector<1x16xf32>
    %99 = arith.divf %97, %98 : vector<1x16xf32>
    %100 = vector.extract_strided_slice %90 {offsets = [0, 16], sizes = [1, 16], strides = [1, 1]} : vector<1x64xf32> to vector<1x16xf32>
    %101 = arith.negf %100 : vector<1x16xf32>
    %102 = math.exp %101 : vector<1x16xf32>
    %cst_33 = arith.constant 1.000000e+00 : f32
    %103 = vector.broadcast %cst_33 : f32 to vector<1x16xf32>
    %104 = arith.addf %103, %102 : vector<1x16xf32>
    %105 = arith.divf %103, %104 : vector<1x16xf32>
    %106 = vector.extract_strided_slice %90 {offsets = [0, 32], sizes = [1, 16], strides = [1, 1]} : vector<1x64xf32> to vector<1x16xf32>
    %107 = math.tanh %106 : vector<1x16xf32>
    %108 = vector.extract_strided_slice %90 {offsets = [0, 48], sizes = [1, 16], strides = [1, 1]} : vector<1x64xf32> to vector<1x16xf32>
    %109 = arith.negf %108 : vector<1x16xf32>
    %110 = math.exp %109 : vector<1x16xf32>
    %cst_34 = arith.constant 1.000000e+00 : f32
    %111 = vector.broadcast %cst_34 : f32 to vector<1x16xf32>
    %112 = arith.addf %111, %110 : vector<1x16xf32>
    %113 = arith.divf %111, %112 : vector<1x16xf32>
    %114 = arith.mulf %105, %58 : vector<1x16xf32>
    %115 = arith.mulf %99, %107 : vector<1x16xf32>
    %116 = arith.addf %114, %115 : vector<1x16xf32>
    %117 = math.tanh %116 : vector<1x16xf32>
    %118 = arith.mulf %113, %117 : vector<1x16xf32>
    %119 = vector.extract_strided_slice %93 {offsets = [0, 0], sizes = [1, 16], strides = [1, 1]} : vector<1x64xf32> to vector<1x16xf32>
    %120 = arith.negf %119 : vector<1x16xf32>
    %121 = math.exp %120 : vector<1x16xf32>
    %cst_35 = arith.constant 1.000000e+00 : f32
    %122 = vector.broadcast %cst_35 : f32 to vector<1x16xf32>
    %123 = arith.addf %122, %121 : vector<1x16xf32>
    %124 = arith.divf %122, %123 : vector<1x16xf32>
    %125 = vector.extract_strided_slice %93 {offsets = [0, 16], sizes = [1, 16], strides = [1, 1]} : vector<1x64xf32> to vector<1x16xf32>
    %126 = arith.negf %125 : vector<1x16xf32>
    %127 = math.exp %126 : vector<1x16xf32>
    %cst_36 = arith.constant 1.000000e+00 : f32
    %128 = vector.broadcast %cst_36 : f32 to vector<1x16xf32>
    %129 = arith.addf %128, %127 : vector<1x16xf32>
    %130 = arith.divf %128, %129 : vector<1x16xf32>
    %131 = vector.extract_strided_slice %93 {offsets = [0, 32], sizes = [1, 16], strides = [1, 1]} : vector<1x64xf32> to vector<1x16xf32>
    %132 = math.tanh %131 : vector<1x16xf32>
    %133 = vector.extract_strided_slice %93 {offsets = [0, 48], sizes = [1, 16], strides = [1, 1]} : vector<1x64xf32> to vector<1x16xf32>
    %134 = arith.negf %133 : vector<1x16xf32>
    %135 = math.exp %134 : vector<1x16xf32>
    %cst_37 = arith.constant 1.000000e+00 : f32
    %136 = vector.broadcast %cst_37 : f32 to vector<1x16xf32>
    %137 = arith.addf %136, %135 : vector<1x16xf32>
    %138 = arith.divf %136, %137 : vector<1x16xf32>
    %139 = arith.mulf %130, %83 : vector<1x16xf32>
    %140 = arith.mulf %124, %132 : vector<1x16xf32>
    %141 = arith.addf %139, %140 : vector<1x16xf32>
    %142 = math.tanh %141 : vector<1x16xf32>
    %143 = arith.mulf %138, %142 : vector<1x16xf32>
    %144 = tpu.concatenate %118, %143 in 1 : vector<1x16xf32>, vector<1x16xf32> -> vector<1x32xf32>
    %cst_38 = arith.constant dense<0.000000e+00> : vector<1x128xf32>
    %145 = tpu.matmul %144, %1, %cst_38 {dimension_numbers = #tpu.dot_dimension_numbers<[1], [0], [0], [1], [0, 0, 1, 1], [], []>} : vector<1x32xf32>, vector<32x128xf32>, vector<1x128xf32> -> vector<1x128xf32>
    %146 = vector.extract_strided_slice %14 {offsets = [0, 0], sizes = [1, 64], strides = [1, 1]} : vector<1x128xf32> to vector<1x64xf32>
    %147 = vector.extract_strided_slice %145 {offsets = [0, 0], sizes = [1, 64], strides = [1, 1]} : vector<1x128xf32> to vector<1x64xf32>
    %148 = arith.addf %146, %147 : vector<1x64xf32>
    %149 = vector.extract_strided_slice %18 {offsets = [0, 64], sizes = [1, 64], strides = [1, 1]} : vector<1x128xf32> to vector<1x64xf32>
    %150 = vector.extract_strided_slice %145 {offsets = [0, 64], sizes = [1, 64], strides = [1, 1]} : vector<1x128xf32> to vector<1x64xf32>
    %151 = arith.addf %149, %150 : vector<1x64xf32>
    %152 = vector.extract_strided_slice %148 {offsets = [0, 0], sizes = [1, 16], strides = [1, 1]} : vector<1x64xf32> to vector<1x16xf32>
    %153 = arith.negf %152 : vector<1x16xf32>
    %154 = math.exp %153 : vector<1x16xf32>
    %cst_39 = arith.constant 1.000000e+00 : f32
    %155 = vector.broadcast %cst_39 : f32 to vector<1x16xf32>
    %156 = arith.addf %155, %154 : vector<1x16xf32>
    %157 = arith.divf %155, %156 : vector<1x16xf32>
    %158 = vector.extract_strided_slice %148 {offsets = [0, 16], sizes = [1, 16], strides = [1, 1]} : vector<1x64xf32> to vector<1x16xf32>
    %159 = arith.negf %158 : vector<1x16xf32>
    %160 = math.exp %159 : vector<1x16xf32>
    %cst_40 = arith.constant 1.000000e+00 : f32
    %161 = vector.broadcast %cst_40 : f32 to vector<1x16xf32>
    %162 = arith.addf %161, %160 : vector<1x16xf32>
    %163 = arith.divf %161, %162 : vector<1x16xf32>
    %164 = vector.extract_strided_slice %148 {offsets = [0, 32], sizes = [1, 16], strides = [1, 1]} : vector<1x64xf32> to vector<1x16xf32>
    %165 = math.tanh %164 : vector<1x16xf32>
    %166 = vector.extract_strided_slice %148 {offsets = [0, 48], sizes = [1, 16], strides = [1, 1]} : vector<1x64xf32> to vector<1x16xf32>
    %167 = arith.negf %166 : vector<1x16xf32>
    %168 = math.exp %167 : vector<1x16xf32>
    %cst_41 = arith.constant 1.000000e+00 : f32
    %169 = vector.broadcast %cst_41 : f32 to vector<1x16xf32>
    %170 = arith.addf %169, %168 : vector<1x16xf32>
    %171 = arith.divf %169, %170 : vector<1x16xf32>
    %172 = arith.mulf %163, %116 : vector<1x16xf32>
    %173 = arith.mulf %157, %165 : vector<1x16xf32>
    %174 = arith.addf %172, %173 : vector<1x16xf32>
    %175 = math.tanh %174 : vector<1x16xf32>
    %176 = arith.mulf %171, %175 : vector<1x16xf32>
    %177 = vector.extract_strided_slice %151 {offsets = [0, 0], sizes = [1, 16], strides = [1, 1]} : vector<1x64xf32> to vector<1x16xf32>
    %178 = arith.negf %177 : vector<1x16xf32>
    %179 = math.exp %178 : vector<1x16xf32>
    %cst_42 = arith.constant 1.000000e+00 : f32
    %180 = vector.broadcast %cst_42 : f32 to vector<1x16xf32>
    %181 = arith.addf %180, %179 : vector<1x16xf32>
    %182 = arith.divf %180, %181 : vector<1x16xf32>
    %183 = vector.extract_strided_slice %151 {offsets = [0, 16], sizes = [1, 16], strides = [1, 1]} : vector<1x64xf32> to vector<1x16xf32>
    %184 = arith.negf %183 : vector<1x16xf32>
    %185 = math.exp %184 : vector<1x16xf32>
    %cst_43 = arith.constant 1.000000e+00 : f32
    %186 = vector.broadcast %cst_43 : f32 to vector<1x16xf32>
    %187 = arith.addf %186, %185 : vector<1x16xf32>
    %188 = arith.divf %186, %187 : vector<1x16xf32>
    %189 = vector.extract_strided_slice %151 {offsets = [0, 32], sizes = [1, 16], strides = [1, 1]} : vector<1x64xf32> to vector<1x16xf32>
    %190 = math.tanh %189 : vector<1x16xf32>
    %191 = vector.extract_strided_slice %151 {offsets = [0, 48], sizes = [1, 16], strides = [1, 1]} : vector<1x64xf32> to vector<1x16xf32>
    %192 = arith.negf %191 : vector<1x16xf32>
    %193 = math.exp %192 : vector<1x16xf32>
    %cst_44 = arith.constant 1.000000e+00 : f32
    %194 = vector.broadcast %cst_44 : f32 to vector<1x16xf32>
    %195 = arith.addf %194, %193 : vector<1x16xf32>
    %196 = arith.divf %194, %195 : vector<1x16xf32>
    %197 = arith.mulf %188, %141 : vector<1x16xf32>
    %198 = arith.mulf %182, %190 : vector<1x16xf32>
    %199 = arith.addf %197, %198 : vector<1x16xf32>
    %200 = math.tanh %199 : vector<1x16xf32>
    %201 = arith.mulf %196, %200 : vector<1x16xf32>
    %202 = tpu.concatenate %176, %201 in 1 : vector<1x16xf32>, vector<1x16xf32> -> vector<1x32xf32>
    %cst_45 = arith.constant dense<0.000000e+00> : vector<1x128xf32>
    %203 = tpu.matmul %202, %1, %cst_45 {dimension_numbers = #tpu.dot_dimension_numbers<[1], [0], [0], [1], [0, 0, 1, 1], [], []>} : vector<1x32xf32>, vector<32x128xf32>, vector<1x128xf32> -> vector<1x128xf32>
    %204 = vector.extract_strided_slice %18 {offsets = [0, 0], sizes = [1, 64], strides = [1, 1]} : vector<1x128xf32> to vector<1x64xf32>
    %205 = vector.extract_strided_slice %203 {offsets = [0, 0], sizes = [1, 64], strides = [1, 1]} : vector<1x128xf32> to vector<1x64xf32>
    %206 = arith.addf %204, %205 : vector<1x64xf32>
    %207 = vector.extract_strided_slice %14 {offsets = [0, 64], sizes = [1, 64], strides = [1, 1]} : vector<1x128xf32> to vector<1x64xf32>
    %208 = vector.extract_strided_slice %203 {offsets = [0, 64], sizes = [1, 64], strides = [1, 1]} : vector<1x128xf32> to vector<1x64xf32>
    %209 = arith.addf %207, %208 : vector<1x64xf32>
    %210 = vector.extract_strided_slice %206 {offsets = [0, 0], sizes = [1, 16], strides = [1, 1]} : vector<1x64xf32> to vector<1x16xf32>
    %211 = arith.negf %210 : vector<1x16xf32>
    %212 = math.exp %211 : vector<1x16xf32>
    %cst_46 = arith.constant 1.000000e+00 : f32
    %213 = vector.broadcast %cst_46 : f32 to vector<1x16xf32>
    %214 = arith.addf %213, %212 : vector<1x16xf32>
    %215 = arith.divf %213, %214 : vector<1x16xf32>
    %216 = vector.extract_strided_slice %206 {offsets = [0, 16], sizes = [1, 16], strides = [1, 1]} : vector<1x64xf32> to vector<1x16xf32>
    %217 = arith.negf %216 : vector<1x16xf32>
    %218 = math.exp %217 : vector<1x16xf32>
    %cst_47 = arith.constant 1.000000e+00 : f32
    %219 = vector.broadcast %cst_47 : f32 to vector<1x16xf32>
    %220 = arith.addf %219, %218 : vector<1x16xf32>
    %221 = arith.divf %219, %220 : vector<1x16xf32>
    %222 = vector.extract_strided_slice %206 {offsets = [0, 32], sizes = [1, 16], strides = [1, 1]} : vector<1x64xf32> to vector<1x16xf32>
    %223 = math.tanh %222 : vector<1x16xf32>
    %224 = vector.extract_strided_slice %206 {offsets = [0, 48], sizes = [1, 16], strides = [1, 1]} : vector<1x64xf32> to vector<1x16xf32>
    %225 = arith.negf %224 : vector<1x16xf32>
    %226 = math.exp %225 : vector<1x16xf32>
    %cst_48 = arith.constant 1.000000e+00 : f32
    %227 = vector.broadcast %cst_48 : f32 to vector<1x16xf32>
    %228 = arith.addf %227, %226 : vector<1x16xf32>
    %229 = arith.divf %227, %228 : vector<1x16xf32>
    %230 = arith.mulf %221, %174 : vector<1x16xf32>
    %231 = arith.mulf %215, %223 : vector<1x16xf32>
    %232 = arith.addf %230, %231 : vector<1x16xf32>
    %233 = math.tanh %232 : vector<1x16xf32>
    %234 = arith.mulf %229, %233 : vector<1x16xf32>
    %235 = vector.extract_strided_slice %209 {offsets = [0, 0], sizes = [1, 16], strides = [1, 1]} : vector<1x64xf32> to vector<1x16xf32>
    %236 = arith.negf %235 : vector<1x16xf32>
    %237 = math.exp %236 : vector<1x16xf32>
    %cst_49 = arith.constant 1.000000e+00 : f32
    %238 = vector.broadcast %cst_49 : f32 to vector<1x16xf32>
    %239 = arith.addf %238, %237 : vector<1x16xf32>
    %240 = arith.divf %238, %239 : vector<1x16xf32>
    %241 = vector.extract_strided_slice %209 {offsets = [0, 16], sizes = [1, 16], strides = [1, 1]} : vector<1x64xf32> to vector<1x16xf32>
    %242 = arith.negf %241 : vector<1x16xf32>
    %243 = math.exp %242 : vector<1x16xf32>
    %cst_50 = arith.constant 1.000000e+00 : f32
    %244 = vector.broadcast %cst_50 : f32 to vector<1x16xf32>
    %245 = arith.addf %244, %243 : vector<1x16xf32>
    %246 = arith.divf %244, %245 : vector<1x16xf32>
    %247 = vector.extract_strided_slice %209 {offsets = [0, 32], sizes = [1, 16], strides = [1, 1]} : vector<1x64xf32> to vector<1x16xf32>
    %248 = math.tanh %247 : vector<1x16xf32>
    %249 = vector.extract_strided_slice %209 {offsets = [0, 48], sizes = [1, 16], strides = [1, 1]} : vector<1x64xf32> to vector<1x16xf32>
    %250 = arith.negf %249 : vector<1x16xf32>
    %251 = math.exp %250 : vector<1x16xf32>
    %cst_51 = arith.constant 1.000000e+00 : f32
    %252 = vector.broadcast %cst_51 : f32 to vector<1x16xf32>
    %253 = arith.addf %252, %251 : vector<1x16xf32>
    %254 = arith.divf %252, %253 : vector<1x16xf32>
    %255 = arith.mulf %246, %199 : vector<1x16xf32>
    %256 = arith.mulf %240, %248 : vector<1x16xf32>
    %257 = arith.addf %255, %256 : vector<1x16xf32>
    %258 = math.tanh %257 : vector<1x16xf32>
    %259 = arith.mulf %254, %258 : vector<1x16xf32>
    %260 = tpu.concatenate %234, %259 in 1 : vector<1x16xf32>, vector<1x16xf32> -> vector<1x32xf32>
    %cst_52 = arith.constant dense<0.000000e+00> : vector<1x128xf32>
    %261 = tpu.matmul %260, %1, %cst_52 {dimension_numbers = #tpu.dot_dimension_numbers<[1], [0], [0], [1], [0, 0, 1, 1], [], []>} : vector<1x32xf32>, vector<32x128xf32>, vector<1x128xf32> -> vector<1x128xf32>
    %262 = vector.extract_strided_slice %22 {offsets = [0, 0], sizes = [1, 64], strides = [1, 1]} : vector<1x128xf32> to vector<1x64xf32>
    %263 = vector.extract_strided_slice %261 {offsets = [0, 0], sizes = [1, 64], strides = [1, 1]} : vector<1x128xf32> to vector<1x64xf32>
    %264 = arith.addf %262, %263 : vector<1x64xf32>
    %265 = vector.extract_strided_slice %10 {offsets = [0, 64], sizes = [1, 64], strides = [1, 1]} : vector<1x128xf32> to vector<1x64xf32>
    %266 = vector.extract_strided_slice %261 {offsets = [0, 64], sizes = [1, 64], strides = [1, 1]} : vector<1x128xf32> to vector<1x64xf32>
    %267 = arith.addf %265, %266 : vector<1x64xf32>
    %268 = vector.extract_strided_slice %264 {offsets = [0, 0], sizes = [1, 16], strides = [1, 1]} : vector<1x64xf32> to vector<1x16xf32>
    %269 = arith.negf %268 : vector<1x16xf32>
    %270 = math.exp %269 : vector<1x16xf32>
    %cst_53 = arith.constant 1.000000e+00 : f32
    %271 = vector.broadcast %cst_53 : f32 to vector<1x16xf32>
    %272 = arith.addf %271, %270 : vector<1x16xf32>
    %273 = arith.divf %271, %272 : vector<1x16xf32>
    %274 = vector.extract_strided_slice %264 {offsets = [0, 16], sizes = [1, 16], strides = [1, 1]} : vector<1x64xf32> to vector<1x16xf32>
    %275 = arith.negf %274 : vector<1x16xf32>
    %276 = math.exp %275 : vector<1x16xf32>
    %cst_54 = arith.constant 1.000000e+00 : f32
    %277 = vector.broadcast %cst_54 : f32 to vector<1x16xf32>
    %278 = arith.addf %277, %276 : vector<1x16xf32>
    %279 = arith.divf %277, %278 : vector<1x16xf32>
    %280 = vector.extract_strided_slice %264 {offsets = [0, 32], sizes = [1, 16], strides = [1, 1]} : vector<1x64xf32> to vector<1x16xf32>
    %281 = math.tanh %280 : vector<1x16xf32>
    %282 = vector.extract_strided_slice %264 {offsets = [0, 48], sizes = [1, 16], strides = [1, 1]} : vector<1x64xf32> to vector<1x16xf32>
    %283 = arith.negf %282 : vector<1x16xf32>
    %284 = math.exp %283 : vector<1x16xf32>
    %cst_55 = arith.constant 1.000000e+00 : f32
    %285 = vector.broadcast %cst_55 : f32 to vector<1x16xf32>
    %286 = arith.addf %285, %284 : vector<1x16xf32>
    %287 = arith.divf %285, %286 : vector<1x16xf32>
    %288 = arith.mulf %279, %232 : vector<1x16xf32>
    %289 = arith.mulf %273, %281 : vector<1x16xf32>
    %290 = arith.addf %288, %289 : vector<1x16xf32>
    %291 = math.tanh %290 : vector<1x16xf32>
    %292 = arith.mulf %287, %291 : vector<1x16xf32>
    %293 = vector.extract_strided_slice %267 {offsets = [0, 0], sizes = [1, 16], strides = [1, 1]} : vector<1x64xf32> to vector<1x16xf32>
    %294 = arith.negf %293 : vector<1x16xf32>
    %295 = math.exp %294 : vector<1x16xf32>
    %cst_56 = arith.constant 1.000000e+00 : f32
    %296 = vector.broadcast %cst_56 : f32 to vector<1x16xf32>
    %297 = arith.addf %296, %295 : vector<1x16xf32>
    %298 = arith.divf %296, %297 : vector<1x16xf32>
    %299 = vector.extract_strided_slice %267 {offsets = [0, 16], sizes = [1, 16], strides = [1, 1]} : vector<1x64xf32> to vector<1x16xf32>
    %300 = arith.negf %299 : vector<1x16xf32>
    %301 = math.exp %300 : vector<1x16xf32>
    %cst_57 = arith.constant 1.000000e+00 : f32
    %302 = vector.broadcast %cst_57 : f32 to vector<1x16xf32>
    %303 = arith.addf %302, %301 : vector<1x16xf32>
    %304 = arith.divf %302, %303 : vector<1x16xf32>
    %305 = vector.extract_strided_slice %267 {offsets = [0, 32], sizes = [1, 16], strides = [1, 1]} : vector<1x64xf32> to vector<1x16xf32>
    %306 = math.tanh %305 : vector<1x16xf32>
    %307 = vector.extract_strided_slice %267 {offsets = [0, 48], sizes = [1, 16], strides = [1, 1]} : vector<1x64xf32> to vector<1x16xf32>
    %308 = arith.negf %307 : vector<1x16xf32>
    %309 = math.exp %308 : vector<1x16xf32>
    %cst_58 = arith.constant 1.000000e+00 : f32
    %310 = vector.broadcast %cst_58 : f32 to vector<1x16xf32>
    %311 = arith.addf %310, %309 : vector<1x16xf32>
    %312 = arith.divf %310, %311 : vector<1x16xf32>
    %313 = arith.mulf %304, %257 : vector<1x16xf32>
    %314 = arith.mulf %298, %306 : vector<1x16xf32>
    %315 = arith.addf %313, %314 : vector<1x16xf32>
    %316 = math.tanh %315 : vector<1x16xf32>
    %317 = arith.mulf %312, %316 : vector<1x16xf32>
    %318 = tpu.concatenate %292, %317 in 1 : vector<1x16xf32>, vector<1x16xf32> -> vector<1x32xf32>
    %cst_59 = arith.constant dense<0.000000e+00> : vector<1x128xf32>
    %319 = tpu.matmul %318, %1, %cst_59 {dimension_numbers = #tpu.dot_dimension_numbers<[1], [0], [0], [1], [0, 0, 1, 1], [], []>} : vector<1x32xf32>, vector<32x128xf32>, vector<1x128xf32> -> vector<1x128xf32>
    %320 = vector.extract_strided_slice %26 {offsets = [0, 0], sizes = [1, 64], strides = [1, 1]} : vector<1x128xf32> to vector<1x64xf32>
    %321 = vector.extract_strided_slice %319 {offsets = [0, 0], sizes = [1, 64], strides = [1, 1]} : vector<1x128xf32> to vector<1x64xf32>
    %322 = arith.addf %320, %321 : vector<1x64xf32>
    %323 = vector.extract_strided_slice %6 {offsets = [0, 64], sizes = [1, 64], strides = [1, 1]} : vector<1x128xf32> to vector<1x64xf32>
    %324 = vector.extract_strided_slice %319 {offsets = [0, 64], sizes = [1, 64], strides = [1, 1]} : vector<1x128xf32> to vector<1x64xf32>
    %325 = arith.addf %323, %324 : vector<1x64xf32>
    %326 = vector.extract_strided_slice %322 {offsets = [0, 0], sizes = [1, 16], strides = [1, 1]} : vector<1x64xf32> to vector<1x16xf32>
    %327 = arith.negf %326 : vector<1x16xf32>
    %328 = math.exp %327 : vector<1x16xf32>
    %cst_60 = arith.constant 1.000000e+00 : f32
    %329 = vector.broadcast %cst_60 : f32 to vector<1x16xf32>
    %330 = arith.addf %329, %328 : vector<1x16xf32>
    %331 = arith.divf %329, %330 : vector<1x16xf32>
    %332 = vector.extract_strided_slice %322 {offsets = [0, 16], sizes = [1, 16], strides = [1, 1]} : vector<1x64xf32> to vector<1x16xf32>
    %333 = arith.negf %332 : vector<1x16xf32>
    %334 = math.exp %333 : vector<1x16xf32>
    %cst_61 = arith.constant 1.000000e+00 : f32
    %335 = vector.broadcast %cst_61 : f32 to vector<1x16xf32>
    %336 = arith.addf %335, %334 : vector<1x16xf32>
    %337 = arith.divf %335, %336 : vector<1x16xf32>
    %338 = vector.extract_strided_slice %322 {offsets = [0, 32], sizes = [1, 16], strides = [1, 1]} : vector<1x64xf32> to vector<1x16xf32>
    %339 = math.tanh %338 : vector<1x16xf32>
    %340 = vector.extract_strided_slice %322 {offsets = [0, 48], sizes = [1, 16], strides = [1, 1]} : vector<1x64xf32> to vector<1x16xf32>
    %341 = arith.negf %340 : vector<1x16xf32>
    %342 = math.exp %341 : vector<1x16xf32>
    %cst_62 = arith.constant 1.000000e+00 : f32
    %343 = vector.broadcast %cst_62 : f32 to vector<1x16xf32>
    %344 = arith.addf %343, %342 : vector<1x16xf32>
    %345 = arith.divf %343, %344 : vector<1x16xf32>
    %346 = arith.mulf %337, %290 : vector<1x16xf32>
    %347 = arith.mulf %331, %339 : vector<1x16xf32>
    %348 = arith.addf %346, %347 : vector<1x16xf32>
    %349 = math.tanh %348 : vector<1x16xf32>
    %350 = arith.mulf %345, %349 : vector<1x16xf32>
    %351 = vector.extract_strided_slice %325 {offsets = [0, 0], sizes = [1, 16], strides = [1, 1]} : vector<1x64xf32> to vector<1x16xf32>
    %352 = arith.negf %351 : vector<1x16xf32>
    %353 = math.exp %352 : vector<1x16xf32>
    %cst_63 = arith.constant 1.000000e+00 : f32
    %354 = vector.broadcast %cst_63 : f32 to vector<1x16xf32>
    %355 = arith.addf %354, %353 : vector<1x16xf32>
    %356 = arith.divf %354, %355 : vector<1x16xf32>
    %357 = vector.extract_strided_slice %325 {offsets = [0, 16], sizes = [1, 16], strides = [1, 1]} : vector<1x64xf32> to vector<1x16xf32>
    %358 = arith.negf %357 : vector<1x16xf32>
    %359 = math.exp %358 : vector<1x16xf32>
    %cst_64 = arith.constant 1.000000e+00 : f32
    %360 = vector.broadcast %cst_64 : f32 to vector<1x16xf32>
    %361 = arith.addf %360, %359 : vector<1x16xf32>
    %362 = arith.divf %360, %361 : vector<1x16xf32>
    %363 = vector.extract_strided_slice %325 {offsets = [0, 32], sizes = [1, 16], strides = [1, 1]} : vector<1x64xf32> to vector<1x16xf32>
    %364 = math.tanh %363 : vector<1x16xf32>
    %365 = vector.extract_strided_slice %325 {offsets = [0, 48], sizes = [1, 16], strides = [1, 1]} : vector<1x64xf32> to vector<1x16xf32>
    %366 = arith.negf %365 : vector<1x16xf32>
    %367 = math.exp %366 : vector<1x16xf32>
    %cst_65 = arith.constant 1.000000e+00 : f32
    %368 = vector.broadcast %cst_65 : f32 to vector<1x16xf32>
    %369 = arith.addf %368, %367 : vector<1x16xf32>
    %370 = arith.divf %368, %369 : vector<1x16xf32>
    %371 = arith.mulf %362, %315 : vector<1x16xf32>
    %372 = arith.mulf %356, %364 : vector<1x16xf32>
    %373 = arith.addf %371, %372 : vector<1x16xf32>
    %374 = math.tanh %373 : vector<1x16xf32>
    %375 = arith.mulf %370, %374 : vector<1x16xf32>
    %376 = tpu.concatenate %60, %375 in 1 : vector<1x16xf32>, vector<1x16xf32> -> vector<1x32xf32>
    %377 = tpu.concatenate %118, %317 in 1 : vector<1x16xf32>, vector<1x16xf32> -> vector<1x32xf32>
    %378 = tpu.concatenate %176, %259 in 1 : vector<1x16xf32>, vector<1x16xf32> -> vector<1x32xf32>
    %379 = tpu.concatenate %234, %201 in 1 : vector<1x16xf32>, vector<1x16xf32> -> vector<1x32xf32>
    %380 = tpu.concatenate %292, %143 in 1 : vector<1x16xf32>, vector<1x16xf32> -> vector<1x32xf32>
    %381 = tpu.concatenate %350, %85 in 1 : vector<1x16xf32>, vector<1x16xf32> -> vector<1x32xf32>
    %382 = tpu.concatenate %376, %377, %378, %379, %380, %381 in 0 : vector<1x32xf32>, vector<1x32xf32>, vector<1x32xf32>, vector<1x32xf32>, vector<1x32xf32>, vector<1x32xf32> -> vector<6x32xf32>
    %c0_66 = arith.constant 0 : index
    %c0_67 = arith.constant 0 : index
    %383 = vector.load %arg4[%c0_66, %c0_67] : memref<6x6xf32, #tpu.memory_space<vmem>>, vector<6x6xf32>
    %cst_68 = arith.constant dense<0.000000e+00> : vector<6x32xf32>
    %384 = tpu.matmul %383, %382, %cst_68 {dimension_numbers = #tpu.dot_dimension_numbers<[1], [0], [0], [1], [0, 0, 1, 1], [], []>} : vector<6x6xf32>, vector<6x32xf32>, vector<6x32xf32> -> vector<6x32xf32>
    %c0_69 = arith.constant 0 : index
    %c0_70 = arith.constant 0 : index
    %385 = vector.load %arg5[%c0_69, %c0_70] : memref<6x6xf32, #tpu.memory_space<vmem>>, vector<6x6xf32>
    %cst_71 = arith.constant dense<0.000000e+00> : vector<6x32xf32>
    %386 = tpu.matmul %385, %382, %cst_71 {dimension_numbers = #tpu.dot_dimension_numbers<[1], [0], [0], [1], [0, 0, 1, 1], [], []>} : vector<6x6xf32>, vector<6x32xf32>, vector<6x32xf32> -> vector<6x32xf32>
    %387 = arith.mulf %384, %382 : vector<6x32xf32>
    %388 = arith.subf %384, %382 : vector<6x32xf32>
    %389 = arith.mulf %382, %384 : vector<6x32xf32>
    %cst_72 = arith.constant dense<0.000000e+00> : vector<6xf32>
    %390 = vector.multi_reduction <add>, %389, %cst_72 [1] : vector<6x32xf32> to vector<6xf32>
    %391 = vector.shape_cast %390 : vector<6xf32> to vector<6x1xf32>
    %392 = arith.mulf %382, %382 : vector<6x32xf32>
    %cst_73 = arith.constant dense<0.000000e+00> : vector<6xf32>
    %393 = vector.multi_reduction <add>, %392, %cst_73 [1] : vector<6x32xf32> to vector<6xf32>
    %394 = vector.shape_cast %393 : vector<6xf32> to vector<6x1xf32>
    %395 = math.sqrt %394 : vector<6x1xf32>
    %396 = arith.mulf %384, %384 : vector<6x32xf32>
    %cst_74 = arith.constant dense<0.000000e+00> : vector<6xf32>
    %397 = vector.multi_reduction <add>, %396, %cst_74 [1] : vector<6x32xf32> to vector<6xf32>
    %398 = vector.shape_cast %397 : vector<6xf32> to vector<6x1xf32>
    %399 = math.sqrt %398 : vector<6x1xf32>
    %cst_75 = arith.constant 9.99999993E-9 : f32
    %400 = vector.broadcast %cst_75 : f32 to vector<6x1xf32>
    %401 = arith.maximumf %395, %400 : vector<6x1xf32>
    %cst_76 = arith.constant 9.99999993E-9 : f32
    %402 = vector.broadcast %cst_76 : f32 to vector<6x1xf32>
    %403 = arith.maximumf %399, %402 : vector<6x1xf32>
    %404 = arith.mulf %401, %403 : vector<6x1xf32>
    %405 = arith.divf %391, %404 : vector<6x1xf32>
    %406 = tpu.concatenate %382, %384, %387, %388, %405 in 1 : vector<6x32xf32>, vector<6x32xf32>, vector<6x32xf32>, vector<6x32xf32>, vector<6x1xf32> -> vector<6x129xf32>
    %407 = arith.mulf %386, %382 : vector<6x32xf32>
    %408 = arith.subf %386, %382 : vector<6x32xf32>
    %409 = arith.mulf %382, %386 : vector<6x32xf32>
    %cst_77 = arith.constant dense<0.000000e+00> : vector<6xf32>
    %410 = vector.multi_reduction <add>, %409, %cst_77 [1] : vector<6x32xf32> to vector<6xf32>
    %411 = vector.shape_cast %410 : vector<6xf32> to vector<6x1xf32>
    %412 = arith.mulf %382, %382 : vector<6x32xf32>
    %cst_78 = arith.constant dense<0.000000e+00> : vector<6xf32>
    %413 = vector.multi_reduction <add>, %412, %cst_78 [1] : vector<6x32xf32> to vector<6xf32>
    %414 = vector.shape_cast %413 : vector<6xf32> to vector<6x1xf32>
    %415 = math.sqrt %414 : vector<6x1xf32>
    %416 = arith.mulf %386, %386 : vector<6x32xf32>
    %cst_79 = arith.constant dense<0.000000e+00> : vector<6xf32>
    %417 = vector.multi_reduction <add>, %416, %cst_79 [1] : vector<6x32xf32> to vector<6xf32>
    %418 = vector.shape_cast %417 : vector<6xf32> to vector<6x1xf32>
    %419 = math.sqrt %418 : vector<6x1xf32>
    %cst_80 = arith.constant 9.99999993E-9 : f32
    %420 = vector.broadcast %cst_80 : f32 to vector<6x1xf32>
    %421 = arith.maximumf %415, %420 : vector<6x1xf32>
    %cst_81 = arith.constant 9.99999993E-9 : f32
    %422 = vector.broadcast %cst_81 : f32 to vector<6x1xf32>
    %423 = arith.maximumf %419, %422 : vector<6x1xf32>
    %424 = arith.mulf %421, %423 : vector<6x1xf32>
    %425 = arith.divf %411, %424 : vector<6x1xf32>
    %426 = tpu.concatenate %382, %386, %407, %408, %425 in 1 : vector<6x32xf32>, vector<6x32xf32>, vector<6x32xf32>, vector<6x32xf32>, vector<6x1xf32> -> vector<6x129xf32>
    %427 = tpu.concatenate %382, %406, %426 in 1 : vector<6x32xf32>, vector<6x129xf32>, vector<6x129xf32> -> vector<6x290xf32>
    %c0_82 = arith.constant 0 : index
    %c0_83 = arith.constant 0 : index
    %428 = vector.load %arg6[%c0_82, %c0_83] : memref<290x5xf32, #tpu.memory_space<vmem>>, vector<290x5xf32>
    %cst_84 = arith.constant dense<0.000000e+00> : vector<6x5xf32>
    %429 = tpu.matmul %427, %428, %cst_84 {dimension_numbers = #tpu.dot_dimension_numbers<[1], [0], [0], [1], [0, 0, 1, 1], [], []>} : vector<6x290xf32>, vector<290x5xf32>, vector<6x5xf32> -> vector<6x5xf32>
    %c0_85 = arith.constant 0 : index
    %c0_86 = arith.constant 0 : index
    %430 = vector.load %arg7[%c0_85, %c0_86] : memref<1x5xf32, #tpu.memory_space<vmem>>, vector<1x5xf32>
    %431 = vector.broadcast %430 : vector<1x5xf32> to vector<6x5xf32>
    %432 = arith.addf %429, %431 : vector<6x5xf32>
    %cst_87 = arith.constant dense<0xFF800000> : vector<5xf32>
    %433 = vector.multi_reduction <maximumf>, %432, %cst_87 [0] : vector<6x5xf32> to vector<5xf32>
    %434 = vector.shape_cast %433 : vector<5xf32> to vector<1x5xf32>
    %435 = vector.broadcast %434 : vector<1x5xf32> to vector<6x5xf32>
    %436 = arith.subf %432, %435 : vector<6x5xf32>
    %437 = math.exp %436 : vector<6x5xf32>
    %cst_88 = arith.constant dense<0.000000e+00> : vector<5xf32>
    %438 = vector.multi_reduction <add>, %437, %cst_88 [0] : vector<6x5xf32> to vector<5xf32>
    %439 = vector.shape_cast %438 : vector<5xf32> to vector<1x5xf32>
    %440 = vector.broadcast %439 : vector<1x5xf32> to vector<6x5xf32>
    %441 = arith.divf %437, %440 : vector<6x5xf32>
    %c0_89 = arith.constant 0 : index
    %c0_90 = arith.constant 0 : index
    %442 = vector.load %arg8[%c0_89, %c0_90] : memref<6x5xf32, #tpu.memory_space<vmem>>, vector<6x5xf32>
    tpu.vector_store %arg8[%c0_89, %c0_90], %441 {strides = array<i32>} : memref<6x5xf32, #tpu.memory_space<vmem>>, vector<6x5xf32>,
    return
  }
}

</mosaic_0001>

<bundles_post_ra>
// kernel: tam_forward.6
= control target key start
LH: loop header
LB: loop body
LE: loop exit
PB: predicated region body
PF: predicated region fallthrough
CT: control target
= control target key end

     0   :  { %v921_v0 = vmov 0.0|0.0   ;;  %vm922_vm0 = vmmov 0   ;;  %v923_v4 = vmov 0.0   ;;  %vm39_vm1 = vcmask 1043456   ;;  %s1061_s1 = inlined_call_operand.vmem [shape: f32[20,32], index: 1, kind: input, shape index: {}]   ;;  %s1062_s0 = inlined_call_operand.vmem [shape: f32[6,7,20], index: 0, kind: input, shape index: {}]   ;;  %s1063_s4 = inlined_call_operand.<no memory space> [shape: f32[1,1], index: 4, kind: input, shape index: {}]   ;;  %s1064_s2 = inlined_call_operand.vmem [shape: f32[1,32], index: 2, kind: input, shape index: {}]   ;;  %s1065_s3 = inlined_call_operand.vmem [shape: f32[1,32], index: 3, kind: input, shape index: {}]   ;;  %s1066_s5 = inlined_call_operand.vmem [shape: f32[6,32], index: 5, kind: output, shape index: {}]  }
   0x1   :  { %849 = vmatprep.subr.bf16.mxu0 %v921_v0  ;;  %v22_v1 = vld [vmem:[%s1061_s1] sm:$0xff]  ;;  %v23_v2 = vld [vmem:[%s1061_s1 + $0x8] sm:$0xff]  ;;  %852 = vmatprep.subr.bf16.mxu1 %v921_v0  ;;  %v24_v5 = vld [vmem:[%s1061_s1 + $0x10] sm:$0xf]  ;;  %vm35_vm2 = vcmask 162816   ;;  %v10_v12 = vstv %s1063_s4  ;;  %vm121_vm3 = vcmask 260096  }
   0x2   :  { %v850_v3 = vpack.c.bf16 %v23_v2, %v22_v1  ;;  %801 = vmatprep.mubr.msk.f32.mxu0 %vm922_vm0, %v923_v4  ;;  %810 = vmatprep.mubr.msk.f32.mxu1 %vm922_vm0, %v923_v4  ;;  %v28_v6 = vld [vmem:[%s1062_s0] sm:$0x7f]  ;;  %v756_v7 = vld [vmem:[%s1062_s0 + $0x8] sm:$0x7f]  ;;  %v759_v8 = vld [vmem:[%s1062_s0 + $0x10] sm:$0x7f] }
   0x3   :  { %v762_v9 = vld [vmem:[%s1062_s0 + $0x18] sm:$0x7f]  ;;  %v765_v10 = vld [vmem:[%s1062_s0 + $0x20] sm:$0x7f]  ;;  %v768_v11 = vld [vmem:[%s1062_s0 + $0x28] sm:$0x7f] }
   0x4   :  { %851 = vmatpush3.bf16.msra.mxu0 %v850_v3  ;;  %854 = vmatpush3.bf16.msra.mxu1 %v850_v3  ;;  %11 = vst [vmem:[#allocation2] sm:$0x1] %v10_v12  ;;  %v751_v13 = vld [vmem:[%s1064_s2] ss:$0 sm:$0xff]  ;;  %v924_v51 = vmov 0   ;;  %vm133_vm4 = vcmask 6144  }
   0x5   :  { %799 = vmatprep.subr.mxu0 %v923_v4  ;;  %808 = vmatprep.subr.mxu1 %v923_v4  ;;  %v754_v26 = vld [vmem:[%s1065_s3] ss:$0 sm:$0xff]  ;;  %vm736_vm5 = vcmask 1040384   ;;  %vm738_vm6 = vcmask 1041408   ;;  %vm740_vm7 = vcmask 1042432   ;;  %vm743_vm8 = vcmask 1044480  }
   0x6   :  { %871 = vset.pattern.permute.xlu0 %v924_v51  ;;  %872 = vset.pattern.permute.xlu1 %v924_v51  ;;  %vm745_vm9 = vcmask 259072  }
   0x8   :  { %800 = vmatpush3.msk.msra.mxu0 %vm39_vm1, %v24_v5  ;;  %809 = vmatpush3.msk.msra.mxu1 %vm39_vm1, %v24_v5 }
   0x9   :  { %802 = vmatmul.mubr.msk.f32.vlgmr.msra.gmra.mrb[0].mxu0 %vm35_vm2, %v28_v6  ;;  %855 = vmatprep.subr.bf16.mxu0 %v921_v0 }
   0xa   :  { %857 = vmatpush3.bf16.msra.mxu0 %v850_v3  ;;  %858 = vmatprep.subr.bf16.mxu1 %v921_v0 }
   0xb   :  { %811 = vmatmul.mubr.msk.f32.vlgmr.msra.gmra.mrb[0].mxu1 %vm35_vm2, %v756_v7  ;;  %817 = vmatprep.subr.mxu0 %v923_v4  ;;  %v755_v52 = vld [vmem:[#allocation2] ss:$0 sm:$0xff] }
   0xc   :  { %860 = vmatpush3.bf16.msra.mxu1 %v850_v3  ;;  %819 = vmatprep.mubr.msk.f32.mxu0 %vm922_vm0, %v923_v4 }
   0xd   :  { %826 = vmatprep.subr.mxu1 %v923_v4  ;;  %828 = vmatprep.mubr.msk.f32.mxu1 %vm922_vm0, %v923_v4 }
   0xe   :  { %818 = vmatpush3.msk.msra.mxu0 %vm39_vm1, %v24_v5 }
   0xf   :  { %820 = vmatmul.mubr.msk.f32.vlgmr.msra.gmra.mrb[2].mxu0 %vm35_vm2, %v759_v8  ;;  %861 = vmatprep.subr.bf16.mxu0 %v921_v0 }
  0x10   :  { %827 = vmatpush3.msk.msra.mxu1 %vm39_vm1, %v24_v5  ;;  %863 = vmatpush3.bf16.msra.mxu0 %v850_v3 }
  0x11   :  { %864 = vmatprep.subr.bf16.mxu1 %v921_v0  ;;  %829 = vmatmul.mubr.msk.f32.vlgmr.msra.gmra.mrb[2].mxu1 %vm35_vm2, %v762_v9 }
  0x12   :  { %866 = vmatpush3.bf16.msra.mxu1 %v850_v3  ;;  %835 = vmatprep.subr.mxu0 %v923_v4 }
  0x13   :  { %837 = vmatprep.mubr.msk.f32.mxu0 %vm922_vm0, %v923_v4  ;;  %844 = vmatprep.subr.mxu1 %v923_v4 }
  0x14   :  { %836 = vmatpush3.msk.msra.mxu0 %vm39_vm1, %v24_v5  ;;  %846 = vmatprep.mubr.msk.f32.mxu1 %vm922_vm0, %v923_v4 }
  0x15   :  { %838 = vmatmul.mubr.msk.f32.vlgmr.msra.gmra.mrb[4].mxu0 %vm35_vm2, %v765_v10 }
  0x16   :  { %845 = vmatpush3.msk.msra.mxu1 %vm39_vm1, %v24_v5 }
  0x17   :  { %847 = vmatmul.mubr.msk.f32.vlgmr.msra.gmra.mrb[4].mxu1 %vm35_vm2, %v768_v11 }
  0xdc   :  { %v109_v14 = vpop.f32.mrb[0].mxu0 }
  0xdd   :  { %v110_v15 = vadd.f32 %v751_v13, %v109_v14  ;;  %v803_v16 = vpop.f32.mrb[1].mxu0 }
  0xde   :  { %v237_v17 = vpop.f32.mrb[0].mxu1 }
  0xdf   :  { %873 = vtanh.f32 %v110_v15  ;;  %v238_v18 = vadd.f32 %v751_v13, %v237_v17  ;;  %v812_v19 = vpop.f32.mrb[1].mxu1 }
  0xe1   :  { %875 = vtanh.f32 %v238_v18 }
  0xe2   :  { %v351_v20 = vpop.f32.mrb[2].mxu0 }
  0xe3   :  { %v352_v21 = vadd.f32 %v751_v13, %v351_v20  ;;  %v821_v22 = vpop.f32.mrb[3].mxu0 }
  0xe4   :  { %v465_v23 = vpop.f32.mrb[2].mxu1 }
  0xe5   :  { %877 = vtanh.f32 %v352_v21  ;;  %v466_v24 = vadd.f32 %v751_v13, %v465_v23  ;;  %v830_v25 = vpop.f32.mrb[3].mxu1 }
  0xe7   :  { %879 = vtanh.f32 %v466_v24 }
  0xe8   :  { %v579_v27 = vpop.f32.mrb[4].mxu0 }
  0xe9   :  { %v1009_v28 = vpop.eup %873  ;;  %v580_v29 = vadd.f32 %v751_v13, %v579_v27  ;;  %v839_v30 = vpop.f32.mrb[5].mxu0 }
  0xea   :  { %v693_v31 = vpop.f32.mrb[4].mxu1  ;;  %v120_v32 = vmul.f32 %v1009_v28, %v754_v26 }
  0xeb   :  { %v1012_v33 = vpop.eup %875  ;;  %881 = vtanh.f32 %v580_v29  ;;  %v694_v34 = vadd.f32 %v751_v13, %v693_v31  ;;  %v848_v35 = vpop.f32.mrb[5].mxu1 }
  0xec   :  { %v122_v36 = vsel %vm121_vm3, %v120_v32, 0.0  ;;  %v242_v37 = vmul.f32 %v1012_v33, %v754_v26 }
  0xed   :  { %883 = vtanh.f32 %v694_v34  ;;  %123 = vadd.xlane.f32.xlu0 %v122_v36 }
  0xee   :  { %v243_v38 = vsel %vm121_vm3, %v242_v37, 0.0 }
  0xef   :  { %v1017_v39 = vpop.eup %877 }
  0xf0   :  { %v356_v40 = vmul.f32 %v1017_v39, %v754_v26 }
  0xf1   :  { %v1020_v41 = vpop.eup %879  ;;  %244 = vadd.xlane.f32.xlu0 %v243_v38 }
  0xf2   :  { %v357_v42 = vsel %vm121_vm3, %v356_v40, 0.0  ;;  %v470_v43 = vmul.f32 %v1020_v41, %v754_v26 }
  0xf3   :  { %358 = vadd.xlane.f32.xlu1 %v357_v42 }
  0xf4   :  { %v471_v44 = vsel %vm121_vm3, %v470_v43, 0.0 }
  0xf5   :  { %v1025_v45 = vpop.eup %881 }
  0xf6   :  { %v584_v46 = vmul.f32 %v1025_v45, %v754_v26 }
  0xf7   :  { %v1028_v47 = vpop.eup %883  ;;  %472 = vadd.xlane.f32.xlu1 %v471_v44 }
  0xf8   :  { %v585_v48 = vsel %vm121_vm3, %v584_v46, 0.0  ;;  %v698_v49 = vmul.f32 %v1028_v47, %v754_v26 }
  0xf9   :  { %586 = vadd.xlane.f32.xlu0 %v585_v48 }
  0xfa   :  { %v699_v50 = vsel %vm121_vm3, %v698_v49, 0.0 }
  0xfb   :  { %700 = vadd.xlane.f32.xlu1 %v699_v50 }
 0x17a   :  { %v124_v53 = vpop.xlane.xlu0 %123 }
 0x17b   :  { %v131_v54 = vadd.f32 %v755_v52, %v124_v53 }
 0x17d   :  { %885 = vtanh.f32 %v131_v54 }
 0x17e   :  { %v245_v55 = vpop.xlane.xlu0 %244 }
 0x17f   :  { %v246_v56 = vadd.f32 %v755_v52, %v245_v55 }
 0x180   :  { %v359_v57 = vpop.xlane.xlu1 %358 }
 0x181   :  { %887 = vtanh.f32 %v246_v56  ;;  %v360_v58 = vadd.f32 %v755_v52, %v359_v57 }
 0x183   :  { %889 = vtanh.f32 %v360_v58 }
 0x184   :  { %v473_v59 = vpop.xlane.xlu1 %472 }
 0x185   :  { %v474_v60 = vadd.f32 %v755_v52, %v473_v59 }
 0x186   :  { %v587_v61 = vpop.xlane.xlu0 %586 }
 0x187   :  { %v886_v62 = vpop.eup %885  ;;  %891 = vtanh.f32 %v474_v60  ;;  %v588_v63 = vadd.f32 %v755_v52, %v587_v61 }
 0x188   :  { %v134_v0 = vsel %vm133_vm4, %v886_v62, -inf  ;;  %v701_v1 = vpop.xlane.xlu1 %700 }
 0x189   :  { %v135_v2 = vrot.slane %v134_v0, 4  ;;  %893 = vtanh.f32 %v588_v63  ;;  %v702_v3 = vadd.f32 %v755_v52, %v701_v1 }
 0x18b   :  { %v888_v4 = vpop.eup %887  ;;  %v136_v5 = vmax.f32 %v134_v0, %v135_v2  ;;  %895 = vtanh.f32 %v702_v3 }
 0x18c   :  { %v248_v6 = vsel %vm133_vm4, %v888_v4, -inf }
 0x18d   :  { %v890_v7 = vpop.eup %889  ;;  %v137_v8 = vrot.slane %v136_v5, 2  ;;  %v249_v9 = vrot.slane %v248_v6, 4 }
 0x18e   :  { %v362_v10 = vsel %vm133_vm4, %v890_v7, -inf }
 0x18f   :  { %v138_v11 = vmax.f32 %v136_v5, %v137_v8  ;;  %v250_v12 = vmax.f32 %v248_v6, %v249_v9  ;;  %v363_v13 = vrot.slane %v362_v10, 4 }
 0x191   :  { %v892_v14 = vpop.eup %891  ;;  %v139_v15 = vrot.slane %v138_v11, 1  ;;  %v251_v16 = vrot.slane %v250_v12, 2  ;;  %v364_v17 = vmax.f32 %v362_v10, %v363_v13 }
 0x192   :  { %v476_v18 = vsel %vm133_vm4, %v892_v14, -inf }
 0x193   :  { %v894_v19 = vpop.eup %893  ;;  %v140_v20 = vmax.f32 %v138_v11, %v139_v15  ;;  %v252_v21 = vmax.f32 %v250_v12, %v251_v16  ;;  %v365_v22 = vrot.slane %v364_v17, 2  ;;  %v477_v23 = vrot.slane %v476_v18, 4 }
 0x194   :  { %v590_v24 = vsel %vm133_vm4, %v894_v19, -inf }
 0x195   :  { %v896_v25 = vpop.eup %895  ;;  %v141_v26 = vsub.f32 %v886_v62, %v140_v20  ;;  %v253_v27 = vrot.slane %v252_v21, 1  ;;  %v366_v29 = vmax.f32 %v364_v17, %v365_v22  ;;  %v478_v30 = vmax.f32 %v476_v18, %v477_v23 }
 0x196   :  { %v591_v31 = vrot.slane %v590_v24, 4  ;;  %v704_v32 = vsel %vm133_vm4, %v896_v25, -inf }
 0x197   :  { %v142_v34 = vmul.f32 1.442695, %v141_v26  ;;  %v254_v35 = vmax.f32 %v252_v21, %v253_v27  ;;  %v367_v36 = vrot.slane %v366_v29, 1  ;;  %v479_v37 = vrot.slane %v478_v30, 2 }
 0x198   :  { %v592_v38 = vmax.f32 %v590_v24, %v591_v31  ;;  %v705_v40 = vrot.slane %v704_v32, 4 }
 0x199   :  { %897 = vpow2.f32 %v142_v34  ;;  %v255_v42 = vsub.f32 %v888_v4, %v254_v35  ;;  %v368_v43 = vmax.f32 %v366_v29, %v367_v36  ;;  %v480_v44 = vmax.f32 %v478_v30, %v479_v37 }
 0x19a   :  { %v593_v46 = vrot.slane %v592_v38, 2  ;;  %v706_v48 = vmax.f32 %v704_v32, %v705_v40 }
 0x19b   :  { %v256_v49 = vmul.f32 1.442695, %v255_v42  ;;  %v369_v50 = vsub.f32 %v890_v7, %v368_v43  ;;  %v481_v51 = vrot.slane %v480_v44, 1 }
 0x19c   :  { %v594_v52 = vmax.f32 %v592_v38, %v593_v46  ;;  %v707_v53 = vrot.slane %v706_v48, 2 }
 0x19d   :  { %899 = vpow2.f32 %v256_v49  ;;  %v370_v54 = vmul.f32 1.442695, %v369_v50  ;;  %v482_v55 = vmax.f32 %v480_v44, %v481_v51 }
 0x19e   :  { %v595_v56 = vrot.slane %v594_v52, 1  ;;  %v708_v57 = vmax.f32 %v706_v48, %v707_v53 }
 0x19f   :  { %901 = vpow2.f32 %v370_v54  ;;  %v483_v58 = vsub.f32 %v892_v14, %v482_v55 }
 0x1a0   :  { %v596_v59 = vmax.f32 %v594_v52, %v595_v56  ;;  %v709_v60 = vrot.slane %v708_v57, 1 }
 0x1a1   :  { %v484_v61 = vmul.f32 1.442695, %v483_v58 }
 0x1a2   :  { %v597_v62 = vsub.f32 %v894_v19, %v596_v59  ;;  %v710_v63 = vmax.f32 %v708_v57, %v709_v60 }
 0x1a3   :  { %v898_v0 = vpop.eup %897  ;;  %903 = vpow2.f32 %v484_v61 }
 0x1a4   :  { %v598_v1 = vmul.f32 1.442695, %v597_v62  ;;  %v711_v2 = vsub.f32 %v896_v25, %v710_v63  ;;  %v144_v3 = vsel %vm133_vm4, %v898_v0, 0.0 }
 0x1a5   :  { %v145_v4 = vrot.slane %v144_v3, 4 }
 0x1a6   :  { %905 = vpow2.f32 %v598_v1  ;;  %v712_v5 = vmul.f32 1.442695, %v711_v2 }
 0x1a7   :  { %v900_v6 = vpop.eup %899  ;;  %v146_v7 = vadd.f32 %v145_v4, %v144_v3 }
 0x1a8   :  { %907 = vpow2.f32 %v712_v5  ;;  %v258_v8 = vsel %vm133_vm4, %v900_v6, 0.0 }
 0x1a9   :  { %v902_v9 = vpop.eup %901  ;;  %v147_v10 = vrot.slane %v146_v7, 2  ;;  %v259_v11 = vrot.slane %v258_v8, 4 }
 0x1aa   :  { %v372_v12 = vsel %vm133_vm4, %v902_v9, 0.0 }
 0x1ab   :  { %v148_v13 = vadd.f32 %v147_v10, %v146_v7  ;;  %v260_v14 = vadd.f32 %v259_v11, %v258_v8  ;;  %v373_v15 = vrot.slane %v372_v12, 4 }
 0x1ad   :  { %v904_v16 = vpop.eup %903  ;;  %v149_v17 = vrot.slane %v148_v13, 1  ;;  %v261_v18 = vrot.slane %v260_v14, 2  ;;  %v374_v19 = vadd.f32 %v373_v15, %v372_v12 }
 0x1ae   :  { %v486_v20 = vsel %vm133_vm4, %v904_v16, 0.0 }
 0x1af   :  { %v150_v21 = vadd.f32 %v149_v17, %v148_v13  ;;  %v262_v22 = vadd.f32 %v261_v18, %v260_v14  ;;  %v375_v23 = vrot.slane %v374_v19, 2  ;;  %v487_v24 = vrot.slane %v486_v20, 4 }
 0x1b0   :  { %v906_v25 = vpop.eup %905 }
 0x1b1   :  { %909 = vrcp.f32 %v150_v21  ;;  %v263_v26 = vrot.slane %v262_v22, 1  ;;  %v376_v27 = vadd.f32 %v375_v23, %v374_v19  ;;  %v488_v29 = vadd.f32 %v487_v24, %v486_v20 }
 0x1b2   :  { %v908_v30 = vpop.eup %907  ;;  %v600_v31 = vsel %vm133_vm4, %v906_v25, 0.0 }
 0x1b3   :  { %v264_v32 = vadd.f32 %v263_v26, %v262_v22  ;;  %v377_v34 = vrot.slane %v376_v27, 1  ;;  %v489_v35 = vrot.slane %v488_v29, 2  ;;  %v601_v36 = vrot.slane %v600_v31, 4 }
 0x1b4   :  { %v714_v37 = vsel %vm133_vm4, %v908_v30, 0.0 }
 0x1b5   :  { %911 = vrcp.f32 %v264_v32  ;;  %v378_v38 = vadd.f32 %v377_v34, %v376_v27  ;;  %v490_v40 = vadd.f32 %v489_v35, %v488_v29  ;;  %v602_v42 = vadd.f32 %v601_v36, %v600_v31 }
 0x1b6   :  { %v715_v43 = vrot.slane %v714_v37, 4 }
 0x1b7   :  { %913 = vrcp.f32 %v378_v38  ;;  %v491_v44 = vrot.slane %v490_v40, 1  ;;  %v603_v46 = vrot.slane %v602_v42, 2 }
 0x1b8   :  { %v716_v48 = vadd.f32 %v715_v43, %v714_v37 }
 0x1b9   :  { %v492_v49 = vadd.f32 %v491_v44, %v490_v40  ;;  %v604_v50 = vadd.f32 %v603_v46, %v602_v42 }
 0x1ba   :  { %v717_v51 = vrot.slane %v716_v48, 2 }
 0x1bb   :  { %v910_v52 = vpop.eup %909  ;;  %915 = vrcp.f32 %v492_v49  ;;  %v605_v53 = vrot.slane %v604_v50, 1 }
 0x1bc   :  { %v152_v54 = vmul.f32 %v910_v52, %v898_v0  ;;  %v718_v55 = vadd.f32 %v717_v51, %v716_v48 }
 0x1bd   :  { %v606_v56 = vadd.f32 %v605_v53, %v604_v50 }
 0x1be   :  { %155 = vperm.xlu0 %871, %v152_v54   ;;  %v719_v57 = vrot.slane %v718_v55, 1 }
 0x1bf   :  { %v912_v58 = vpop.eup %911  ;;  %917 = vrcp.f32 %v606_v56 }
 0x1c0   :  { %v266_v59 = vmul.f32 %v912_v58, %v900_v6  ;;  %v720_v60 = vadd.f32 %v719_v57, %v718_v55 }
 0x1c1   :  { %v914_v61 = vpop.eup %913 }
 0x1c2   :  { %269 = vperm.xlu1 %872, %v266_v59   ;;  %919 = vrcp.f32 %v720_v60  ;;  %v380_v62 = vmul.f32 %v914_v61, %v902_v9 }
 0x1c5   :  { %v916_v63 = vpop.eup %915 }
 0x1c6   :  { %383 = vperm.xlu1 %872, %v380_v62   ;;  %v494_v1 = vmul.f32 %v916_v63, %v904_v16 }
 0x1c9   :  { %v918_v2 = vpop.eup %917 }
 0x1ca   :  { %497 = vperm.xlu1 %872, %v494_v1   ;;  %v608_v3 = vmul.f32 %v918_v2, %v906_v25 }
 0x1cc   :  { %v920_v4 = vpop.eup %919 }
 0x1cd   :  { %v722_v0 = vmul.f32 %v920_v4, %v908_v30 }
 0x1ce   :  { %611 = vperm.xlu1 %872, %v608_v3  }
 0x1d2   :  { %725 = vperm.xlu1 %872, %v722_v0  }
 0x23d   :  { %v156_v5 = vpop.permute.xlu0 %155 }
 0x23e   :  { %v158_v7 = vmul.f32 %v1009_v28, %v156_v5 }
 0x240   :  { %v159_v10 = vsel %vm121_vm3, %v158_v7, 0.0 }
 0x241   :  { %v270_v8 = vpop.permute.xlu1 %269  ;;  %v160_v14 = vrot.slane %v159_v10, 4 }
 0x242   :  { %v272_v6 = vmul.f32 %v1012_v33, %v270_v8 }
 0x243   :  { %v161_v28 = vadd.f32 %v160_v14, %v159_v10 }
 0x244   :  { %v273_v9 = vsel %vm121_vm3, %v272_v6, 0.0 }
 0x245   :  { %v274_v11 = vrot.slane %v273_v9, 4  ;;  %v384_v12 = vpop.permute.xlu1 %383  ;;  %v162_v26 = vrot.slane %v161_v28, 2 }
 0x246   :  { %v386_v13 = vmul.f32 %v1017_v39, %v384_v12 }
 0x247   :  { %v275_v16 = vadd.f32 %v274_v11, %v273_v9  ;;  %v163_v35 = vadd.f32 %v162_v26, %v161_v28 }
 0x248   :  { %v387_v15 = vsel %vm121_vm3, %v386_v13, 0.0 }
 0x249   :  { %v388_v17 = vrot.slane %v387_v15, 4  ;;  %v498_v18 = vpop.permute.xlu1 %497  ;;  %v276_v21 = vrot.slane %v275_v16, 2  ;;  %v164_v44 = vrot.slane %v163_v35, 1 }
 0x24a   :  { %v500_v19 = vmul.f32 %v1020_v41, %v498_v18 }
 0x24b   :  { %v389_v20 = vadd.f32 %v388_v17, %v387_v15  ;;  %v277_v29 = vadd.f32 %v276_v21, %v275_v16  ;;  %v165_v54 = vadd.f32 %v164_v44, %v163_v35 }
 0x24c   :  { %v501_v33 = vsel %vm121_vm3, %v500_v19, 0.0 }
 0x24d   :  { %v502_v22 = vrot.slane %v501_v33, 4  ;;  %v612_v23 = vpop.permute.xlu1 %611  ;;  %v390_v24 = vrot.slane %v389_v20, 2  ;;  %v278_v40 = vrot.slane %v277_v29, 1 }
 0x24e   :  { %v614_v25 = vmul.f32 %v1025_v45, %v612_v23 }
 0x24f   :  { %v503_v39 = vadd.f32 %v502_v22, %v501_v33  ;;  %v391_v34 = vadd.f32 %v390_v24, %v389_v20  ;;  %v279_v50 = vadd.f32 %v278_v40, %v277_v29 }
 0x250   :  { %v615_v27 = vsel %vm121_vm3, %v614_v25, 0.0 }
 0x251   :  { %v504_v30 = vrot.slane %v503_v39, 2  ;;  %v616_v31 = vrot.slane %v615_v27, 4  ;;  %v726_v32 = vpop.permute.xlu1 %725  ;;  %v392_v45 = vrot.slane %v391_v34, 1  ;;  %v737_v57 = vsel %vm736_vm5, %v165_v54, %v279_v50 }
 0x252   :  { %v728_v41 = vmul.f32 %v1028_v47, %v726_v32 }
 0x253   :  { %v505_v36 = vadd.f32 %v504_v30, %v503_v39  ;;  %v617_v37 = vadd.f32 %v616_v31, %v615_v27  ;;  %v393_v53 = vadd.f32 %v392_v45, %v391_v34 }
 0x254   :  { %v729_v38 = vsel %vm121_vm3, %v728_v41, 0.0 }
 0x255   :  { %v618_v42 = vrot.slane %v617_v37, 2  ;;  %v730_v43 = vrot.slane %v729_v38, 4  ;;  %v506_v46 = vrot.slane %v505_v36, 1  ;;  %v739_v59 = vsel %vm738_vm6, %v737_v57, %v393_v53 }
 0x257   :  { %v619_v48 = vadd.f32 %v618_v42, %v617_v37  ;;  %v731_v49 = vadd.f32 %v730_v43, %v729_v38  ;;  %v507_v47 = vadd.f32 %v506_v46, %v505_v36 }
 0x259   :  { %v620_v51 = vrot.slane %v619_v48, 1  ;;  %v732_v52 = vrot.slane %v731_v49, 2  ;;  %v741_v60 = vsel %vm740_vm7, %v739_v59, %v507_v47 }
 0x25b   :  { %v733_v55 = vadd.f32 %v732_v52, %v731_v49  ;;  %v621_v56 = vadd.f32 %v620_v51, %v619_v48 }
 0x25d   :  { %v734_v58 = vrot.slane %v733_v55, 1  ;;  %v742_v62 = vsel %vm39_vm1, %v741_v60, %v621_v56 }
 0x25f   :  { %v735_v61 = vadd.f32 %v734_v58, %v733_v55 }
 0x261   :  { %v744_v63 = vsel %vm743_vm8, %v742_v62, %v735_v61 }
 0x262   :  { %746 = vst.msk [vmem:[%s1066_s5] sm:$0x3f] %vm745_vm9, %v744_v63 }

// kernel: tam_forward.5
= control target key start
LH: loop header
LB: loop body
LE: loop exit
PB: predicated region body
PF: predicated region fallthrough
CT: control target
= control target key end

     0   :  { %vm38_vm0 = vcmask 1043456   ;;  %v909_v0 = vmov 0.0|0.0   ;;  %vm910_vm1 = vmmov 1   ;;  %vm911_vm3 = vmmov 0   ;;  %s1058_s1 = inlined_call_operand.vmem [shape: f32[12,32], index: 1, kind: input, shape index: {}]   ;;  %s1059_s0 = inlined_call_operand.vmem [shape: f32[6,5,12], index: 0, kind: input, shape index: {}]   ;;  %s1060_s4 = inlined_call_operand.<no memory space> [shape: f32[1,1], index: 4, kind: input, shape index: {}]   ;;  %s1061_s2 = inlined_call_operand.vmem [shape: f32[1,32], index: 2, kind: input, shape index: {}]   ;;  %s1062_s3 = inlined_call_operand.vmem [shape: f32[1,32], index: 3, kind: input, shape index: {}]   ;;  %s1063_s5 = inlined_call_operand.vmem [shape: f32[6,32], index: 5, kind: output, shape index: {}]  }
   0x1   :  { %830 = vmatprep.subr.bf16.mxu0 %v909_v0  ;;  %v22_v1 = vld [vmem:[%s1058_s1] sm:$0xff]  ;;  %v23_v2 = vld [vmem:[%s1058_s1 + $0x8] sm:$0xf]  ;;  %vm951_vm2 = vmpackc.low %vm38_vm0, %vm910_vm1  ;;  %834 = vmatprep.subr.bf16.mxu1 %v909_v0  ;;  %v912_v5 = vmov 0.0   ;;  %vm34_vm4 = vcmask 97280   ;;  %v10_v12 = vstv %s1060_s4  ;;  %vm120_vm5 = vcmask 258048  }
   0x2   :  { %v831_v4 = vpack.c.bf16 %v23_v2, %v22_v1  ;;  %792 = vmatprep.mubr.msk.f32.mxu0 %vm911_vm3, %v912_v5  ;;  %799 = vmatprep.mubr.msk.f32.mxu1 %vm911_vm3, %v912_v5  ;;  %v27_v6 = vld [vmem:[%s1059_s0] sm:$0x1f]  ;;  %v755_v7 = vld [vmem:[%s1059_s0 + $0x8] sm:$0x1f]  ;;  %v758_v8 = vld [vmem:[%s1059_s0 + $0x10] sm:$0x1f] }
   0x3   :  { %v761_v9 = vld [vmem:[%s1059_s0 + $0x18] sm:$0x1f]  ;;  %v764_v10 = vld [vmem:[%s1059_s0 + $0x20] sm:$0x1f]  ;;  %v767_v11 = vld [vmem:[%s1059_s0 + $0x28] sm:$0x1f] }
   0x4   :  { %833 = vmatpush3.bf16.msk.msra.mxu0 %vm951_vm2, %v831_v4  ;;  %837 = vmatpush3.bf16.msk.msra.mxu1 %vm951_vm2, %v831_v4  ;;  %11 = vst [vmem:[#allocation2] sm:$0x1] %v10_v12  ;;  %v750_v13 = vld [vmem:[%s1061_s2] ss:$0 sm:$0xff]  ;;  %v913_v51 = vmov 0   ;;  %vm132_vm6 = vcmask 4096  }
   0x5   :  { %838 = vmatprep.subr.bf16.mxu0 %v909_v0  ;;  %842 = vmatprep.subr.bf16.mxu1 %v909_v0  ;;  %v753_v31 = vld [vmem:[%s1062_s3] ss:$0 sm:$0xff]  ;;  %vm735_vm7 = vcmask 1040384   ;;  %vm737_vm8 = vcmask 1041408   ;;  %vm739_vm9 = vcmask 1042432   ;;  %vm742_vm10 = vcmask 1044480  }
   0x6   :  { %859 = vset.pattern.permute.xlu0 %v913_v51  ;;  %860 = vset.pattern.permute.xlu1 %v913_v51  ;;  %vm744_vm11 = vcmask 259072  }
   0x7   :  { %793 = vmatmul.mubr.msk.f32.vlgmr.msra.gmra.mrb[0].mxu0 %vm34_vm4, %v27_v6  ;;  %800 = vmatmul.mubr.msk.f32.vlgmr.msra.gmra.mrb[0].mxu1 %vm34_vm4, %v755_v7 }
   0x8   :  { %841 = vmatpush3.bf16.msk.msra.mxu0 %vm951_vm2, %v831_v4  ;;  %806 = vmatprep.mubr.msk.f32.mxu0 %vm911_vm3, %v912_v5 }
   0x9   :  { %846 = vmatprep.subr.bf16.mxu0 %v909_v0  ;;  %845 = vmatpush3.bf16.msk.msra.mxu1 %vm951_vm2, %v831_v4 }
   0xa   :  { %813 = vmatprep.mubr.msk.f32.mxu1 %vm911_vm3, %v912_v5  ;;  %850 = vmatprep.subr.bf16.mxu1 %v909_v0 }
   0xb   :  { %807 = vmatmul.mubr.msk.f32.vlgmr.msra.gmra.mrb[2].mxu0 %vm34_vm4, %v758_v8  ;;  %v754_v52 = vld [vmem:[#allocation2] ss:$0 sm:$0xff] }
   0xc   :  { %849 = vmatpush3.bf16.msk.msra.mxu0 %vm951_vm2, %v831_v4  ;;  %820 = vmatprep.mubr.msk.f32.mxu0 %vm911_vm3, %v912_v5 }
   0xd   :  { %814 = vmatmul.mubr.msk.f32.vlgmr.msra.gmra.mrb[2].mxu1 %vm34_vm4, %v761_v9 }
   0xe   :  { %853 = vmatpush3.bf16.msk.msra.mxu1 %vm951_vm2, %v831_v4  ;;  %827 = vmatprep.mubr.msk.f32.mxu1 %vm911_vm3, %v912_v5 }
   0xf   :  { %821 = vmatmul.mubr.msk.f32.vlgmr.msra.gmra.mrb[4].mxu0 %vm34_vm4, %v764_v10 }
  0x11   :  { %828 = vmatmul.mubr.msk.f32.vlgmr.msra.gmra.mrb[4].mxu1 %vm34_vm4, %v767_v11 }
  0xda   :  { %v108_v14 = vpop.f32.mrb[0].mxu0  ;;  %v236_v15 = vpop.f32.mrb[0].mxu1 }
  0xdb   :  { %v109_v16 = vadd.f32 %v750_v13, %v108_v14  ;;  %v794_v17 = vpop.f32.mrb[1].mxu0  ;;  %v237_v18 = vadd.f32 %v750_v13, %v236_v15  ;;  %v801_v19 = vpop.f32.mrb[1].mxu1 }
  0xdd   :  { %861 = vtanh.f32 %v109_v16 }
  0xde   :  { %863 = vtanh.f32 %v237_v18  ;;  %v350_v20 = vpop.f32.mrb[2].mxu0 }
  0xdf   :  { %v351_v21 = vadd.f32 %v750_v13, %v350_v20  ;;  %v808_v22 = vpop.f32.mrb[3].mxu0 }
  0xe0   :  { %v464_v23 = vpop.f32.mrb[2].mxu1 }
  0xe1   :  { %865 = vtanh.f32 %v351_v21  ;;  %v465_v24 = vadd.f32 %v750_v13, %v464_v23  ;;  %v815_v25 = vpop.f32.mrb[3].mxu1 }
  0xe2   :  { %v578_v26 = vpop.f32.mrb[4].mxu0 }
  0xe3   :  { %867 = vtanh.f32 %v465_v24  ;;  %v579_v27 = vadd.f32 %v750_v13, %v578_v26  ;;  %v822_v28 = vpop.f32.mrb[5].mxu0 }
  0xe4   :  { %v692_v29 = vpop.f32.mrb[4].mxu1 }
  0xe5   :  { %869 = vtanh.f32 %v579_v27  ;;  %v693_v30 = vadd.f32 %v750_v13, %v692_v29  ;;  %v829_v32 = vpop.f32.mrb[5].mxu1 }
  0xe7   :  { %v1006_v33 = vpop.eup %861  ;;  %871 = vtanh.f32 %v693_v30 }
  0xe8   :  { %v1008_v34 = vpop.eup %863  ;;  %v119_v35 = vmul.f32 %v1006_v33, %v753_v31 }
  0xe9   :  { %v241_v36 = vmul.f32 %v1008_v34, %v753_v31 }
  0xea   :  { %v121_v37 = vsel %vm120_vm5, %v119_v35, 0.0 }
  0xeb   :  { %v1013_v38 = vpop.eup %865  ;;  %122 = vadd.xlane.f32.xlu0 %v121_v37  ;;  %v242_v39 = vsel %vm120_vm5, %v241_v36, 0.0 }
  0xec   :  { %v355_v40 = vmul.f32 %v1013_v38, %v753_v31 }
  0xed   :  { %v1017_v41 = vpop.eup %867 }
  0xee   :  { %v356_v42 = vsel %vm120_vm5, %v355_v40, 0.0  ;;  %v469_v43 = vmul.f32 %v1017_v41, %v753_v31 }
  0xef   :  { %v1021_v44 = vpop.eup %869  ;;  %243 = vadd.xlane.f32.xlu0 %v242_v39  ;;  %357 = vadd.xlane.f32.xlu1 %v356_v42 }
  0xf0   :  { %v470_v45 = vsel %vm120_vm5, %v469_v43, 0.0  ;;  %v583_v46 = vmul.f32 %v1021_v44, %v753_v31 }
  0xf1   :  { %v1025_v47 = vpop.eup %871 }
  0xf2   :  { %v584_v48 = vsel %vm120_vm5, %v583_v46, 0.0  ;;  %v697_v49 = vmul.f32 %v1025_v47, %v753_v31 }
  0xf3   :  { %471 = vadd.xlane.f32.xlu1 %v470_v45  ;;  %585 = vadd.xlane.f32.xlu0 %v584_v48 }
  0xf4   :  { %v698_v50 = vsel %vm120_vm5, %v697_v49, 0.0 }
  0xf7   :  { %699 = vadd.xlane.f32.xlu1 %v698_v50 }
 0x178   :  { %v123_v53 = vpop.xlane.xlu0 %122 }
 0x179   :  { %v130_v54 = vadd.f32 %v754_v52, %v123_v53 }
 0x17b   :  { %873 = vtanh.f32 %v130_v54 }
 0x17c   :  { %v244_v55 = vpop.xlane.xlu0 %243  ;;  %v358_v56 = vpop.xlane.xlu1 %357 }
 0x17d   :  { %v245_v57 = vadd.f32 %v754_v52, %v244_v55  ;;  %v359_v58 = vadd.f32 %v754_v52, %v358_v56 }
 0x17f   :  { %875 = vtanh.f32 %v245_v57 }
 0x180   :  { %877 = vtanh.f32 %v359_v58  ;;  %v472_v59 = vpop.xlane.xlu1 %471  ;;  %v586_v60 = vpop.xlane.xlu0 %585 }
 0x181   :  { %v473_v61 = vadd.f32 %v754_v52, %v472_v59  ;;  %v587_v62 = vadd.f32 %v754_v52, %v586_v60 }
 0x183   :  { %879 = vtanh.f32 %v473_v61 }
 0x184   :  { %881 = vtanh.f32 %v587_v62  ;;  %v700_v63 = vpop.xlane.xlu1 %699 }
 0x185   :  { %v874_v0 = vpop.eup %873  ;;  %v701_v1 = vadd.f32 %v754_v52, %v700_v63 }
 0x186   :  { %v133_v2 = vsel %vm132_vm6, %v874_v0, -inf }
 0x187   :  { %v134_v3 = vrot.slane %v133_v2, 4  ;;  %883 = vtanh.f32 %v701_v1 }
 0x189   :  { %v876_v4 = vpop.eup %875  ;;  %v135_v5 = vmax.f32 %v133_v2, %v134_v3 }
 0x18a   :  { %v878_v6 = vpop.eup %877  ;;  %v247_v7 = vsel %vm132_vm6, %v876_v4, -inf }
 0x18b   :  { %v136_v8 = vrot.slane %v135_v5, 2  ;;  %v248_v9 = vrot.slane %v247_v7, 4  ;;  %v361_v10 = vsel %vm132_vm6, %v878_v6, -inf }
 0x18c   :  { %v362_v11 = vrot.slane %v361_v10, 4 }
 0x18d   :  { %v880_v12 = vpop.eup %879  ;;  %v137_v13 = vmax.f32 %v135_v5, %v136_v8  ;;  %v249_v14 = vmax.f32 %v247_v7, %v248_v9 }
 0x18e   :  { %v882_v15 = vpop.eup %881  ;;  %v363_v16 = vmax.f32 %v361_v10, %v362_v11  ;;  %v475_v17 = vsel %vm132_vm6, %v880_v12, -inf }
 0x18f   :  { %v138_v18 = vrot.slane %v137_v13, 1  ;;  %v250_v19 = vrot.slane %v249_v14, 2  ;;  %v476_v20 = vrot.slane %v475_v17, 4  ;;  %v589_v21 = vsel %vm132_vm6, %v882_v15, -inf }
 0x190   :  { %v364_v22 = vrot.slane %v363_v16, 2  ;;  %v590_v23 = vrot.slane %v589_v21, 4 }
 0x191   :  { %v884_v24 = vpop.eup %883  ;;  %v139_v25 = vmax.f32 %v137_v13, %v138_v18  ;;  %v251_v26 = vmax.f32 %v249_v14, %v250_v19  ;;  %v477_v27 = vmax.f32 %v475_v17, %v476_v20 }
 0x192   :  { %v365_v28 = vmax.f32 %v363_v16, %v364_v22  ;;  %v591_v29 = vmax.f32 %v589_v21, %v590_v23  ;;  %v703_v30 = vsel %vm132_vm6, %v884_v24, -inf }
 0x193   :  { %v140_v31 = vsub.f32 %v874_v0, %v139_v25  ;;  %v252_v32 = vrot.slane %v251_v26, 1  ;;  %v478_v35 = vrot.slane %v477_v27, 2  ;;  %v704_v36 = vrot.slane %v703_v30, 4 }
 0x194   :  { %v366_v37 = vrot.slane %v365_v28, 1  ;;  %v592_v39 = vrot.slane %v591_v29, 2 }
 0x195   :  { %v141_v40 = vmul.f32 1.442695, %v140_v31  ;;  %v253_v42 = vmax.f32 %v251_v26, %v252_v32  ;;  %v479_v43 = vmax.f32 %v477_v27, %v478_v35  ;;  %v705_v45 = vmax.f32 %v703_v30, %v704_v36 }
 0x196   :  { %v367_v46 = vmax.f32 %v365_v28, %v366_v37  ;;  %v593_v48 = vmax.f32 %v591_v29, %v592_v39 }
 0x197   :  { %885 = vpow2.f32 %v141_v40  ;;  %v254_v49 = vsub.f32 %v876_v4, %v253_v42  ;;  %v480_v50 = vrot.slane %v479_v43, 1  ;;  %v706_v51 = vrot.slane %v705_v45, 2 }
 0x198   :  { %v368_v52 = vsub.f32 %v878_v6, %v367_v46  ;;  %v594_v53 = vrot.slane %v593_v48, 1 }
 0x199   :  { %v255_v54 = vmul.f32 1.442695, %v254_v49  ;;  %v481_v55 = vmax.f32 %v479_v43, %v480_v50  ;;  %v707_v56 = vmax.f32 %v705_v45, %v706_v51 }
 0x19a   :  { %v369_v57 = vmul.f32 1.442695, %v368_v52  ;;  %v595_v58 = vmax.f32 %v593_v48, %v594_v53 }
 0x19b   :  { %887 = vpow2.f32 %v255_v54  ;;  %v482_v59 = vsub.f32 %v880_v12, %v481_v55  ;;  %v708_v60 = vrot.slane %v707_v56, 1 }
 0x19c   :  { %889 = vpow2.f32 %v369_v57  ;;  %v596_v61 = vsub.f32 %v882_v15, %v595_v58 }
 0x19d   :  { %v483_v62 = vmul.f32 1.442695, %v482_v59  ;;  %v709_v63 = vmax.f32 %v707_v56, %v708_v60 }
 0x19e   :  { %v597_v0 = vmul.f32 1.442695, %v596_v61 }
 0x19f   :  { %891 = vpow2.f32 %v483_v62  ;;  %v710_v1 = vsub.f32 %v884_v24, %v709_v63 }
 0x1a0   :  { %893 = vpow2.f32 %v597_v0 }
 0x1a1   :  { %v886_v2 = vpop.eup %885  ;;  %v711_v3 = vmul.f32 1.442695, %v710_v1 }
 0x1a2   :  { %v143_v4 = vsel %vm132_vm6, %v886_v2, 0.0 }
 0x1a3   :  { %895 = vpow2.f32 %v711_v3  ;;  %v144_v5 = vrot.slane %v143_v4, 4 }
 0x1a5   :  { %v888_v6 = vpop.eup %887  ;;  %v145_v7 = vadd.f32 %v144_v5, %v143_v4 }
 0x1a6   :  { %v890_v8 = vpop.eup %889  ;;  %v257_v9 = vsel %vm132_vm6, %v888_v6, 0.0 }
 0x1a7   :  { %v146_v10 = vrot.slane %v145_v7, 2  ;;  %v258_v11 = vrot.slane %v257_v9, 4  ;;  %v371_v12 = vsel %vm132_vm6, %v890_v8, 0.0 }
 0x1a8   :  { %v372_v13 = vrot.slane %v371_v12, 4 }
 0x1a9   :  { %v892_v14 = vpop.eup %891  ;;  %v147_v15 = vadd.f32 %v146_v10, %v145_v7  ;;  %v259_v16 = vadd.f32 %v258_v11, %v257_v9 }
 0x1aa   :  { %v894_v17 = vpop.eup %893  ;;  %v373_v18 = vadd.f32 %v372_v13, %v371_v12  ;;  %v485_v19 = vsel %vm132_vm6, %v892_v14, 0.0 }
 0x1ab   :  { %v148_v20 = vrot.slane %v147_v15, 1  ;;  %v260_v21 = vrot.slane %v259_v16, 2  ;;  %v486_v22 = vrot.slane %v485_v19, 4  ;;  %v599_v23 = vsel %vm132_vm6, %v894_v17, 0.0 }
 0x1ac   :  { %v374_v24 = vrot.slane %v373_v18, 2  ;;  %v600_v25 = vrot.slane %v599_v23, 4 }
 0x1ad   :  { %v896_v26 = vpop.eup %895  ;;  %v149_v27 = vadd.f32 %v148_v20, %v147_v15  ;;  %v261_v28 = vadd.f32 %v260_v21, %v259_v16  ;;  %v487_v29 = vadd.f32 %v486_v22, %v485_v19 }
 0x1ae   :  { %v375_v30 = vadd.f32 %v374_v24, %v373_v18  ;;  %v601_v31 = vadd.f32 %v600_v25, %v599_v23  ;;  %v713_v32 = vsel %vm132_vm6, %v896_v26, 0.0 }
 0x1af   :  { %897 = vrcp.f32 %v149_v27  ;;  %v262_v35 = vrot.slane %v261_v28, 1  ;;  %v488_v36 = vrot.slane %v487_v29, 2  ;;  %v714_v37 = vrot.slane %v713_v32, 4 }
 0x1b0   :  { %v376_v39 = vrot.slane %v375_v30, 1  ;;  %v602_v40 = vrot.slane %v601_v31, 2 }
 0x1b1   :  { %v263_v42 = vadd.f32 %v262_v35, %v261_v28  ;;  %v489_v43 = vadd.f32 %v488_v36, %v487_v29  ;;  %v715_v45 = vadd.f32 %v714_v37, %v713_v32 }
 0x1b2   :  { %v377_v46 = vadd.f32 %v376_v39, %v375_v30  ;;  %v603_v48 = vadd.f32 %v602_v40, %v601_v31 }
 0x1b3   :  { %899 = vrcp.f32 %v263_v42  ;;  %v490_v49 = vrot.slane %v489_v43, 1  ;;  %v716_v50 = vrot.slane %v715_v45, 2 }
 0x1b4   :  { %901 = vrcp.f32 %v377_v46  ;;  %v604_v52 = vrot.slane %v603_v48, 1 }
 0x1b5   :  { %v491_v51 = vadd.f32 %v490_v49, %v489_v43  ;;  %v717_v53 = vadd.f32 %v716_v50, %v715_v45 }
 0x1b6   :  { %v605_v55 = vadd.f32 %v604_v52, %v603_v48 }
 0x1b7   :  { %903 = vrcp.f32 %v491_v51  ;;  %v718_v56 = vrot.slane %v717_v53, 1 }
 0x1b8   :  { %905 = vrcp.f32 %v605_v55 }
 0x1b9   :  { %v898_v54 = vpop.eup %897  ;;  %v719_v59 = vadd.f32 %v718_v56, %v717_v53 }
 0x1ba   :  { %v151_v57 = vmul.f32 %v898_v54, %v886_v2 }
 0x1bb   :  { %907 = vrcp.f32 %v719_v59 }
 0x1bc   :  { %154 = vperm.xlu0 %859, %v151_v57  }
 0x1bd   :  { %v900_v58 = vpop.eup %899 }
 0x1be   :  { %v265_v60 = vmul.f32 %v900_v58, %v888_v6  ;;  %v902_v61 = vpop.eup %901 }
 0x1bf   :  { %v379_v62 = vmul.f32 %v902_v61, %v890_v8 }
 0x1c0   :  { %268 = vperm.xlu1 %860, %v265_v60  }
 0x1c1   :  { %v904_v63 = vpop.eup %903 }
 0x1c2   :  { %v493_v0 = vmul.f32 %v904_v63, %v892_v14  ;;  %v906_v1 = vpop.eup %905 }
 0x1c3   :  { %v607_v3 = vmul.f32 %v906_v1, %v894_v17 }
 0x1c4   :  { %382 = vperm.xlu1 %860, %v379_v62  }
 0x1c5   :  { %v908_v4 = vpop.eup %907 }
 0x1c6   :  { %v721_v5 = vmul.f32 %v908_v4, %v896_v26 }
 0x1c8   :  { %496 = vperm.xlu1 %860, %v493_v0  }
 0x1cc   :  { %610 = vperm.xlu1 %860, %v607_v3  }
 0x1d0   :  { %724 = vperm.xlu1 %860, %v721_v5  }
 0x23b   :  { %v155_v2 = vpop.permute.xlu0 %154 }
 0x23c   :  { %v157_v7 = vmul.f32 %v1006_v33, %v155_v2 }
 0x23e   :  { %v158_v10 = vsel %vm120_vm5, %v157_v7, 0.0 }
 0x23f   :  { %v269_v9 = vpop.permute.xlu1 %268  ;;  %v159_v14 = vrot.slane %v158_v10, 4 }
 0x240   :  { %v271_v6 = vmul.f32 %v1008_v34, %v269_v9 }
 0x241   :  { %v160_v33 = vadd.f32 %v159_v14, %v158_v10 }
 0x242   :  { %v272_v8 = vsel %vm120_vm5, %v271_v6, 0.0 }
 0x243   :  { %v273_v11 = vrot.slane %v272_v8, 4  ;;  %v383_v12 = vpop.permute.xlu1 %382  ;;  %v161_v26 = vrot.slane %v160_v33, 2 }
 0x244   :  { %v385_v13 = vmul.f32 %v1013_v38, %v383_v12 }
 0x245   :  { %v274_v16 = vadd.f32 %v273_v11, %v272_v8  ;;  %v162_v35 = vadd.f32 %v161_v26, %v160_v33 }
 0x246   :  { %v386_v15 = vsel %vm120_vm5, %v385_v13, 0.0 }
 0x247   :  { %v387_v17 = vrot.slane %v386_v15, 4  ;;  %v497_v18 = vpop.permute.xlu1 %496  ;;  %v275_v21 = vrot.slane %v274_v16, 2  ;;  %v163_v45 = vrot.slane %v162_v35, 1 }
 0x248   :  { %v499_v19 = vmul.f32 %v1017_v41, %v497_v18 }
 0x249   :  { %v388_v20 = vadd.f32 %v387_v17, %v386_v15  ;;  %v276_v28 = vadd.f32 %v275_v21, %v274_v16  ;;  %v164_v54 = vadd.f32 %v163_v45, %v162_v35 }
 0x24a   :  { %v500_v34 = vsel %vm120_vm5, %v499_v19, 0.0 }
 0x24b   :  { %v501_v22 = vrot.slane %v500_v34, 4  ;;  %v611_v23 = vpop.permute.xlu1 %610  ;;  %v389_v24 = vrot.slane %v388_v20, 2  ;;  %v277_v40 = vrot.slane %v276_v28, 1 }
 0x24c   :  { %v613_v25 = vmul.f32 %v1021_v44, %v611_v23 }
 0x24d   :  { %v502_v38 = vadd.f32 %v501_v22, %v500_v34  ;;  %v390_v32 = vadd.f32 %v389_v24, %v388_v20  ;;  %v278_v50 = vadd.f32 %v277_v40, %v276_v28 }
 0x24e   :  { %v614_v27 = vsel %vm120_vm5, %v613_v25, 0.0 }
 0x24f   :  { %v503_v29 = vrot.slane %v502_v38, 2  ;;  %v615_v30 = vrot.slane %v614_v27, 4  ;;  %v725_v31 = vpop.permute.xlu1 %724  ;;  %v391_v44 = vrot.slane %v390_v32, 1  ;;  %v736_v57 = vsel %vm735_vm7, %v164_v54, %v278_v50 }
 0x250   :  { %v727_v41 = vmul.f32 %v1025_v47, %v725_v31 }
 0x251   :  { %v504_v36 = vadd.f32 %v503_v29, %v502_v38  ;;  %v616_v37 = vadd.f32 %v615_v30, %v614_v27  ;;  %v392_v53 = vadd.f32 %v391_v44, %v390_v32 }
 0x252   :  { %v728_v39 = vsel %vm120_vm5, %v727_v41, 0.0 }
 0x253   :  { %v617_v42 = vrot.slane %v616_v37, 2  ;;  %v729_v43 = vrot.slane %v728_v39, 4  ;;  %v505_v46 = vrot.slane %v504_v36, 1  ;;  %v738_v59 = vsel %vm737_vm8, %v736_v57, %v392_v53 }
 0x255   :  { %v618_v48 = vadd.f32 %v617_v42, %v616_v37  ;;  %v730_v49 = vadd.f32 %v729_v43, %v728_v39  ;;  %v506_v47 = vadd.f32 %v505_v46, %v504_v36 }
 0x257   :  { %v619_v51 = vrot.slane %v618_v48, 1  ;;  %v731_v52 = vrot.slane %v730_v49, 2  ;;  %v740_v60 = vsel %vm739_vm9, %v738_v59, %v506_v47 }
 0x259   :  { %v732_v55 = vadd.f32 %v731_v52, %v730_v49  ;;  %v620_v56 = vadd.f32 %v619_v51, %v618_v48 }
 0x25b   :  { %v733_v58 = vrot.slane %v732_v55, 1  ;;  %v741_v62 = vsel %vm38_vm0, %v740_v60, %v620_v56 }
 0x25d   :  { %v734_v61 = vadd.f32 %v733_v58, %v732_v55 }
 0x25f   :  { %v743_v63 = vsel %vm742_vm10, %v741_v62, %v734_v61 }
 0x260   :  { %745 = vst.msk [vmem:[%s1063_s5] sm:$0x3f] %vm744_vm11, %v743_v63 }

// kernel: tam_forward.7
= control target key start
LH: loop header
LB: loop body
LE: loop exit
PB: predicated region body
PF: predicated region fallthrough
CT: control target
= control target key end

     0   :  { %v2537_v0 = vmov 0.0|0.0   ;;  %vm2538_vm0 = vmmov 0   ;;  %v2539_v4 = vmov 0.0   ;;  %vm47_vm1 = vcmask 785408   ;;  %s2540_s23 = smov 96   ;;  %s2542_s26 = smov 32   ;;  %s3125_s1 = inlined_call_operand.vmem [shape: f32[96,128], index: 1, kind: input, shape index: {}]   ;;  %s3126_s0 = inlined_call_operand.vmem [shape: f32[6,1,96], index: 0, kind: input, shape index: {}]   ;;  %s3127_s2 = inlined_call_operand.vmem [shape: f32[32,128], index: 2, kind: input, shape index: {}]   ;;  %s3128_s3 = inlined_call_operand.vmem [shape: f32[1,128], index: 3, kind: input, shape index: {}]   ;;  %s3129_s4 = inlined_call_operand.vmem [shape: f32[6,6], index: 4, kind: input, shape index: {}]   ;;  %s3130_s5 = inlined_call_operand.vmem [shape: f32[6,6], index: 5, kind: input, shape index: {}]   ;;  %s3131_s6 = inlined_call_operand.vmem [shape: f32[290,5], index: 6, kind: input, shape index: {}]   ;;  %s3132_s7 = inlined_call_operand.vmem [shape: f32[1,5], index: 7, kind: input, shape index: {}]   ;;  %s3133_s8 = inlined_call_operand.vmem [shape: f32[6,5], index: 8, kind: output, shape index: {}]  }
   0x1   :  { %2249 = vmatprep.subr.bf16.mxu1 %v2537_v0  ;;  %v29_v1 = vld [vmem:[%s3125_s1] sm:$0xff]  ;;  %v30_v2 = vld [vmem:[%s3125_s1 + $0x8] sm:$0xff]  ;;  %v31_v3 = vld [vmem:[%s3125_s1 + $0x10] sm:$0xff]  ;;  %2031 = vmatprep.mubr.msk.f32.mxu1 %vm2538_vm0, %v2539_v4  ;;  %s2543_s29 = smov 80   ;;  %vm628_vm2 = vcmask 130048   ;;  %vm496_vm3 = vcmask 261120  }
   0x2   :  { %v2603_v5 = vpack.c.bf16 %v30_v2, %v29_v1  ;;  %v32_v6 = vld [vmem:[%s3125_s1 + $0x18] sm:$0xff]  ;;  %2231 = vmatprep.subr.bf16.mxu0 %v2537_v0  ;;  %2004 = vmatprep.mubr.msk.f32.mxu0 %vm2538_vm0, %v2539_v4  ;;  %v33_v8 = vld [vmem:[%s3125_s1 + $0x20] sm:$0xff]  ;;  %v34_v9 = vld [vmem:[%s3125_s1 + $0x28] sm:$0xff]  ;;  %vm1310_vm4 = vcmask 1040384   ;;  %vm1312_vm5 = vcmask 1041408   ;;  %vm1314_vm6 = vcmask 1042432  }
   0x3   :  { %v2612_v7 = vpack.c.bf16 %v32_v6, %v31_v3  ;;  %v2624_v10 = vpack.c.bf16 %v34_v9, %v33_v8  ;;  %v35_v11 = vld [vmem:[%s3125_s1 + $0x30] sm:$0xff]  ;;  %v36_v12 = vld [vmem:[%s3125_s1 + $0x38] sm:$0xff]  ;;  %v37_v14 = vld [vmem:[%s3125_s1 + $0x40] sm:$0xff]  ;;  %vm1316_vm7 = vcmask 1043456   ;;  %vm1318_vm8 = vcmask 1044480   ;;  %s2545_s27 = smov 33  }
   0x4   :  { %2251 = vmatpush3.bf16.msra.mxu1 %v2603_v5  ;;  %2233 = vmatpush3.bf16.msra.mxu0 %v2603_v5  ;;  %v2636_v13 = vpack.c.bf16 %v36_v12, %v35_v11  ;;  %v38_v15 = vld [vmem:[%s3125_s1 + $0x48] sm:$0xff]  ;;  %v39_v17 = vld [vmem:[%s3125_s1 + $0x50] sm:$0xff]  ;;  %v40_v18 = vld [vmem:[%s3125_s1 + $0x58] sm:$0xff]  ;;  %vm1325_vm9 = vcmask 1045504   ;;  %vm1321_vm10 = vcmask 48128   ;;  %vm1475_vm11 = vcmask 259072  }
   0x5   :  { %2252 = vmatprep.subr.bf16.mxu1 %v2537_v0  ;;  %2234 = vmatprep.subr.bf16.mxu0 %v2537_v0  ;;  %v2648_v16 = vpack.c.bf16 %v38_v15, %v37_v14  ;;  %v2660_v19 = vpack.c.bf16 %v40_v18, %v39_v17  ;;  %v1793_v20 = vld [vmem:[%s3126_s0 + $0x1] sm:$0x1]  ;;  %v46_v21 = vld [vmem:[%s3126_s0] sm:$0x1]  ;;  %v1797_v22 = vld [vmem:[%s3126_s0 + $0x3] sm:$0x1] }
   0x6   :  { %v41_v23 = vld [vmem:[%s3127_s2] sm:$0xff]  ;;  %v42_v24 = vld [vmem:[%s3127_s2 + $0x8] sm:$0xff]  ;;  %v43_v27 = vld [vmem:[%s3127_s2 + $0x10] sm:$0xff] }
   0x7   :  { %v1801_v25 = vld [vmem:[%s3126_s0 + $0x5] sm:$0x1]  ;;  %v2731_v26 = vpack.c.bf16 %v42_v24, %v41_v23  ;;  %v44_v28 = vld [vmem:[%s3127_s2 + $0x18] sm:$0xff]  ;;  %v2763_v38 = vld [vmem:[%s3128_s3] sm:$0x1]  ;;  %s2541_s3 = smov 16  }
   0x8   :  { %2254 = vmatpush3.bf16.msra.mxu1 %v2612_v7  ;;  %2236 = vmatpush3.bf16.msra.mxu0 %v2612_v7  ;;  %v2742_v29 = vpack.c.bf16 %v44_v28, %v43_v27  ;;  %v1795_v2 = vld [vmem:[%s3126_s0 + $0x2] sm:$0x1] }
   0x9   :  { %2255 = vmatprep.subr.bf16.mxu1 %v2537_v0  ;;  %2237 = vmatprep.subr.bf16.mxu0 %v2537_v0 }
   0xc   :  { %2257 = vmatpush3.bf16.msra.mxu1 %v2624_v10  ;;  %2239 = vmatpush3.bf16.msra.mxu0 %v2624_v10 }
   0xd   :  { %2258 = vmatprep.subr.bf16.mxu1 %v2537_v0  ;;  %2240 = vmatprep.subr.bf16.mxu0 %v2537_v0 }
  0x10   :  { %2260 = vmatpush3.bf16.msra.mxu1 %v2636_v13  ;;  %2242 = vmatpush3.bf16.msra.mxu0 %v2636_v13 }
  0x11   :  { %2261 = vmatprep.subr.bf16.mxu1 %v2537_v0  ;;  %2243 = vmatprep.subr.bf16.mxu0 %v2537_v0 }
  0x14   :  { %2263 = vmatpush3.bf16.msra.mxu1 %v2648_v16  ;;  %2245 = vmatpush3.bf16.msra.mxu0 %v2648_v16 }
  0x15   :  { %2264 = vmatprep.subr.bf16.mxu1 %v2537_v0  ;;  %2246 = vmatprep.subr.bf16.mxu0 %v2537_v0 }
  0x18   :  { %2266 = vmatpush3.bf16.msra.mxu1 %v2660_v19  ;;  %2248 = vmatpush3.bf16.msra.mxu0 %v2660_v19 }
  0x19   :  { %2285 = vmatprep.subr.bf16.mxu1 %v2537_v0  ;;  %2267 = vmatprep.subr.bf16.mxu0 %v2537_v0 }
  0x1b   :  { %2032 = vmatmul.mubr.msk.f32.vlgmr.msra.gmra.mrb[0].mxu1 %vm47_vm1, %v1793_v20  ;;  %2005 = vmatmul.mubr.msk.f32.vlgmr.msra.gmra.mrb[0].mxu0 %vm47_vm1, %v46_v21 }
  0x1c   :  { %2287 = vmatpush3.bf16.msra.mxu1 %v2603_v5  ;;  %2085 = vmatprep.mubr.msk.f32.mxu1 %vm2538_vm0, %v2539_v4 }
  0x1d   :  { %2288 = vmatprep.subr.bf16.mxu1 %v2537_v0  ;;  %2269 = vmatpush3.bf16.msra.mxu0 %v2603_v5 }
  0x1e   :  { %2270 = vmatprep.subr.bf16.mxu0 %v2537_v0  ;;  %2058 = vmatprep.mubr.msk.f32.mxu0 %vm2538_vm0, %v2539_v4 }
  0x20   :  { %2290 = vmatpush3.bf16.msra.mxu1 %v2612_v7 }
  0x21   :  { %2291 = vmatprep.subr.bf16.mxu1 %v2537_v0  ;;  %2272 = vmatpush3.bf16.msra.mxu0 %v2612_v7 }
  0x22   :  { %2273 = vmatprep.subr.bf16.mxu0 %v2537_v0 }
  0x24   :  { %2293 = vmatpush3.bf16.msra.mxu1 %v2624_v10 }
  0x25   :  { %2294 = vmatprep.subr.bf16.mxu1 %v2537_v0  ;;  %2275 = vmatpush3.bf16.msra.mxu0 %v2624_v10 }
  0x26   :  { %2276 = vmatprep.subr.bf16.mxu0 %v2537_v0 }
  0x28   :  { %2296 = vmatpush3.bf16.msra.mxu1 %v2636_v13 }
  0x29   :  { %2297 = vmatprep.subr.bf16.mxu1 %v2537_v0  ;;  %2278 = vmatpush3.bf16.msra.mxu0 %v2636_v13 }
  0x2a   :  { %2279 = vmatprep.subr.bf16.mxu0 %v2537_v0 }
  0x2c   :  { %2299 = vmatpush3.bf16.msra.mxu1 %v2648_v16 }
  0x2d   :  { %2300 = vmatprep.subr.bf16.mxu1 %v2537_v0  ;;  %2281 = vmatpush3.bf16.msra.mxu0 %v2648_v16 }
  0x2e   :  { %2282 = vmatprep.subr.bf16.mxu0 %v2537_v0 }
  0x30   :  { %2302 = vmatpush3.bf16.msra.mxu1 %v2660_v19 }
  0x31   :  { %2321 = vmatprep.subr.bf16.mxu1 %v2537_v0  ;;  %2284 = vmatpush3.bf16.msra.mxu0 %v2660_v19 }
  0x32   :  { %2303 = vmatprep.subr.bf16.mxu0 %v2537_v0 }
  0x33   :  { %2086 = vmatmul.mubr.msk.f32.vlgmr.msra.gmra.mrb[2].mxu1 %vm47_vm1, %v1797_v22 }
  0x34   :  { %2323 = vmatpush3.bf16.msra.mxu1 %v2603_v5  ;;  %2139 = vmatprep.mubr.msk.f32.mxu1 %vm2538_vm0, %v2539_v4 }
  0x35   :  { %2324 = vmatprep.subr.bf16.mxu1 %v2537_v0  ;;  %2059 = vmatmul.mubr.msk.f32.vlgmr.msra.gmra.mrb[2].mxu0 %vm47_vm1, %v1795_v2 }
  0x36   :  { %2305 = vmatpush3.bf16.msra.mxu0 %v2603_v5  ;;  %2112 = vmatprep.mubr.msk.f32.mxu0 %vm2538_vm0, %v2539_v4  ;;  %v1799_v5 = vld [vmem:[%s3126_s0 + $0x4] sm:$0x1] }
  0x37   :  { %2306 = vmatprep.subr.bf16.mxu0 %v2537_v0 }
  0x38   :  { %2326 = vmatpush3.bf16.msra.mxu1 %v2612_v7 }
  0x39   :  { %2327 = vmatprep.subr.bf16.mxu1 %v2537_v0 }
  0x3a   :  { %2308 = vmatpush3.bf16.msra.mxu0 %v2612_v7 }
  0x3b   :  { %2309 = vmatprep.subr.bf16.mxu0 %v2537_v0 }
  0x3c   :  { %2329 = vmatpush3.bf16.msra.mxu1 %v2624_v10 }
  0x3d   :  { %2330 = vmatprep.subr.bf16.mxu1 %v2537_v0 }
  0x3e   :  { %2311 = vmatpush3.bf16.msra.mxu0 %v2624_v10 }
  0x3f   :  { %2312 = vmatprep.subr.bf16.mxu0 %v2537_v0 }
  0x40   :  { %2332 = vmatpush3.bf16.msra.mxu1 %v2636_v13 }
  0x41   :  { %2333 = vmatprep.subr.bf16.mxu1 %v2537_v0 }
  0x42   :  { %2314 = vmatpush3.bf16.msra.mxu0 %v2636_v13 }
  0x43   :  { %2315 = vmatprep.subr.bf16.mxu0 %v2537_v0 }
  0x44   :  { %2335 = vmatpush3.bf16.msra.mxu1 %v2648_v16 }
  0x45   :  { %2336 = vmatprep.subr.bf16.mxu1 %v2537_v0 }
  0x46   :  { %2317 = vmatpush3.bf16.msra.mxu0 %v2648_v16 }
  0x47   :  { %2318 = vmatprep.subr.bf16.mxu0 %v2537_v0 }
  0x48   :  { %2338 = vmatpush3.bf16.msra.mxu1 %v2660_v19 }
  0x49   :  { %2339 = vmatprep.subr.bf16.mxu1 %v2537_v0 }
  0x4a   :  { %2320 = vmatpush3.bf16.msra.mxu0 %v2660_v19 }
  0x4b   :  { %2140 = vmatmul.mubr.msk.f32.vlgmr.msra.gmra.mrb[4].mxu1 %vm47_vm1, %v1801_v25  ;;  %2351 = vmatprep.subr.bf16.mxu0 %v2537_v0 }
  0x4c   :  { %2341 = vmatpush3.bf16.msra.mxu1 %v2731_v26  ;;  %2150 = vmatprep.mubr.msk.f32.mxu1 %vm2538_vm0, %v2539_v4 }
  0x4d   :  { %2342 = vmatprep.subr.bf16.mxu1 %v2537_v0  ;;  %2113 = vmatmul.mubr.msk.f32.vlgmr.msra.gmra.mrb[4].mxu0 %vm47_vm1, %v1799_v5 }
  0x4e   :  { %2353 = vmatpush3.bf16.msra.mxu0 %v2731_v26  ;;  %2172 = vmatprep.mubr.msk.f32.mxu0 %vm2538_vm0, %v2539_v4 }
  0x4f   :  { %2354 = vmatprep.subr.bf16.mxu0 %v2537_v0 }
  0x50   :  { %2344 = vmatpush3.bf16.msra.mxu1 %v2742_v29 }
  0x51   :  { %2345 = vmatprep.subr.bf16.mxu1 %v2537_v0 }
  0x52   :  { %2356 = vmatpush3.bf16.msra.mxu0 %v2742_v29 }
  0x53   :  { %2151 = vmatmul.mubr.f32.vlgmr.msra.gmra.mrb[6].mxu1 %v2539_v4  ;;  %2363 = vmatprep.subr.bf16.mxu0 %v2537_v0 }
  0x54   :  { %2347 = vmatpush3.bf16.msra.mxu1 %v2731_v26  ;;  %2161 = vmatprep.mubr.msk.f32.mxu1 %vm2538_vm0, %v2539_v4 }
  0x55   :  { %2348 = vmatprep.subr.bf16.mxu1 %v2537_v0 }
  0x58   :  { %2350 = vmatpush3.bf16.msra.mxu1 %v2742_v29 }
  0x59   :  { %2357 = vmatprep.subr.bf16.mxu1 %v2537_v0 }
  0xee   :  { %v2756_v30 = vpop.f32.mrb[0].mxu1  ;;  %v117_v31 = vpop.f32.mrb[0].mxu0 }
  0xef   :  { %v2033_v32 = vpop.f32.mrb[1].mxu1  ;;  %v2006_v33 = vpop.f32.mrb[1].mxu0  ;;  %v2766_v39 = vadd.f32 %v117_v31, %v2763_v38  ;;  %v2836_v19 = vadd.f32 %v2756_v30, %v2763_v38 }
 0x106   :  { %v2758_v34 = vpop.f32.mrb[2].mxu1 }
 0x107   :  { %v2087_v35 = vpop.f32.mrb[3].mxu1 }
 0x108   :  { %v2815_v11 = vpop.f32.mrb[2].mxu0 }
 0x109   :  { %v2060_v12 = vpop.f32.mrb[3].mxu0 }
 0x11e   :  { %v492_v36 = vpop.f32.mrb[4].mxu1 }
 0x11f   :  { %v2141_v37 = vpop.f32.mrb[5].mxu1  ;;  %v2769_v41 = vadd.f32 %v492_v36, %v2763_v38 }
 0x120   :  { %v417_v16 = vpop.f32.mrb[4].mxu0 }
 0x121   :  { %v2114_v17 = vpop.f32.mrb[5].mxu0  ;;  %v2832_v18 = vadd.f32 %v417_v16, %v2763_v38 }
 0x126   :  { %v566_v40 = vpop.f32.mrb[6].mxu1 }
 0x127   :  { %v570_v42 = vadd.f32 %v566_v40, %v2766_v39  ;;  %v2152_v43 = vpop.f32.mrb[7].mxu1  ;;  %v571_v44 = vadd.f32 %v566_v40, %v2769_v41 }
 0x129   :  { %2427 = vtanh.f32 %v570_v42  ;;  %v1803_v47 = vmul.f32 -1.442695, %v570_v42  ;;  %v1804_v48 = vmul.f32 -1.442695, %v571_v44 }
 0x12a   :  { %2429 = vtanh.f32 %v571_v44 }
 0x12b   :  { %2431 = vpow2.f32 %v1803_v47 }
 0x12c   :  { %2433 = vpow2.f32 %v1804_v48 }
 0x133   :  { %v2428_v45 = vpop.eup %2427 }
 0x134   :  { %581 = vrot.lane.b32.xlu0 %v2428_v45, %s2540_s23  ;;  %v2430_v46 = vpop.eup %2429 }
 0x135   :  { %v2432_v49 = vpop.eup %2431 }
 0x136   :  { %v575_v50 = vadd.f32 1.0, %v2432_v49  ;;  %v2434_v51 = vpop.eup %2433 }
 0x137   :  { %v599_v52 = vadd.f32 1.0, %v2434_v51 }
 0x138   :  { %605 = vrot.lane.b32.xlu0 %v2430_v46, %s2540_s23  ;;  %2435 = vrcp.f32 %v575_v50 }
 0x139   :  { %2437 = vrcp.f32 %v599_v52 }
 0x142   :  { %v2436_v53 = vpop.eup %2435 }
 0x143   :  { %v2438_v56 = vpop.eup %2437  ;;  %v579_v59 = vmul.f32 0.0, %v2436_v53 }
 0x144   :  { %v603_v62 = vmul.f32 0.0, %v2438_v56 }
 0x1a6   :  { %v582_v54 = vpop.permute.xlu0 %581 }
 0x1a7   :  { %v584_v55 = vmul.f32 %v2436_v53, %v582_v54 }
 0x1a9   :  { %586 = vrot.lane.b32.xlu1 %v584_v55, %s2541_s3 }
 0x1aa   :  { %v606_v57 = vpop.permute.xlu0 %605 }
 0x1ab   :  { %v608_v58 = vmul.f32 %v2438_v56, %v606_v57 }
 0x1ad   :  { %610 = vrot.lane.b32.xlu1 %v608_v58, %s2541_s3 }
 0x21b   :  { %v587_v60 = vpop.permute.xlu1 %586 }
 0x21c   :  { %v2777_v61 = vadd.f32 %v587_v60, %v579_v59  ;;  %v343_v59 = vadd.f32 %v2758_v34, %v2763_v38  ;;  %v268_v60 = vadd.f32 %v2815_v11, %v2763_v38 }
 0x21e   :  { %2439 = vtanh.f32 %v2777_v61 }
 0x21f   :  { %v611_v63 = vpop.permute.xlu1 %610 }
 0x220   :  { %v2780_v1 = vadd.f32 %v611_v63, %v603_v62 }
 0x222   :  { %2441 = vtanh.f32 %v2780_v1 }
 0x228   :  { %v2440_v3 = vpop.eup %2439 }
 0x229   :  { %592 = vrot.lane.b32.xlu0 %v2440_v3, %s2542_s26 }
 0x22c   :  { %v2442_v6 = vpop.eup %2441 }
 0x22d   :  { %616 = vrot.lane.b32.xlu1 %v2442_v6, %s2542_s26 }
 0x29b   :  { %v593_v7 = vpop.permute.xlu0 %592 }
 0x29c   :  { %v595_v8 = vmul.f32 %v2436_v53, %v593_v7 }
 0x29e   :  { %621 = vrot.lane.b32.xlu0 %v595_v8, %s2543_s29 }
 0x29f   :  { %v617_v9 = vpop.permute.xlu1 %616 }
 0x2a0   :  { %v619_v10 = vmul.f32 %v2438_v56, %v617_v9 }
 0x2a2   :  { %625 = vrot.lane.b32.xlu1 %v619_v10, %s2542_s26 }
 0x310   :  { %v2817_v13 = vpop.permute.xlu0 %621 }
 0x314   :  { %v2819_v14 = vpop.permute.xlu1 %625 }
 0x315   :  { %v629_v15 = vsel %vm628_vm2, %v2817_v13, %v2819_v14 }
 0x316   :  { %2162 = vmatmul.mubr.msk.f32.vlgmr.msra.gmra.mrb[8].mxu1 %vm496_vm3, %v629_v15 }
 0x317   :  { %2359 = vmatpush3.bf16.msra.mxu1 %v2731_v26  ;;  %2183 = vmatprep.mubr.msk.f32.mxu1 %vm2538_vm0, %v2539_v4 }
 0x318   :  { %2360 = vmatprep.subr.bf16.mxu1 %v2537_v0 }
 0x31b   :  { %2362 = vmatpush3.bf16.msra.mxu1 %v2742_v29 }
 0x31c   :  { %2369 = vmatprep.subr.bf16.mxu1 %v2537_v0 }
 0x3e9   :  { %v699_v20 = vpop.f32.mrb[8].mxu1 }
 0x3ea   :  { %v703_v21 = vadd.f32 %v699_v20, %v2836_v19  ;;  %v704_v22 = vadd.f32 %v699_v20, %v2832_v18  ;;  %v2163_v23 = vpop.f32.mrb[9].mxu1 }
 0x3ec   :  { %2443 = vtanh.f32 %v703_v21  ;;  %v1806_v27 = vmul.f32 -1.442695, %v703_v21  ;;  %v1807_v28 = vmul.f32 -1.442695, %v704_v22 }
 0x3ed   :  { %2445 = vtanh.f32 %v704_v22 }
 0x3ee   :  { %2447 = vpow2.f32 %v1806_v27 }
 0x3ef   :  { %2449 = vpow2.f32 %v1807_v28 }
 0x3f6   :  { %v2444_v24 = vpop.eup %2443 }
 0x3f7   :  { %v2446_v25 = vpop.eup %2445  ;;  %714 = vrot.lane.b32.xlu0 %v2444_v24, %s2540_s23 }
 0x3f8   :  { %738 = vrot.lane.b32.xlu1 %v2446_v25, %s2540_s23  ;;  %v2448_v30 = vpop.eup %2447 }
 0x3f9   :  { %v2450_v31 = vpop.eup %2449  ;;  %v708_v32 = vadd.f32 1.0, %v2448_v30 }
 0x3fa   :  { %v732_v33 = vadd.f32 1.0, %v2450_v31 }
 0x3fb   :  { %2451 = vrcp.f32 %v708_v32 }
 0x3fc   :  { %2453 = vrcp.f32 %v732_v33 }
 0x405   :  { %v2452_v35 = vpop.eup %2451 }
 0x406   :  { %v2454_v37 = vpop.eup %2453  ;;  %v712_v44 = vmul.f32 %v2452_v35, %v2777_v61 }
 0x407   :  { %v736_v46 = vmul.f32 %v2454_v37, %v2780_v1 }
 0x469   :  { %v715_v36 = vpop.permute.xlu0 %714 }
 0x46a   :  { %v717_v40 = vmul.f32 %v2452_v35, %v715_v36  ;;  %v739_v42 = vpop.permute.xlu1 %738 }
 0x46b   :  { %v741_v43 = vmul.f32 %v2454_v37, %v739_v42 }
 0x46c   :  { %719 = vrot.lane.b32.xlu0 %v717_v40, %s2541_s3 }
 0x46d   :  { %743 = vrot.lane.b32.xlu1 %v741_v43, %s2541_s3 }
 0x4de   :  { %v720_v45 = vpop.permute.xlu0 %719 }
 0x4df   :  { %v722_v47 = vadd.f32 %v720_v45, %v712_v44  ;;  %v744_v48 = vpop.permute.xlu1 %743 }
 0x4e0   :  { %v746_v49 = vadd.f32 %v744_v48, %v736_v46 }
 0x4e1   :  { %2455 = vtanh.f32 %v722_v47 }
 0x4e2   :  { %2457 = vtanh.f32 %v746_v49 }
 0x4eb   :  { %v2456_v50 = vpop.eup %2455 }
 0x4ec   :  { %v2458_v51 = vpop.eup %2457  ;;  %725 = vrot.lane.b32.xlu0 %v2456_v50, %s2542_s26 }
 0x4ed   :  { %749 = vrot.lane.b32.xlu1 %v2458_v51, %s2542_s26 }
 0x55e   :  { %v726_v52 = vpop.permute.xlu0 %725 }
 0x55f   :  { %v728_v53 = vmul.f32 %v2452_v35, %v726_v52  ;;  %v750_v54 = vpop.permute.xlu1 %749 }
 0x560   :  { %v752_v55 = vmul.f32 %v2454_v37, %v750_v54 }
 0x561   :  { %754 = vrot.lane.b32.xlu0 %v728_v53, %s2543_s29 }
 0x562   :  { %758 = vrot.lane.b32.xlu1 %v752_v55, %s2542_s26 }
 0x5d3   :  { %v2850_v56 = vpop.permute.xlu0 %754 }
 0x5d4   :  { %v2852_v57 = vpop.permute.xlu1 %758 }
 0x5d5   :  { %v761_v58 = vsel %vm628_vm2, %v2850_v56, %v2852_v57 }
 0x5d6   :  { %2173 = vmatmul.mubr.msk.f32.vlgmr.msra.gmra.mrb[6].mxu0 %vm496_vm3, %v761_v58 }
 0x5d7   :  { %2365 = vmatpush3.bf16.msra.mxu0 %v2731_v26  ;;  %2194 = vmatprep.mubr.msk.f32.mxu0 %vm2538_vm0, %v2539_v4 }
 0x5d8   :  { %2366 = vmatprep.subr.bf16.mxu0 %v2537_v0 }
 0x5db   :  { %2368 = vmatpush3.bf16.msra.mxu0 %v2742_v29 }
 0x6a9   :  { %v831_v61 = vpop.f32.mrb[6].mxu0 }
 0x6aa   :  { %v835_v62 = vadd.f32 %v831_v61, %v268_v60  ;;  %v836_v63 = vadd.f32 %v831_v61, %v343_v59  ;;  %v2174_v1 = vpop.f32.mrb[7].mxu0 }
 0x6ac   :  { %2459 = vtanh.f32 %v835_v62  ;;  %v1809_v6 = vmul.f32 -1.442695, %v835_v62  ;;  %v1810_v5 = vmul.f32 -1.442695, %v836_v63 }
 0x6ad   :  { %2461 = vtanh.f32 %v836_v63 }
 0x6ae   :  { %2463 = vpow2.f32 %v1809_v6 }
 0x6af   :  { %2465 = vpow2.f32 %v1810_v5 }
 0x6b6   :  { %v2460_v2 = vpop.eup %2459 }
 0x6b7   :  { %v2462_v3 = vpop.eup %2461  ;;  %846 = vrot.lane.b32.xlu0 %v2460_v2, %s2540_s23 }
 0x6b8   :  { %870 = vrot.lane.b32.xlu1 %v2462_v3, %s2540_s23  ;;  %v2464_v34 = vpop.eup %2463 }
 0x6b9   :  { %v2466_v7 = vpop.eup %2465  ;;  %v840_v8 = vadd.f32 1.0, %v2464_v34 }
 0x6ba   :  { %v864_v38 = vadd.f32 1.0, %v2466_v7 }
 0x6bb   :  { %2467 = vrcp.f32 %v840_v8 }
 0x6bc   :  { %2469 = vrcp.f32 %v864_v38 }
 0x6c5   :  { %v2468_v9 = vpop.eup %2467 }
 0x6c6   :  { %v2470_v11 = vpop.eup %2469  ;;  %v844_v17 = vmul.f32 %v2468_v9, %v722_v47 }
 0x6c7   :  { %v868_v20 = vmul.f32 %v2470_v11, %v746_v49 }
 0x729   :  { %v847_v10 = vpop.permute.xlu0 %846 }
 0x72a   :  { %v871_v12 = vpop.permute.xlu1 %870  ;;  %v849_v15 = vmul.f32 %v2468_v9, %v847_v10 }
 0x72b   :  { %v873_v16 = vmul.f32 %v2470_v11, %v871_v12 }
 0x72c   :  { %851 = vrot.lane.b32.xlu0 %v849_v15, %s2541_s3 }
 0x72d   :  { %875 = vrot.lane.b32.xlu1 %v873_v16, %s2541_s3 }
 0x79e   :  { %v852_v21 = vpop.permute.xlu0 %851 }
 0x79f   :  { %v876_v22 = vpop.permute.xlu1 %875  ;;  %v854_v23 = vadd.f32 %v852_v21, %v844_v17 }
 0x7a0   :  { %v878_v24 = vadd.f32 %v876_v22, %v868_v20 }
 0x7a1   :  { %2471 = vtanh.f32 %v854_v23 }
 0x7a2   :  { %2473 = vtanh.f32 %v878_v24 }
 0x7ab   :  { %v2472_v25 = vpop.eup %2471 }
 0x7ac   :  { %v2474_v27 = vpop.eup %2473  ;;  %857 = vrot.lane.b32.xlu0 %v2472_v25, %s2542_s26 }
 0x7ad   :  { %881 = vrot.lane.b32.xlu1 %v2474_v27, %s2542_s26 }
 0x81e   :  { %v858_v28 = vpop.permute.xlu0 %857 }
 0x81f   :  { %v882_v30 = vpop.permute.xlu1 %881  ;;  %v860_v31 = vmul.f32 %v2468_v9, %v858_v28 }
 0x820   :  { %v884_v32 = vmul.f32 %v2470_v11, %v882_v30 }
 0x821   :  { %886 = vrot.lane.b32.xlu0 %v860_v31, %s2543_s29 }
 0x822   :  { %890 = vrot.lane.b32.xlu1 %v884_v32, %s2542_s26 }
 0x893   :  { %v2875_v33 = vpop.permute.xlu0 %886 }
 0x894   :  { %v2877_v35 = vpop.permute.xlu1 %890 }
 0x895   :  { %v893_v36 = vsel %vm628_vm2, %v2875_v33, %v2877_v35 }
 0x896   :  { %2184 = vmatmul.mubr.msk.f32.vlgmr.msra.gmra.mrb[10].mxu1 %vm496_vm3, %v893_v36 }
 0x897   :  { %2371 = vmatpush3.bf16.msra.mxu1 %v2731_v26  ;;  %2205 = vmatprep.mubr.msk.f32.mxu1 %vm2538_vm0, %v2539_v4 }
 0x898   :  { %2372 = vmatprep.subr.bf16.mxu1 %v2537_v0 }
 0x89b   :  { %2374 = vmatpush3.bf16.msra.mxu1 %v2742_v29 }
 0x89c   :  { %2208 = vmatprep.subr.mxu1 %v2539_v4 }
 0x969   :  { %v963_v37 = vpop.f32.mrb[10].mxu1 }
 0x96a   :  { %v967_v40 = vadd.f32 %v963_v37, %v343_v59  ;;  %v968_v42 = vadd.f32 %v963_v37, %v268_v60  ;;  %v2185_v43 = vpop.f32.mrb[11].mxu1 }
 0x96c   :  { %2475 = vtanh.f32 %v967_v40  ;;  %v1812_v26 = vmul.f32 -1.442695, %v967_v40  ;;  %v1813_v46 = vmul.f32 -1.442695, %v968_v42 }
 0x96d   :  { %2477 = vtanh.f32 %v968_v42 }
 0x96e   :  { %2479 = vpow2.f32 %v1812_v26 }
 0x96f   :  { %2481 = vpow2.f32 %v1813_v46 }
 0x976   :  { %v2476_v44 = vpop.eup %2475 }
 0x977   :  { %v2478_v45 = vpop.eup %2477  ;;  %978 = vrot.lane.b32.xlu0 %v2476_v44, %s2540_s23 }
 0x978   :  { %1002 = vrot.lane.b32.xlu1 %v2478_v45, %s2540_s23  ;;  %v2480_v47 = vpop.eup %2479 }
 0x979   :  { %v2482_v29 = vpop.eup %2481  ;;  %v972_v48 = vadd.f32 1.0, %v2480_v47 }
 0x97a   :  { %v996_v49 = vadd.f32 1.0, %v2482_v29 }
 0x97b   :  { %2483 = vrcp.f32 %v972_v48 }
 0x97c   :  { %2485 = vrcp.f32 %v996_v49 }
 0x985   :  { %v2484_v50 = vpop.eup %2483 }
 0x986   :  { %v2486_v52 = vpop.eup %2485  ;;  %v976_v58 = vmul.f32 %v2484_v50, %v854_v23 }
 0x987   :  { %v1000_v59 = vmul.f32 %v2486_v52, %v878_v24 }
 0x9e9   :  { %v979_v51 = vpop.permute.xlu0 %978 }
 0x9ea   :  { %v1003_v53 = vpop.permute.xlu1 %1002  ;;  %v981_v54 = vmul.f32 %v2484_v50, %v979_v51 }
 0x9eb   :  { %v1005_v55 = vmul.f32 %v2486_v52, %v1003_v53 }
 0x9ec   :  { %983 = vrot.lane.b32.xlu0 %v981_v54, %s2541_s3 }
 0x9ed   :  { %1007 = vrot.lane.b32.xlu1 %v1005_v55, %s2541_s3 }
 0xa5e   :  { %v984_v60 = vpop.permute.xlu0 %983 }
 0xa5f   :  { %v1008_v61 = vpop.permute.xlu1 %1007  ;;  %v986_v62 = vadd.f32 %v984_v60, %v976_v58 }
 0xa60   :  { %v1010_v63 = vadd.f32 %v1008_v61, %v1000_v59 }
 0xa61   :  { %2487 = vtanh.f32 %v986_v62 }
 0xa62   :  { %2489 = vtanh.f32 %v1010_v63 }
 0xa6b   :  { %v2488_v1 = vpop.eup %2487 }
 0xa6c   :  { %v2490_v2 = vpop.eup %2489  ;;  %989 = vrot.lane.b32.xlu0 %v2488_v1, %s2542_s26 }
 0xa6d   :  { %1013 = vrot.lane.b32.xlu1 %v2490_v2, %s2542_s26 }
 0xade   :  { %v990_v3 = vpop.permute.xlu0 %989 }
 0xadf   :  { %v1014_v6 = vpop.permute.xlu1 %1013  ;;  %v992_v5 = vmul.f32 %v2484_v50, %v990_v3 }
 0xae0   :  { %v1016_v34 = vmul.f32 %v2486_v52, %v1014_v6 }
 0xae1   :  { %1018 = vrot.lane.b32.xlu0 %v992_v5, %s2543_s29 }
 0xae2   :  { %1022 = vrot.lane.b32.xlu1 %v1016_v34, %s2542_s26 }
 0xb53   :  { %v2897_v7 = vpop.permute.xlu0 %1018 }
 0xb54   :  { %v2899_v8 = vpop.permute.xlu1 %1022 }
 0xb55   :  { %v1025_v38 = vsel %vm628_vm2, %v2897_v7, %v2899_v8 }
 0xb56   :  { %2195 = vmatmul.mubr.msk.f32.vlgmr.msra.gmra.mrb[8].mxu0 %vm496_vm3, %v1025_v38 }
 0xc29   :  { %v1095_v9 = vpop.f32.mrb[8].mxu0 }
 0xc2a   :  { %v1099_v10 = vadd.f32 %v1095_v9, %v2832_v18  ;;  %v1100_v11 = vadd.f32 %v1095_v9, %v2836_v19  ;;  %v2196_v12 = vpop.f32.mrb[9].mxu0 }
 0xc2c   :  { %2491 = vtanh.f32 %v1099_v10  ;;  %v1815_v17 = vmul.f32 -1.442695, %v1099_v10  ;;  %v1816_v20 = vmul.f32 -1.442695, %v1100_v11 }
 0xc2d   :  { %2493 = vtanh.f32 %v1100_v11 }
 0xc2e   :  { %2495 = vpow2.f32 %v1815_v17 }
 0xc2f   :  { %2497 = vpow2.f32 %v1816_v20 }
 0xc36   :  { %v2492_v15 = vpop.eup %2491 }
 0xc37   :  { %v2494_v16 = vpop.eup %2493  ;;  %1110 = vrot.lane.b32.xlu0 %v2492_v15, %s2540_s23 }
 0xc38   :  { %1134 = vrot.lane.b32.xlu1 %v2494_v16, %s2540_s23  ;;  %v2496_v21 = vpop.eup %2495 }
 0xc39   :  { %v2498_v22 = vpop.eup %2497  ;;  %v1104_v23 = vadd.f32 1.0, %v2496_v21 }
 0xc3a   :  { %v1128_v24 = vadd.f32 1.0, %v2498_v22 }
 0xc3b   :  { %2499 = vrcp.f32 %v1104_v23  ;;  %v1287_v23 = vsel %vm628_vm2, %v2875_v33, %v2899_v8 }
 0xc3c   :  { %2501 = vrcp.f32 %v1128_v24  ;;  %v1288_v24 = vsel %vm628_vm2, %v2897_v7, %v2877_v35 }
 0xc3d   :  { %v1302_v8 = vrot.slane %v1288_v24, 5  ;;  %v1580_v24 = vld [vmem:[%s3131_s6 + $0x18] sm:$0xff] }
 0xc45   :  { %v2500_v18 = vpop.eup %2499 }
 0xc46   :  { %v2502_v25 = vpop.eup %2501  ;;  %v1108_v31 = vmul.f32 %v2500_v18, %v986_v62 }
 0xc47   :  { %v1132_v32 = vmul.f32 %v2502_v25, %v1010_v63 }
 0xca9   :  { %v1111_v19 = vpop.permute.xlu0 %1110 }
 0xcaa   :  { %v1135_v27 = vpop.permute.xlu1 %1134  ;;  %v1113_v28 = vmul.f32 %v2500_v18, %v1111_v19 }
 0xcab   :  { %v1137_v30 = vmul.f32 %v2502_v25, %v1135_v27 }
 0xcac   :  { %1115 = vrot.lane.b32.xlu0 %v1113_v28, %s2541_s3  ;;  %v1299_v28 = vrot.slane %v1287_v23, 6 }
 0xcad   :  { %1139 = vrot.lane.b32.xlu1 %v1137_v30, %s2541_s3 }
 0xd1e   :  { %v1116_v36 = vpop.permute.xlu0 %1115 }
 0xd1f   :  { %v1140_v37 = vpop.permute.xlu1 %1139  ;;  %v1118_v40 = vadd.f32 %v1116_v36, %v1108_v31  ;;  %v1320_v36 = vld [vmem:[%s3129_s4] sm:$0x3f] }
 0xd20   :  { %v1142_v42 = vadd.f32 %v1140_v37, %v1132_v32 }
 0xd21   :  { %2503 = vtanh.f32 %v1118_v40 }
 0xd22   :  { %2505 = vtanh.f32 %v1142_v42 }
 0xd2b   :  { %v2504_v43 = vpop.eup %2503 }
 0xd2c   :  { %v2506_v44 = vpop.eup %2505  ;;  %1121 = vrot.lane.b32.xlu0 %v2504_v43, %s2542_s26 }
 0xd2d   :  { %1145 = vrot.lane.b32.xlu1 %v2506_v44, %s2542_s26 }
 0xd9e   :  { %v1122_v45 = vpop.permute.xlu0 %1121 }
 0xd9f   :  { %v1146_v26 = vpop.permute.xlu1 %1145  ;;  %v1124_v46 = vmul.f32 %v2500_v18, %v1122_v45 }
 0xda0   :  { %v1148_v47 = vmul.f32 %v2502_v25, %v1146_v26 }
 0xda1   :  { %1150 = vrot.lane.b32.xlu0 %v1124_v46, %s2543_s29 }
 0xda2   :  { %1154 = vrot.lane.b32.xlu1 %v1148_v47, %s2542_s26 }
 0xe13   :  { %v1151_v29 = vpop.permute.xlu0 %1150 }
 0xe14   :  { %v1155_v48 = vpop.permute.xlu1 %1154  ;;  %v1289_v25 = vsel %vm628_vm2, %v1151_v29, %v2852_v57 }
 0xe15   :  { %v1157_v49 = vsel %vm628_vm2, %v1151_v29, %v1155_v48  ;;  %v1286_v22 = vsel %vm628_vm2, %v2850_v56, %v1155_v48  ;;  %v1305_v35 = vrot.slane %v1289_v25, 4 }
 0xe16   :  { %2206 = vmatmul.mubr.msk.f32.vlgmr.msra.gmra.mrb[12].mxu1 %vm496_vm3, %v1157_v49  ;;  %v1296_v19 = vrot.slane %v1286_v22, 7 }
 0xe17   :  { %2210 = vmatprep.mubr.msk.f32.mxu1 %vm2538_vm0, %v2539_v4 }
 0xee9   :  { %v1227_v50 = vpop.f32.mrb[12].mxu1 }
 0xeea   :  { %v1231_v51 = vadd.f32 %v1227_v50, %v2769_v41  ;;  %v1232_v52 = vadd.f32 %v1227_v50, %v2766_v39  ;;  %v2207_v53 = vpop.f32.mrb[13].mxu1 }
 0xeec   :  { %2507 = vtanh.f32 %v1231_v51  ;;  %v1818_v58 = vmul.f32 -1.442695, %v1231_v51  ;;  %v1819_v59 = vmul.f32 -1.442695, %v1232_v52 }
 0xeed   :  { %2509 = vtanh.f32 %v1232_v52 }
 0xeee   :  { %2511 = vpow2.f32 %v1818_v58 }
 0xeef   :  { %2513 = vpow2.f32 %v1819_v59 }
 0xef6   :  { %v2508_v54 = vpop.eup %2507 }
 0xef7   :  { %v2510_v55 = vpop.eup %2509  ;;  %1242 = vrot.lane.b32.xlu1 %v2508_v54, %s2540_s23  ;;  %v1593_v54 = vld [vmem:[%s3131_s6 + $0x80] sm:$0xff] }
 0xef8   :  { %1266 = vrot.lane.b32.xlu0 %v2510_v55, %s2540_s23  ;;  %v2512_v60 = vpop.eup %2511  ;;  %v1594_v55 = vld [vmem:[%s3131_s6 + $0x88] sm:$0xff] }
 0xef9   :  { %v2514_v61 = vpop.eup %2513  ;;  %v1236_v62 = vadd.f32 1.0, %v2512_v60  ;;  %v2375_v58 = vpack.c.bf16 %v1594_v55, %v1593_v54  ;;  %v1604_v54 = vld [vmem:[%s3131_s6 + $0xd8] sm:$0xff] }
 0xefa   :  { %v1260_v63 = vadd.f32 1.0, %v2514_v61 }
 0xefb   :  { %2515 = vrcp.f32 %v1236_v62  ;;  %2376 = vmatprep.subr.bf16.mxu0 %v2375_v58 }
 0xefc   :  { %2517 = vrcp.f32 %v1260_v63 }
 0xf05   :  { %v2516_v39 = vpop.eup %2515 }
 0xf06   :  { %v2518_v1 = vpop.eup %2517  ;;  %v1240_v5 = vmul.f32 %v2516_v39, %v1118_v40  ;;  %v1399_v40 = vld [vmem:[%s3130_s5] sm:$0x3f]  ;;  %s2544_s5 = smov 64  }
 0xf07   :  { %v1264_v34 = vmul.f32 %v2518_v1, %v1142_v42 }
 0xf69   :  { %v1243_v41 = vpop.permute.xlu1 %1242 }
 0xf6a   :  { %v1267_v2 = vpop.permute.xlu0 %1266  ;;  %v1245_v3 = vmul.f32 %v2516_v39, %v1243_v41 }
 0xf6b   :  { %v1269_v6 = vmul.f32 %v2518_v1, %v1267_v2 }
 0xf6c   :  { %1247 = vrot.lane.b32.xlu1 %v1245_v3, %s2541_s3 }
 0xf6d   :  { %1271 = vrot.lane.b32.xlu0 %v1269_v6, %s2541_s3 }
 0xfde   :  { %v1248_v38 = vpop.permute.xlu1 %1247 }
 0xfdf   :  { %v1272_v9 = vpop.permute.xlu0 %1271  ;;  %v1250_v10 = vadd.f32 %v1248_v38, %v1240_v5 }
 0xfe0   :  { %v1274_v11 = vadd.f32 %v1272_v9, %v1264_v34 }
 0xfe1   :  { %2519 = vtanh.f32 %v1250_v10 }
 0xfe2   :  { %2521 = vtanh.f32 %v1274_v11 }
 0xfeb   :  { %v2520_v12 = vpop.eup %2519 }
 0xfec   :  { %v2522_v15 = vpop.eup %2521  ;;  %1253 = vrot.lane.b32.xlu1 %v2520_v12, %s2542_s26  ;;  %v1577_v12 = vld [vmem:[%s3131_s6] sm:$0xff] }
 0xfed   :  { %1277 = vrot.lane.b32.xlu0 %v2522_v15, %s2542_s26  ;;  %v1578_v15 = vld [vmem:[%s3131_s6 + $0x8] sm:$0xff] }
0x105e   :  { %v1254_v16 = vpop.permute.xlu1 %1253 }
0x105f   :  { %v1278_v17 = vpop.permute.xlu0 %1277  ;;  %v1256_v20 = vmul.f32 %v2516_v39, %v1254_v16  ;;  %v2377_v16 = vpack.c.bf16 %v1578_v15, %v1577_v12  ;;  %v1607_v15 = vld [vmem:[%s3131_s6 + $0xf0] sm:$0xff] }
0x1060   :  { %v1280_v21 = vmul.f32 %v2518_v1, %v1278_v17  ;;  %v1595_v17 = vld [vmem:[%s3131_s6 + $0x90] sm:$0xff] }
0x1061   :  { %1291 = vrot.lane.b32.xlu1 %v1256_v20, %s2543_s29  ;;  %2378 = vmatpush3.bf16.msra.mxu0 %v2377_v16  ;;  %v1596_v20 = vld [vmem:[%s3131_s6 + $0x98] sm:$0xff] }
0x1062   :  { %1282 = vrot.lane.b32.xlu0 %v1280_v21, %s2542_s26  ;;  %v1579_v21 = vld [vmem:[%s3131_s6 + $0x10] sm:$0xff]  ;;  %v2379_v23 = vpack.c.bf16 %v1596_v20, %v1595_v17  ;;  %v1592_v17 = vld [vmem:[%s3131_s6 + $0x78] sm:$0xff] }
0x1063   :  { %v2381_v25 = vpack.c.bf16 %v1580_v24, %v1579_v21  ;;  %v1613_v21 = vld [vmem:[%s3131_s6 + $0x120] sm:$0x3] }
0x1064   :  { %2380 = vmatprep.subr.bf16.mxu0 %v2379_v23 }
0x1065   :  { %2382 = vmatpush3.bf16.msra.mxu0 %v2381_v25 }
0x10d3   :  { %v1292_v18 = vpop.permute.xlu1 %1291 }
0x10d4   :  { %v1283_v27 = vpop.permute.xlu0 %1282  ;;  %v1294_v33 = vsel %vm628_vm2, %v1292_v18, %v2819_v14  ;;  %v1597_v18 = vld [vmem:[%s3131_s6 + $0xa0] sm:$0xff] }
0x10d5   :  { %v1285_v56 = vsel %vm628_vm2, %v2817_v13, %v1283_v27  ;;  %v1308_v32 = vrot.slane %v1294_v33, 3  ;;  %v1599_v33 = vld [vmem:[%s3131_s6 + $0xb0] sm:$0xff] }
0x10d6   :  { %v1311_v30 = vsel %vm1310_vm4, %v1285_v56, %v1296_v19  ;;  %v1598_v19 = vld [vmem:[%s3131_s6 + $0xa8] sm:$0xff] }
0x10d7   :  { %v1313_v7 = vsel %vm1312_vm5, %v1311_v30, %v1299_v28  ;;  %v2383_v27 = vpack.c.bf16 %v1598_v19, %v1597_v18  ;;  %v1581_v28 = vld [vmem:[%s3131_s6 + $0x20] sm:$0xff]  ;;  %v1582_v56 = vld [vmem:[%s3131_s6 + $0x28] sm:$0xff] }
0x10d8   :  { %v1315_v31 = vsel %vm1314_vm6, %v1313_v7, %v1302_v8  ;;  %v1600_v8 = vld [vmem:[%s3131_s6 + $0xb8] sm:$0xff]  ;;  %vm1621_vm6 = vcmask 277504  }
0x10d9   :  { %v1317_v57 = vsel %vm1316_vm7, %v1315_v31, %v1305_v35  ;;  %v2385_v35 = vpack.c.bf16 %v1582_v56, %v1581_v28  ;;  %2384 = vmatprep.subr.bf16.mxu0 %v2383_v27  ;;  %v2387_v7 = vpack.c.bf16 %v1600_v8, %v1599_v33  ;;  %v1583_v31 = vld [vmem:[%s3131_s6 + $0x30] sm:$0xff] }
0x10da   :  { %v2947_v13 = vsel %vm1318_vm8, %v1317_v57, %v1308_v32  ;;  %v1584_v32 = vld [vmem:[%s3131_s6 + $0x38] sm:$0xff] }
0x10db   :  { %2209 = vmatpush3.msk.msra.mxu1 %vm1325_vm9, %v2947_v13  ;;  %v1479_v14 = vmul.f32 %v2947_v13, %v2947_v13  ;;  %2386 = vmatpush3.bf16.msra.mxu0 %v2385_v35 }
0x10dc   :  { %2211 = vmatmul.mubr.msk.f32.vlgmr.msra.gmra.mrb[14].mxu1 %vm1321_vm10, %v1320_v36  ;;  %2213 = vmatprep.subr.mxu1 %v2539_v4  ;;  %v1601_v36 = vld [vmem:[%s3131_s6 + $0xc0] sm:$0xff] }
0x10dd   :  { %2214 = vmatpush3.msk.msra.mxu1 %vm1325_vm9, %v2947_v13  ;;  %v1480_v37 = vsel %vm1475_vm11, %v1479_v14, 0.0  ;;  %2215 = vmatprep.mubr.msk.f32.mxu1 %vm2538_vm0, %v2539_v4  ;;  %v1602_v14 = vld [vmem:[%s3131_s6 + $0xc8] sm:$0xff] }
0x10de   :  { %1481 = vadd.xlane.f32.xlu0 %v1480_v37  ;;  %2407 = vmatprep.subr.bf16.mxu1 %v2537_v0  ;;  %v1609_v37 = vld [vmem:[%s3131_s6 + $0x100] sm:$0xff] }
0x10df   :  { %2388 = vmatprep.subr.bf16.mxu0 %v2387_v7 }
0x10e0   :  { %2216 = vmatmul.mubr.msk.f32.vlgmr.msra.gmra.mrb[16].mxu1 %vm1321_vm10, %v1399_v40 }
0x10e1   :  { %2228 = vmatprep.mubr.msk.f32.mxu1 %vm2538_vm0, %v2539_v4  ;;  %vm1519_vm0 = vcmask 523264  }
0x116b   :  { %v1482_v59 = vpop.xlane.xlu0 %1481 }
0x116c   :  { %2523 = vrsqrt.f32 %v1482_v59  ;;  %vm1485_vm12 = vcmp.eq.f32.partialorder %v1482_v59, inf  ;;  %v1488_v1 = vand.u32 2147483648, %v1482_v59  ;;  %vm1487_vm13 = vcmp.eq.f32.partialorder %v1482_v59, 0.0 }
0x1176   :  { %v2524_v61 = vpop.eup %2523 }
0x1177   :  { %v1484_v62 = vmul.f32 %v2524_v61, %v1482_v59  ;;  %v1587_v61 = vld [vmem:[%s3131_s6 + $0x50] sm:$0xff] }
0x1179   :  { %v1486_v39 = vsel %vm1485_vm12, %v1482_v59, %v1484_v62  ;;  %v1588_v62 = vld [vmem:[%s3131_s6 + $0x58] sm:$0xff] }
0x117a   :  { %v2981_v3 = vsel %vm1487_vm13, %v1488_v1, %v1486_v39  ;;  %v1605_v39 = vld [vmem:[%s3131_s6 + $0xe0] sm:$0xff] }
0x117b   :  { %v1501_v9 = vmax.f32 %v2981_v3, 1e-08  ;;  %v1608_v3 = vld [vmem:[%s3131_s6 + $0xf8] sm:$0xff] }
0x117c   :  { %v2403_v16 = vpack.c.bf16 %v1608_v3, %v1607_v15 }
0x11af   :  { %v1395_v42 = vpop.f32.mrb[14].mxu1 }
0x11b0   :  { %v2212_v43 = vpop.f32.mrb[15].mxu1  ;;  %v1490_v44 = vmul.f32 %v1395_v42, %v1395_v42  ;;  %v1473_v45 = vmul.f32 %v1395_v42, %v2947_v13  ;;  %v1474_v50 = vsub.f32 %v1395_v42, %v2947_v13 }
0x11b1   :  { %v1610_v43 = vld [vmem:[%s3131_s6 + $0x108] sm:$0xff] }
0x11b2   :  { %v1491_v26 = vsel %vm1475_vm11, %v1490_v44, 0.0  ;;  %v1476_v46 = vsel %vm1475_vm11, %v1473_v45, 0.0 }
0x11b3   :  { %1492 = vadd.xlane.f32.xlu1 %v1491_v26  ;;  %1477 = vadd.xlane.f32.xlu0 %v1476_v46  ;;  %v1469_v47 = vpop.f32.mrb[16].mxu1  ;;  %v2389_v26 = vpack.c.bf16 %v1584_v32, %v1583_v31  ;;  %v2408_v46 = vpack.c.bf16 %v1610_v43, %v1609_v37 }
0x11b4   :  { %v1527_v29 = vmul.f32 %v1469_v47, %v1469_v47  ;;  %v2217_v48 = vpop.f32.mrb[17].mxu1  ;;  %v1523_v51 = vsub.f32 %v1469_v47, %v2947_v13  ;;  %v1522_v52 = vmul.f32 %v1469_v47, %v2947_v13 }
0x11b5   :  { %v2391_v48 = vpack.c.bf16 %v1602_v14, %v1601_v36  ;;  %2409 = vmatpush3.bf16.msra.mxu1 %v2408_v46  ;;  %2390 = vmatpush3.bf16.msra.mxu0 %v2389_v26 }
0x11b6   :  { %v1528_v49 = vsel %vm1475_vm11, %v1527_v29, 0.0  ;;  %v1524_v53 = vsel %vm1475_vm11, %v1522_v52, 0.0  ;;  %2410 = vmatprep.subr.bf16.mxu1 %v2537_v0  ;;  %v1606_v0 = vld [vmem:[%s3131_s6 + $0xe8] sm:$0xff] }
0x11b7   :  { %1529 = vadd.xlane.f32.xlu0 %v1528_v49  ;;  %v1585_v49 = vld [vmem:[%s3131_s6 + $0x40] sm:$0xff]  ;;  %2392 = vmatprep.subr.bf16.mxu0 %v2391_v48 }
0x11c4   :  { %1511 = vrot.lane.b32.xlu1 %v1473_v45, %s2544_s5 }
0x11c8   :  { %1543 = vrot.lane.b32.xlu1 %v1469_v47, %s2542_s26 }
0x11cd   :  { %1507 = vrot.lane.b32.xlu0 %v1395_v42, %s2542_s26 }
0x11d1   :  { %1515 = vrot.lane.b32.xlu0 %v1474_v50, %s2540_s23  ;;  %v1586_v50 = vld [vmem:[%s3131_s6 + $0x48] sm:$0xff] }
0x11d2   :  { %v2393_v59 = vpack.c.bf16 %v1586_v50, %v1585_v49 }
0x11d4   :  { %2394 = vmatpush3.bf16.msra.mxu0 %v2393_v59 }
0x11d5   :  { %1551 = vrot.lane.b32.xlu0 %v1523_v51, %s2540_s23 }
0x11ec   :  { %1525 = vadd.xlane.f32.xlu1 %v1524_v53  ;;  %v1603_v53 = vld [vmem:[%s3131_s6 + $0xd0] sm:$0xff] }
0x11fd   :  { %1547 = vrot.lane.b32.xlu1 %v1522_v52, %s2544_s5 }
0x1240   :  { %v1493_v60 = vpop.xlane.xlu1 %1492  ;;  %v1478_v63 = vpop.xlane.xlu0 %1477 }
0x1241   :  { %2525 = vrsqrt.f32 %v1493_v60  ;;  %vm1496_vm14 = vcmp.eq.f32.partialorder %v1493_v60, inf  ;;  %v1499_v6 = vand.u32 2147483648, %v1493_v60  ;;  %vm1498_vm15 = vcmp.eq.f32.partialorder %v1493_v60, 0.0 }
0x1244   :  { %v2983_v5 = vpop.xlane.xlu0 %1529  ;;  %v1512_v45 = vpop.permute.xlu1 %1511 }
0x1245   :  { %2527 = vrsqrt.f32 %v2983_v5  ;;  %vm1533_vm2 = vcmp.eq.f32.partialorder %v2983_v5, inf  ;;  %v1536_v51 = vand.u32 2147483648, %v2983_v5  ;;  %vm1535_vm4 = vcmp.eq.f32.partialorder %v2983_v5, 0.0 }
0x1248   :  { %v1508_v22 = vpop.permute.xlu0 %1507 }
0x1249   :  { %v1518_v57 = vsel %vm496_vm3, %v2947_v13, %v1508_v22  ;;  %v1544_v22 = vpop.permute.xlu1 %1543 }
0x124a   :  { %v1520_v29 = vsel %vm1519_vm0, %v1518_v57, %v1512_v45  ;;  %v1554_v19 = vsel %vm496_vm3, %v2947_v13, %v1544_v22 }
0x124b   :  { %v2526_v41 = vpop.eup %2525 }
0x124c   :  { %v1495_v2 = vmul.f32 %v2526_v41, %v1493_v60  ;;  %v1516_v42 = vpop.permute.xlu0 %1515  ;;  %v2397_v41 = vpack.c.bf16 %v1588_v62, %v1587_v61 }
0x124d   :  { %v1521_v52 = vsel %vm47_vm1, %v1520_v29, %v1516_v42 }
0x124e   :  { %v1497_v34 = vsel %vm1496_vm14, %v1493_v60, %v1495_v2  ;;  %v2395_v60 = vpack.c.bf16 %v1604_v54, %v1603_v53  ;;  %v2399_v2 = vpack.c.bf16 %v1606_v0, %v1605_v39 }
0x124f   :  { %v1500_v38 = vsel %vm1498_vm15, %v1499_v6, %v1497_v34  ;;  %v2528_v30 = vpop.eup %2527  ;;  %v1589_v6 = vld [vmem:[%s3131_s6 + $0x60] sm:$0xff] }
0x1250   :  { %v1502_v10 = vmax.f32 %v1500_v38, 1e-08  ;;  %v1532_v40 = vmul.f32 %v2528_v30, %v2983_v5  ;;  %2396 = vmatprep.subr.bf16.mxu0 %v2395_v60  ;;  %v1552_v27 = vpop.permute.xlu0 %1551 }
0x1251   :  { %2398 = vmatpush3.bf16.msra.mxu0 %v2397_v41 }
0x1252   :  { %v1503_v11 = vmul.f32 %v1502_v10, %v1501_v9  ;;  %v1534_v55 = vsel %vm1533_vm2, %v2983_v5, %v1532_v40  ;;  %v1590_v5 = vld [vmem:[%s3131_s6 + $0x68] sm:$0xff]  ;;  %2400 = vmatprep.subr.bf16.mxu0 %v2399_v2  ;;  %v1611_v10 = vld [vmem:[%s3131_s6 + $0x110] sm:$0xff]  ;;  %v1824_v40 = vld [vmem:[%s3132_s7] ss:$0 sm:$0xff] }
0x1253   :  { %v2401_v34 = vpack.c.bf16 %v1590_v5, %v1589_v6 }
0x1254   :  { %2529 = vrcp.f32 %v1503_v11  ;;  %v1612_v11 = vld [vmem:[%s3131_s6 + $0x118] sm:$0xff] }
0x1255   :  { %v2411_v12 = vpack.c.bf16 %v1612_v11, %v1611_v10  ;;  %2402 = vmatpush3.bf16.msra.mxu0 %v2401_v34 }
0x1256   :  { %2404 = vmatprep.subr.bf16.mxu0 %v2403_v16 }
0x1257   :  { %2412 = vmatpush3.bf16.msra.mxu1 %v2411_v12 }
0x1258   :  { %2226 = vmatprep.subr.mxu1 %v2539_v4 }
0x125b   :  { %2227 = vmatpush3.msk.msra.mxu1 %vm1312_vm5, %v1613_v21  ;;  %vm1572_vm5 = vcmask 269312  }
0x125e   :  { %v2530_v44 = vpop.eup %2529 }
0x125f   :  { %v1505_v47 = vmul.f32 %v2530_v44, %v1478_v63  ;;  %v1537_v63 = vsel %vm1535_vm4, %v1536_v51, %v1534_v55 }
0x1260   :  { %v1538_v1 = vmax.f32 %v1537_v63, 1e-08 }
0x1261   :  { %v2422_v58 = vpack.i.bf16 %v1505_v47, %v1521_v52 }
0x1262   :  { %v1539_v38 = vmul.f32 %v1538_v1, %v1501_v9  ;;  %v1591_v9 = vld [vmem:[%s3131_s6 + $0x70] sm:$0xff] }
0x1263   :  { %2423 = vrot.lane.b32.xlu1 %v2422_v58, %s2542_s26  ;;  %v2405_v20 = vpack.c.bf16 %v1592_v17, %v1591_v9 }
0x1264   :  { %2531 = vrcp.f32 %v1539_v38 }
0x1265   :  { %2406 = vmatpush3.bf16.msra.mxu0 %v2405_v20 }
0x126e   :  { %v2532_v23 = vpop.eup %2531 }
0x1279   :  { %v1526_v24 = vpop.xlane.xlu1 %1525 }
0x127a   :  { %v1541_v18 = vmul.f32 %v2532_v23, %v1526_v24 }
0x127c   :  { %1570 = vrot.lane.b32.xlu1 %v1541_v18, %s2545_s27 }
0x127d   :  { %v1548_v25 = vpop.permute.xlu1 %1547 }
0x127e   :  { %v1555_v4 = vsel %vm1519_vm0, %v1554_v19, %v1548_v25 }
0x127f   :  { %v1556_v28 = vsel %vm47_vm1, %v1555_v4, %v1552_v27  ;;  %vm1767_vm1 = vcmask 37888  }
0x1280   :  { %1568 = vrot.lane.b32.xlu0 %v1556_v28, %s2545_s27 }
0x12d5   :  { %v2424_v56 = vpop.permute.xlu1 %2423 }
0x12d6   :  { %v2426_v33 = vunpack.i.h.bf16 %v2424_v56  ;;  %v2425_v8 = vunpack.i.l.bf16 %v2424_v56 }
0x12d8   :  { %v1563_v7 = vsel %vm496_vm3, %v2425_v8, %v2426_v33  ;;  %v1575_v57 = vsel %vm496_vm3, %v2947_v13, %v2425_v8 }
0x12ee   :  { %v1571_v30 = vpop.permute.xlu1 %1570 }
0x12f2   :  { %v1569_v35 = vpop.permute.xlu0 %1568 }
0x12f3   :  { %v1573_v31 = vsel %vm1572_vm5, %v1569_v35, %v1571_v30  ;;  %v1576_v32 = vsel %vm1572_vm5, %v1563_v7, %v1569_v35 }
0x12f4   :  { %1691 = vmatprep.mubr.f32.mxu0 %v1576_v32  ;;  %2229 = vmatmul.mubr.msk.f32.vlgmr.msra.gmra.mrb[18].mxu1 %vm1621_vm6, %v1573_v31 }
0x12f5   :  { %1692 = vmatmul.mubr.f32.vlgmr.msra.gmra.mrb[10].mxu0 %v1575_v57 }
0x13c7   :  { %v1763_v36 = vpop.f32.mrb[18].mxu1 }
0x13c8   :  { %v1971_v14 = vpop.f32.mrb[10].mxu0  ;;  %v2230_v37 = vpop.f32.mrb[19].mxu1 }
0x13c9   :  { %v1972_v42 = vpop.f32.mrb[11].mxu0 }
0x13ca   :  { %v1973_v43 = vadd.f32 %v1972_v42, %v1971_v14 }
0x13cc   :  { %v1694_v44 = vadd.f32 %v1973_v43, %v1824_v40 }
0x13ce   :  { %v1764_v45 = vadd.f32 %v1763_v36, %v1694_v44 }
0x13d0   :  { %v1768_v26 = vsel %vm1767_vm1, %v1764_v45, -inf }
0x13d1   :  { %v1769_v46 = vrot.slane %v1768_v26, 4 }
0x13d3   :  { %v1770_v47 = vmax.f32 %v1768_v26, %v1769_v46 }
0x13d5   :  { %v1771_v29 = vrot.slane %v1770_v47, 2 }
0x13d7   :  { %v1772_v48 = vmax.f32 %v1770_v47, %v1771_v29 }
0x13d9   :  { %v1773_v13 = vrot.slane %v1772_v48, 1 }
0x13db   :  { %v1774_v49 = vmax.f32 %v1772_v48, %v1773_v13 }
0x13dd   :  { %v1775_v50 = vsub.f32 %v1764_v45, %v1774_v49 }
0x13df   :  { %v1776_v51 = vmul.f32 1.442695, %v1775_v50 }
0x13e1   :  { %2533 = vpow2.f32 %v1776_v51 }
0x13eb   :  { %v2534_v52 = vpop.eup %2533 }
0x13ec   :  { %v1778_v53 = vsel %vm1767_vm1, %v2534_v52, 0.0 }
0x13ed   :  { %v1779_v54 = vrot.slane %v1778_v53, 4 }
0x13ef   :  { %v1780_v55 = vadd.f32 %v1779_v54, %v1778_v53 }
0x13f1   :  { %v1781_v58 = vrot.slane %v1780_v55, 2 }
0x13f3   :  { %v1782_v59 = vadd.f32 %v1781_v58, %v1780_v55 }
0x13f5   :  { %v1783_v60 = vrot.slane %v1782_v59, 1 }
0x13f7   :  { %v1784_v61 = vadd.f32 %v1783_v60, %v1782_v59 }
0x13f9   :  { %2535 = vrcp.f32 %v1784_v61 }
0x1403   :  { %v2536_v62 = vpop.eup %2535 }
0x1404   :  { %v1786_v63 = vmul.f32 %v2536_v62, %v2534_v52 }
0x1406   :  { %1787 = vst.msk [vmem:[%s3133_s8] sm:$0x3f] %vm1767_vm1, %v1786_v63 }

// kernel: tam_forward.4
= control target key start
LH: loop header
LB: loop body
LE: loop exit
PB: predicated region body
PF: predicated region fallthrough
CT: control target
= control target key end

     0   :  { %v2316_v0 = vmov 0.0|0.0   ;;  %vm2317_vm0 = vmmov 0   ;;  %v2318_v3 = vmov 0.0   ;;  %vm42_vm1 = vcmask 130048   ;;  %s2320_s28 = smov 16   ;;  %s2321_s29 = smov 32   ;;  %s2724_s1 = inlined_call_operand.vmem [shape: f32[16,128], index: 1, kind: input, shape index: {}]   ;;  %s2725_s0 = inlined_call_operand.vmem [shape: f32[8,6,16], index: 0, kind: input, shape index: {}]   ;;  %s2726_s2 = inlined_call_operand.vmem [shape: f32[32,128], index: 2, kind: input, shape index: {}]   ;;  %s2727_s3 = inlined_call_operand.vmem [shape: f32[1,128], index: 3, kind: input, shape index: {}]   ;;  %s2728_s5 = inlined_call_operand.<no memory space> [shape: f32[1,1], index: 5, kind: input, shape index: {}]   ;;  %s2729_s4 = inlined_call_operand.vmem [shape: f32[1,32], index: 4, kind: input, shape index: {}]   ;;  %s2730_s6 = inlined_call_operand.vmem [shape: f32[6,8], index: 6, kind: input, shape index: {}]   ;;  %s2731_s7 = inlined_call_operand.vmem [shape: f32[6,32], index: 7, kind: output, shape index: {}]  }
   0x1   :  { %2087 = vmatprep.subr.bf16.mxu0 %v2316_v0  ;;  %v28_v1 = vld [vmem:[%s2724_s1] sm:$0xff]  ;;  %v29_v2 = vld [vmem:[%s2724_s1 + $0x8] sm:$0xff]  ;;  %1947 = vmatprep.mubr.msk.f32.mxu0 %vm2317_vm0, %v2318_v3  ;;  %v1842_v7 = vld [vmem:[%s2725_s0 + $0x10] sm:$0x3f]  ;;  %s2322_s30 = smov 80   ;;  %vm641_vm2 = vcmask 261120  }
   0x2   :  { %v2088_v4 = vpack.c.bf16 %v29_v2, %v28_v1  ;;  %2090 = vmatprep.subr.bf16.mxu1 %v2316_v0  ;;  %1954 = vmatprep.mubr.msk.f32.mxu1 %vm2317_vm0, %v2318_v3  ;;  %v35_v5 = vld [vmem:[%s2725_s0] sm:$0x3f]  ;;  %v1840_v6 = vld [vmem:[%s2725_s0 + $0x8] sm:$0x3f]  ;;  %v1844_v8 = vld [vmem:[%s2725_s0 + $0x18] sm:$0x3f] }
   0x3   :  { %v1846_v9 = vld [vmem:[%s2725_s0 + $0x20] sm:$0x3f]  ;;  %v31_v11 = vld [vmem:[%s2726_s2 + $0x8] sm:$0xff]  ;;  %v1850_v13 = vld [vmem:[%s2725_s0 + $0x30] sm:$0x3f]  ;;  %vm1713_vm3 = vcmask 259072  }
   0x4   :  { %2089 = vmatpush3.bf16.msra.mxu0 %v2088_v4  ;;  %2092 = vmatpush3.bf16.msra.mxu1 %v2088_v4  ;;  %v30_v10 = vld [vmem:[%s2726_s2] sm:$0xff]  ;;  %v1848_v12 = vld [vmem:[%s2725_s0 + $0x28] sm:$0x3f]  ;;  %v32_v15 = vld [vmem:[%s2726_s2 + $0x10] sm:$0xff]  ;;  %vm1745_vm4 = vcmask 7168   ;;  %vm1747_vm5 = vcmask 15360  }
   0x5   :  { %2093 = vmatprep.subr.bf16.mxu0 %v2316_v0  ;;  %2096 = vmatprep.subr.bf16.mxu1 %v2316_v0  ;;  %v2431_v14 = vpack.c.bf16 %v31_v11, %v30_v10  ;;  %v33_v16 = vld [vmem:[%s2726_s2 + $0x18] sm:$0xff]  ;;  %v1838_v19 = vld [vmem:[%s2727_s3] ss:$0 sm:$0xff]  ;;  %s2319_s3 = smov 96   ;;  %vm1749_vm6 = vcmask 23552   ;;  %vm1751_vm7 = vcmask 31744  }
   0x6   :  { %v1852_v17 = vld [vmem:[%s2725_s0 + $0x38] sm:$0x3f]  ;;  %v2449_v18 = vpack.c.bf16 %v33_v16, %v32_v15  ;;  %vm1753_vm8 = vcmask 39936   ;;  %vm1755_vm9 = vcmask 48128   ;;  %vm1757_vm10 = vcmask 56320  }
   0x7   :  { %1948 = vmatmul.mubr.msk.f32.vlgmr.msra.gmra.mrb[0].mxu0 %vm42_vm1, %v35_v5  ;;  %1955 = vmatmul.mubr.msk.f32.vlgmr.msra.gmra.mrb[0].mxu1 %vm42_vm1, %v1840_v6  ;;  %vm1772_vm11 = vcmask 62464  }
   0x8   :  { %2095 = vmatpush3.bf16.msra.mxu0 %v2088_v4  ;;  %1961 = vmatprep.mubr.msk.f32.mxu0 %vm2317_vm0, %v2318_v3 }
   0x9   :  { %2099 = vmatprep.subr.bf16.mxu0 %v2316_v0  ;;  %2098 = vmatpush3.bf16.msra.mxu1 %v2088_v4 }
   0xa   :  { %1968 = vmatprep.mubr.msk.f32.mxu1 %vm2317_vm0, %v2318_v3  ;;  %2102 = vmatprep.subr.bf16.mxu1 %v2316_v0 }
   0xb   :  { %1962 = vmatmul.mubr.msk.f32.vlgmr.msra.gmra.mrb[2].mxu0 %vm42_vm1, %v1842_v7 }
   0xc   :  { %2101 = vmatpush3.bf16.msra.mxu0 %v2088_v4  ;;  %1975 = vmatprep.mubr.msk.f32.mxu0 %vm2317_vm0, %v2318_v3 }
   0xd   :  { %2105 = vmatprep.subr.bf16.mxu0 %v2316_v0  ;;  %1969 = vmatmul.mubr.msk.f32.vlgmr.msra.gmra.mrb[2].mxu1 %vm42_vm1, %v1844_v8 }
   0xe   :  { %2104 = vmatpush3.bf16.msra.mxu1 %v2088_v4  ;;  %1982 = vmatprep.mubr.msk.f32.mxu1 %vm2317_vm0, %v2318_v3 }
   0xf   :  { %1976 = vmatmul.mubr.msk.f32.vlgmr.msra.gmra.mrb[4].mxu0 %vm42_vm1, %v1846_v9  ;;  %2108 = vmatprep.subr.bf16.mxu1 %v2316_v0 }
  0x10   :  { %2107 = vmatpush3.bf16.msra.mxu0 %v2088_v4  ;;  %1989 = vmatprep.mubr.msk.f32.mxu0 %vm2317_vm0, %v2318_v3 }
  0x11   :  { %2111 = vmatprep.subr.bf16.mxu0 %v2316_v0  ;;  %1983 = vmatmul.mubr.msk.f32.vlgmr.msra.gmra.mrb[4].mxu1 %vm42_vm1, %v1848_v12 }
  0x12   :  { %2110 = vmatpush3.bf16.msra.mxu1 %v2088_v4  ;;  %1996 = vmatprep.mubr.msk.f32.mxu1 %vm2317_vm0, %v2318_v3 }
  0x13   :  { %1990 = vmatmul.mubr.msk.f32.vlgmr.msra.gmra.mrb[6].mxu0 %vm42_vm1, %v1850_v13  ;;  %2117 = vmatprep.subr.bf16.mxu1 %v2316_v0 }
  0x14   :  { %2113 = vmatpush3.bf16.msra.mxu0 %v2431_v14  ;;  %2007 = vmatprep.mubr.msk.f32.mxu0 %vm2317_vm0, %v2318_v3 }
  0x15   :  { %2114 = vmatprep.subr.bf16.mxu0 %v2316_v0  ;;  %1997 = vmatmul.mubr.msk.f32.vlgmr.msra.gmra.mrb[6].mxu1 %vm42_vm1, %v1852_v17 }
  0x16   :  { %2119 = vmatpush3.bf16.msra.mxu1 %v2431_v14  ;;  %2018 = vmatprep.mubr.msk.f32.mxu1 %vm2317_vm0, %v2318_v3 }
  0x17   :  { %2120 = vmatprep.subr.bf16.mxu1 %v2316_v0 }
  0x18   :  { %2116 = vmatpush3.bf16.msra.mxu0 %v2449_v18 }
  0x19   :  { %2123 = vmatprep.subr.bf16.mxu0 %v2316_v0 }
  0x1a   :  { %2122 = vmatpush3.bf16.msra.mxu1 %v2449_v18 }
  0x1b   :  { %2008 = vmatmul.mubr.f32.vlgmr.msra.gmra.mrb[8].mxu0 %v2318_v3  ;;  %2129 = vmatprep.subr.bf16.mxu1 %v2316_v0 }
  0x1c   :  { %2125 = vmatpush3.bf16.msra.mxu0 %v2431_v14  ;;  %2029 = vmatprep.mubr.msk.f32.mxu0 %vm2317_vm0, %v2318_v3 }
  0x1d   :  { %2126 = vmatprep.subr.bf16.mxu0 %v2316_v0 }
  0x20   :  { %2128 = vmatpush3.bf16.msra.mxu0 %v2449_v18 }
  0x21   :  { %2135 = vmatprep.subr.bf16.mxu0 %v2316_v0 }
  0xda   :  { %v112_v20 = vpop.f32.mrb[0].mxu0  ;;  %v187_v21 = vpop.f32.mrb[0].mxu1 }
  0xdb   :  { %v1949_v22 = vpop.f32.mrb[1].mxu0  ;;  %v2473_v23 = vadd.f32 %v1838_v19, %v187_v21  ;;  %v1956_v24 = vpop.f32.mrb[1].mxu1  ;;  %v2485_v42 = vadd.f32 %v1838_v19, %v112_v20 }
  0xde   :  { %v262_v25 = vpop.f32.mrb[2].mxu0 }
  0xdf   :  { %v2475_v26 = vadd.f32 %v1838_v19, %v262_v25  ;;  %v1963_v27 = vpop.f32.mrb[3].mxu0 }
  0xe0   :  { %v337_v28 = vpop.f32.mrb[2].mxu1 }
  0xe1   :  { %v2477_v29 = vadd.f32 %v1838_v19, %v337_v28  ;;  %v1970_v30 = vpop.f32.mrb[3].mxu1 }
  0xe2   :  { %v412_v31 = vpop.f32.mrb[4].mxu0 }
  0xe3   :  { %v2479_v32 = vadd.f32 %v1838_v19, %v412_v31  ;;  %v1977_v33 = vpop.f32.mrb[5].mxu0 }
  0xe4   :  { %v487_v34 = vpop.f32.mrb[4].mxu1 }
  0xe5   :  { %v2481_v35 = vadd.f32 %v1838_v19, %v487_v34  ;;  %v1984_v36 = vpop.f32.mrb[5].mxu1 }
  0xe6   :  { %v562_v37 = vpop.f32.mrb[6].mxu0 }
  0xe7   :  { %v2483_v38 = vadd.f32 %v1838_v19, %v562_v37  ;;  %v1991_v39 = vpop.f32.mrb[7].mxu0 }
  0xe8   :  { %v637_v40 = vpop.f32.mrb[6].mxu1 }
  0xe9   :  { %v1998_v41 = vpop.f32.mrb[7].mxu1  ;;  %v2487_v43 = vadd.f32 %v1838_v19, %v637_v40 }
  0xee   :  { %v711_v44 = vpop.f32.mrb[8].mxu0 }
  0xef   :  { %v715_v45 = vadd.f32 %v711_v44, %v2485_v42  ;;  %v2009_v46 = vpop.f32.mrb[9].mxu0  ;;  %v716_v47 = vadd.f32 %v711_v44, %v2487_v43 }
  0xf1   :  { %2184 = vtanh.f32 %v715_v45  ;;  %v1854_v50 = vmul.f32 -1.442695, %v715_v45  ;;  %v1855_v51 = vmul.f32 -1.442695, %v716_v47 }
  0xf2   :  { %2186 = vtanh.f32 %v716_v47 }
  0xf3   :  { %2188 = vpow2.f32 %v1854_v50 }
  0xf4   :  { %2190 = vpow2.f32 %v1855_v51 }
  0xfb   :  { %v2185_v48 = vpop.eup %2184 }
  0xfc   :  { %726 = vrot.lane.b32.xlu0 %v2185_v48, %s2319_s3  ;;  %v2187_v49 = vpop.eup %2186 }
  0xfd   :  { %v2189_v52 = vpop.eup %2188 }
  0xfe   :  { %v720_v53 = vadd.f32 1.0, %v2189_v52  ;;  %v2191_v54 = vpop.eup %2190 }
  0xff   :  { %v744_v55 = vadd.f32 1.0, %v2191_v54 }
 0x100   :  { %750 = vrot.lane.b32.xlu0 %v2187_v49, %s2319_s3  ;;  %2192 = vrcp.f32 %v720_v53 }
 0x101   :  { %2194 = vrcp.f32 %v744_v55 }
 0x10a   :  { %v2193_v56 = vpop.eup %2192 }
 0x10b   :  { %v2195_v59 = vpop.eup %2194  ;;  %v724_v62 = vmul.f32 0.0, %v2193_v56 }
 0x10c   :  { %v748_v2 = vmul.f32 0.0, %v2195_v59 }
 0x16e   :  { %v727_v57 = vpop.permute.xlu0 %726 }
 0x16f   :  { %v729_v58 = vmul.f32 %v2193_v56, %v727_v57 }
 0x171   :  { %731 = vrot.lane.b32.xlu1 %v729_v58, %s2320_s28 }
 0x172   :  { %v751_v60 = vpop.permute.xlu0 %750 }
 0x173   :  { %v753_v61 = vmul.f32 %v2195_v59, %v751_v60 }
 0x175   :  { %755 = vrot.lane.b32.xlu1 %v753_v61, %s2320_s28 }
 0x1e3   :  { %v732_v63 = vpop.permute.xlu1 %731 }
 0x1e4   :  { %v734_v1 = vadd.f32 %v732_v63, %v724_v62 }
 0x1e6   :  { %2196 = vtanh.f32 %v734_v1 }
 0x1e7   :  { %v756_v4 = vpop.permute.xlu1 %755 }
 0x1e8   :  { %v758_v5 = vadd.f32 %v756_v4, %v748_v2 }
 0x1ea   :  { %2198 = vtanh.f32 %v758_v5 }
 0x1f0   :  { %v2197_v6 = vpop.eup %2196 }
 0x1f1   :  { %737 = vrot.lane.b32.xlu0 %v2197_v6, %s2321_s29 }
 0x1f4   :  { %v2199_v7 = vpop.eup %2198 }
 0x1f5   :  { %761 = vrot.lane.b32.xlu1 %v2199_v7, %s2321_s29 }
 0x263   :  { %v738_v8 = vpop.permute.xlu0 %737 }
 0x264   :  { %v740_v9 = vmul.f32 %v2193_v56, %v738_v8 }
 0x266   :  { %766 = vrot.lane.b32.xlu0 %v740_v9, %s2322_s30 }
 0x267   :  { %v762_v10 = vpop.permute.xlu1 %761 }
 0x268   :  { %v764_v11 = vmul.f32 %v2195_v59, %v762_v10 }
 0x26a   :  { %770 = vrot.lane.b32.xlu1 %v764_v11, %s2321_s29 }
 0x2d8   :  { %v2499_v12 = vpop.permute.xlu0 %766 }
 0x2dc   :  { %v2501_v13 = vpop.permute.xlu1 %770 }
 0x2dd   :  { %v773_v15 = vsel %vm42_vm1, %v2499_v12, %v2501_v13 }
 0x2de   :  { %2019 = vmatmul.mubr.msk.f32.vlgmr.msra.gmra.mrb[8].mxu1 %vm641_vm2, %v773_v15 }
 0x2df   :  { %2131 = vmatpush3.bf16.msra.mxu1 %v2431_v14  ;;  %2040 = vmatprep.mubr.msk.f32.mxu1 %vm2317_vm0, %v2318_v3 }
 0x2e0   :  { %2132 = vmatprep.subr.bf16.mxu1 %v2316_v0 }
 0x2e3   :  { %2134 = vmatpush3.bf16.msra.mxu1 %v2449_v18 }
 0x2e4   :  { %2141 = vmatprep.subr.bf16.mxu1 %v2316_v0 }
 0x3b1   :  { %v843_v16 = vpop.f32.mrb[8].mxu1 }
 0x3b2   :  { %v847_v17 = vadd.f32 %v843_v16, %v2473_v23  ;;  %v848_v19 = vadd.f32 %v843_v16, %v2483_v38  ;;  %v2020_v20 = vpop.f32.mrb[9].mxu1 }
 0x3b4   :  { %2200 = vtanh.f32 %v847_v17  ;;  %v1857_v24 = vmul.f32 -1.442695, %v847_v17  ;;  %v1858_v25 = vmul.f32 -1.442695, %v848_v19 }
 0x3b5   :  { %2202 = vtanh.f32 %v848_v19 }
 0x3b6   :  { %2204 = vpow2.f32 %v1857_v24 }
 0x3b7   :  { %2206 = vpow2.f32 %v1858_v25 }
 0x3be   :  { %v2201_v21 = vpop.eup %2200 }
 0x3bf   :  { %v2203_v22 = vpop.eup %2202  ;;  %858 = vrot.lane.b32.xlu0 %v2201_v21, %s2319_s3 }
 0x3c0   :  { %882 = vrot.lane.b32.xlu1 %v2203_v22, %s2319_s3  ;;  %v2205_v27 = vpop.eup %2204 }
 0x3c1   :  { %v2207_v28 = vpop.eup %2206  ;;  %v852_v30 = vadd.f32 1.0, %v2205_v27 }
 0x3c2   :  { %v876_v31 = vadd.f32 1.0, %v2207_v28 }
 0x3c3   :  { %2208 = vrcp.f32 %v852_v30 }
 0x3c4   :  { %2210 = vrcp.f32 %v876_v31 }
 0x3cd   :  { %v2209_v33 = vpop.eup %2208 }
 0x3ce   :  { %v2211_v36 = vpop.eup %2210  ;;  %v856_v41 = vmul.f32 %v2209_v33, %v734_v1 }
 0x3cf   :  { %v880_v44 = vmul.f32 %v2211_v36, %v758_v5 }
 0x431   :  { %v859_v34 = vpop.permute.xlu0 %858 }
 0x432   :  { %v883_v37 = vpop.permute.xlu1 %882  ;;  %v861_v39 = vmul.f32 %v2209_v33, %v859_v34 }
 0x433   :  { %v885_v40 = vmul.f32 %v2211_v36, %v883_v37 }
 0x434   :  { %863 = vrot.lane.b32.xlu0 %v861_v39, %s2320_s28 }
 0x435   :  { %887 = vrot.lane.b32.xlu1 %v885_v40, %s2320_s28 }
 0x4a6   :  { %v864_v45 = vpop.permute.xlu0 %863 }
 0x4a7   :  { %v888_v46 = vpop.permute.xlu1 %887  ;;  %v866_v47 = vadd.f32 %v864_v45, %v856_v41 }
 0x4a8   :  { %v890_v48 = vadd.f32 %v888_v46, %v880_v44 }
 0x4a9   :  { %2212 = vtanh.f32 %v866_v47 }
 0x4aa   :  { %2214 = vtanh.f32 %v890_v48 }
 0x4b3   :  { %v2213_v49 = vpop.eup %2212 }
 0x4b4   :  { %v2215_v50 = vpop.eup %2214  ;;  %869 = vrot.lane.b32.xlu0 %v2213_v49, %s2321_s29 }
 0x4b5   :  { %893 = vrot.lane.b32.xlu1 %v2215_v50, %s2321_s29 }
 0x526   :  { %v870_v51 = vpop.permute.xlu0 %869 }
 0x527   :  { %v894_v52 = vpop.permute.xlu1 %893  ;;  %v872_v53 = vmul.f32 %v2209_v33, %v870_v51 }
 0x528   :  { %v896_v54 = vmul.f32 %v2211_v36, %v894_v52 }
 0x529   :  { %898 = vrot.lane.b32.xlu0 %v872_v53, %s2322_s30 }
 0x52a   :  { %902 = vrot.lane.b32.xlu1 %v896_v54, %s2321_s29 }
 0x59b   :  { %v2523_v55 = vpop.permute.xlu0 %898 }
 0x59c   :  { %v2525_v56 = vpop.permute.xlu1 %902 }
 0x59d   :  { %v905_v57 = vsel %vm42_vm1, %v2523_v55, %v2525_v56 }
 0x59e   :  { %2030 = vmatmul.mubr.msk.f32.vlgmr.msra.gmra.mrb[10].mxu0 %vm641_vm2, %v905_v57 }
 0x59f   :  { %2137 = vmatpush3.bf16.msra.mxu0 %v2431_v14  ;;  %2051 = vmatprep.mubr.msk.f32.mxu0 %vm2317_vm0, %v2318_v3 }
 0x5a0   :  { %2138 = vmatprep.subr.bf16.mxu0 %v2316_v0 }
 0x5a3   :  { %2140 = vmatpush3.bf16.msra.mxu0 %v2449_v18 }
 0x5a4   :  { %2147 = vmatprep.subr.bf16.mxu0 %v2316_v0 }
 0x671   :  { %v975_v58 = vpop.f32.mrb[10].mxu0 }
 0x672   :  { %v979_v59 = vadd.f32 %v975_v58, %v2475_v26  ;;  %v980_v60 = vadd.f32 %v975_v58, %v2481_v35  ;;  %v2031_v61 = vpop.f32.mrb[11].mxu0 }
 0x674   :  { %2216 = vtanh.f32 %v979_v59  ;;  %v1860_v1 = vmul.f32 -1.442695, %v979_v59  ;;  %v1861_v2 = vmul.f32 -1.442695, %v980_v60 }
 0x675   :  { %2218 = vtanh.f32 %v980_v60 }
 0x676   :  { %2220 = vpow2.f32 %v1860_v1 }
 0x677   :  { %2222 = vpow2.f32 %v1861_v2 }
 0x67e   :  { %v2217_v62 = vpop.eup %2216 }
 0x67f   :  { %v2219_v63 = vpop.eup %2218  ;;  %990 = vrot.lane.b32.xlu0 %v2217_v62, %s2319_s3 }
 0x680   :  { %1014 = vrot.lane.b32.xlu1 %v2219_v63, %s2319_s3  ;;  %v2221_v4 = vpop.eup %2220 }
 0x681   :  { %v2223_v5 = vpop.eup %2222  ;;  %v984_v6 = vadd.f32 1.0, %v2221_v4 }
 0x682   :  { %v1008_v7 = vadd.f32 1.0, %v2223_v5 }
 0x683   :  { %2224 = vrcp.f32 %v984_v6 }
 0x684   :  { %2226 = vrcp.f32 %v1008_v7 }
 0x68d   :  { %v2225_v8 = vpop.eup %2224 }
 0x68e   :  { %v2227_v10 = vpop.eup %2226  ;;  %v988_v17 = vmul.f32 %v2225_v8, %v866_v47 }
 0x68f   :  { %v1012_v19 = vmul.f32 %v2227_v10, %v890_v48 }
 0x6f1   :  { %v991_v9 = vpop.permute.xlu0 %990 }
 0x6f2   :  { %v1015_v11 = vpop.permute.xlu1 %1014  ;;  %v993_v15 = vmul.f32 %v2225_v8, %v991_v9 }
 0x6f3   :  { %v1017_v16 = vmul.f32 %v2227_v10, %v1015_v11 }
 0x6f4   :  { %995 = vrot.lane.b32.xlu0 %v993_v15, %s2320_s28 }
 0x6f5   :  { %1019 = vrot.lane.b32.xlu1 %v1017_v16, %s2320_s28 }
 0x766   :  { %v996_v20 = vpop.permute.xlu0 %995 }
 0x767   :  { %v1020_v21 = vpop.permute.xlu1 %1019  ;;  %v998_v22 = vadd.f32 %v996_v20, %v988_v17 }
 0x768   :  { %v1022_v24 = vadd.f32 %v1020_v21, %v1012_v19 }
 0x769   :  { %2228 = vtanh.f32 %v998_v22 }
 0x76a   :  { %2230 = vtanh.f32 %v1022_v24 }
 0x773   :  { %v2229_v25 = vpop.eup %2228 }
 0x774   :  { %v2231_v27 = vpop.eup %2230  ;;  %1001 = vrot.lane.b32.xlu0 %v2229_v25, %s2321_s29 }
 0x775   :  { %1025 = vrot.lane.b32.xlu1 %v2231_v27, %s2321_s29 }
 0x7e6   :  { %v1002_v28 = vpop.permute.xlu0 %1001 }
 0x7e7   :  { %v1026_v30 = vpop.permute.xlu1 %1025  ;;  %v1004_v31 = vmul.f32 %v2225_v8, %v1002_v28 }
 0x7e8   :  { %v1028_v33 = vmul.f32 %v2227_v10, %v1026_v30 }
 0x7e9   :  { %1030 = vrot.lane.b32.xlu0 %v1004_v31, %s2322_s30 }
 0x7ea   :  { %1034 = vrot.lane.b32.xlu1 %v1028_v33, %s2321_s29 }
 0x85b   :  { %v2547_v34 = vpop.permute.xlu0 %1030 }
 0x85c   :  { %v2549_v36 = vpop.permute.xlu1 %1034 }
 0x85d   :  { %v1037_v37 = vsel %vm42_vm1, %v2547_v34, %v2549_v36 }
 0x85e   :  { %2041 = vmatmul.mubr.msk.f32.vlgmr.msra.gmra.mrb[10].mxu1 %vm641_vm2, %v1037_v37 }
 0x85f   :  { %2143 = vmatpush3.bf16.msra.mxu1 %v2431_v14  ;;  %2062 = vmatprep.mubr.msk.f32.mxu1 %vm2317_vm0, %v2318_v3 }
 0x860   :  { %2144 = vmatprep.subr.bf16.mxu1 %v2316_v0 }
 0x863   :  { %2146 = vmatpush3.bf16.msra.mxu1 %v2449_v18 }
 0x864   :  { %2153 = vmatprep.subr.bf16.mxu1 %v2316_v0 }
 0x931   :  { %v1107_v39 = vpop.f32.mrb[10].mxu1 }
 0x932   :  { %v1111_v40 = vadd.f32 %v1107_v39, %v2477_v29  ;;  %v1112_v41 = vadd.f32 %v1107_v39, %v2479_v32  ;;  %v2042_v44 = vpop.f32.mrb[11].mxu1 }
 0x934   :  { %2232 = vtanh.f32 %v1111_v40  ;;  %v1863_v47 = vmul.f32 -1.442695, %v1111_v40  ;;  %v1864_v48 = vmul.f32 -1.442695, %v1112_v41 }
 0x935   :  { %2234 = vtanh.f32 %v1112_v41 }
 0x936   :  { %2236 = vpow2.f32 %v1863_v47 }
 0x937   :  { %2238 = vpow2.f32 %v1864_v48 }
 0x93e   :  { %v2233_v45 = vpop.eup %2232 }
 0x93f   :  { %v2235_v46 = vpop.eup %2234  ;;  %1122 = vrot.lane.b32.xlu0 %v2233_v45, %s2319_s3 }
 0x940   :  { %1146 = vrot.lane.b32.xlu1 %v2235_v46, %s2319_s3  ;;  %v2237_v49 = vpop.eup %2236 }
 0x941   :  { %v2239_v50 = vpop.eup %2238  ;;  %v1116_v51 = vadd.f32 1.0, %v2237_v49 }
 0x942   :  { %v1140_v52 = vadd.f32 1.0, %v2239_v50 }
 0x943   :  { %2240 = vrcp.f32 %v1116_v51 }
 0x944   :  { %2242 = vrcp.f32 %v1140_v52 }
 0x94d   :  { %v2241_v53 = vpop.eup %2240 }
 0x94e   :  { %v2243_v57 = vpop.eup %2242  ;;  %v1120_v61 = vmul.f32 %v2241_v53, %v998_v22 }
 0x94f   :  { %v1144_v62 = vmul.f32 %v2243_v57, %v1022_v24 }
 0x9b1   :  { %v1123_v54 = vpop.permute.xlu0 %1122 }
 0x9b2   :  { %v1147_v58 = vpop.permute.xlu1 %1146  ;;  %v1125_v59 = vmul.f32 %v2241_v53, %v1123_v54 }
 0x9b3   :  { %v1149_v60 = vmul.f32 %v2243_v57, %v1147_v58 }
 0x9b4   :  { %1127 = vrot.lane.b32.xlu0 %v1125_v59, %s2320_s28 }
 0x9b5   :  { %1151 = vrot.lane.b32.xlu1 %v1149_v60, %s2320_s28 }
 0xa26   :  { %v1128_v63 = vpop.permute.xlu0 %1127 }
 0xa27   :  { %v1152_v1 = vpop.permute.xlu1 %1151  ;;  %v1130_v2 = vadd.f32 %v1128_v63, %v1120_v61 }
 0xa28   :  { %v1154_v4 = vadd.f32 %v1152_v1, %v1144_v62 }
 0xa29   :  { %2244 = vtanh.f32 %v1130_v2 }
 0xa2a   :  { %2246 = vtanh.f32 %v1154_v4 }
 0xa33   :  { %v2245_v5 = vpop.eup %2244 }
 0xa34   :  { %v2247_v6 = vpop.eup %2246  ;;  %1133 = vrot.lane.b32.xlu0 %v2245_v5, %s2321_s29 }
 0xa35   :  { %1157 = vrot.lane.b32.xlu1 %v2247_v6, %s2321_s29 }
 0xaa6   :  { %v1134_v7 = vpop.permute.xlu0 %1133 }
 0xaa7   :  { %v1158_v8 = vpop.permute.xlu1 %1157  ;;  %v1136_v9 = vmul.f32 %v2241_v53, %v1134_v7 }
 0xaa8   :  { %v1160_v10 = vmul.f32 %v2243_v57, %v1158_v8 }
 0xaa9   :  { %1162 = vrot.lane.b32.xlu0 %v1136_v9, %s2322_s30 }
 0xaaa   :  { %1166 = vrot.lane.b32.xlu1 %v1160_v10, %s2321_s29 }
 0xb1b   :  { %v2571_v11 = vpop.permute.xlu0 %1162 }
 0xb1c   :  { %v2573_v15 = vpop.permute.xlu1 %1166 }
 0xb1d   :  { %v1169_v16 = vsel %vm42_vm1, %v2571_v11, %v2573_v15 }
 0xb1e   :  { %2052 = vmatmul.mubr.msk.f32.vlgmr.msra.gmra.mrb[12].mxu0 %vm641_vm2, %v1169_v16 }
 0xb1f   :  { %2149 = vmatpush3.bf16.msra.mxu0 %v2431_v14  ;;  %2073 = vmatprep.mubr.msk.f32.mxu0 %vm2317_vm0, %v2318_v3 }
 0xb20   :  { %2150 = vmatprep.subr.bf16.mxu0 %v2316_v0 }
 0xb23   :  { %2152 = vmatpush3.bf16.msra.mxu0 %v2449_v18 }
 0xbf1   :  { %v1239_v17 = vpop.f32.mrb[12].mxu0 }
 0xbf2   :  { %v1243_v19 = vadd.f32 %v1239_v17, %v2479_v32  ;;  %v1244_v20 = vadd.f32 %v1239_v17, %v2477_v29  ;;  %v2053_v21 = vpop.f32.mrb[13].mxu0 }
 0xbf4   :  { %2248 = vtanh.f32 %v1243_v19  ;;  %v1866_v25 = vmul.f32 -1.442695, %v1243_v19  ;;  %v1867_v27 = vmul.f32 -1.442695, %v1244_v20 }
 0xbf5   :  { %2250 = vtanh.f32 %v1244_v20 }
 0xbf6   :  { %2252 = vpow2.f32 %v1866_v25 }
 0xbf7   :  { %2254 = vpow2.f32 %v1867_v27 }
 0xbfe   :  { %v2249_v22 = vpop.eup %2248 }
 0xbff   :  { %v2251_v24 = vpop.eup %2250  ;;  %1254 = vrot.lane.b32.xlu0 %v2249_v22, %s2319_s3 }
 0xc00   :  { %1278 = vrot.lane.b32.xlu1 %v2251_v24, %s2319_s3  ;;  %v2253_v28 = vpop.eup %2252 }
 0xc01   :  { %v2255_v30 = vpop.eup %2254  ;;  %v1248_v31 = vadd.f32 1.0, %v2253_v28 }
 0xc02   :  { %v1272_v33 = vadd.f32 1.0, %v2255_v30 }
 0xc03   :  { %2256 = vrcp.f32 %v1248_v31 }
 0xc04   :  { %2258 = vrcp.f32 %v1272_v33 }
 0xc0d   :  { %v2257_v29 = vpop.eup %2256 }
 0xc0e   :  { %v2259_v37 = vpop.eup %2258  ;;  %v1252_v44 = vmul.f32 %v2257_v29, %v1130_v2 }
 0xc0f   :  { %v1276_v45 = vmul.f32 %v2259_v37, %v1154_v4 }
 0xc71   :  { %v1255_v32 = vpop.permute.xlu0 %1254 }
 0xc72   :  { %v1279_v39 = vpop.permute.xlu1 %1278  ;;  %v1257_v40 = vmul.f32 %v2257_v29, %v1255_v32 }
 0xc73   :  { %v1281_v41 = vmul.f32 %v2259_v37, %v1279_v39 }
 0xc74   :  { %1259 = vrot.lane.b32.xlu0 %v1257_v40, %s2320_s28 }
 0xc75   :  { %1283 = vrot.lane.b32.xlu1 %v1281_v41, %s2320_s28 }
 0xce6   :  { %v1260_v46 = vpop.permute.xlu0 %1259 }
 0xce7   :  { %v1284_v47 = vpop.permute.xlu1 %1283  ;;  %v1262_v48 = vadd.f32 %v1260_v46, %v1252_v44 }
 0xce8   :  { %v1286_v49 = vadd.f32 %v1284_v47, %v1276_v45 }
 0xce9   :  { %2260 = vtanh.f32 %v1262_v48 }
 0xcea   :  { %2262 = vtanh.f32 %v1286_v49 }
 0xcf3   :  { %v2261_v50 = vpop.eup %2260 }
 0xcf4   :  { %v2263_v51 = vpop.eup %2262  ;;  %1265 = vrot.lane.b32.xlu0 %v2261_v50, %s2321_s29 }
 0xcf5   :  { %1289 = vrot.lane.b32.xlu1 %v2263_v51, %s2321_s29 }
 0xd66   :  { %v1266_v52 = vpop.permute.xlu0 %1265 }
 0xd67   :  { %v1290_v53 = vpop.permute.xlu1 %1289  ;;  %v1268_v54 = vmul.f32 %v2257_v29, %v1266_v52 }
 0xd68   :  { %v1292_v57 = vmul.f32 %v2259_v37, %v1290_v53 }
 0xd69   :  { %1294 = vrot.lane.b32.xlu0 %v1268_v54, %s2322_s30 }
 0xd6a   :  { %1298 = vrot.lane.b32.xlu1 %v1292_v57, %s2321_s29 }
 0xddb   :  { %v2594_v58 = vpop.permute.xlu0 %1294 }
 0xddc   :  { %v2596_v59 = vpop.permute.xlu1 %1298 }
 0xddd   :  { %v1301_v60 = vsel %vm42_vm1, %v2594_v58, %v2596_v59 }
 0xdde   :  { %2063 = vmatmul.mubr.msk.f32.vlgmr.msra.gmra.mrb[12].mxu1 %vm641_vm2, %v1301_v60 }
 0xddf   :  { %2155 = vmatpush3.bf16.msra.mxu1 %v2431_v14  ;;  %2084 = vmatprep.mubr.msk.f32.mxu1 %vm2317_vm0, %v2318_v3 }
 0xde0   :  { %2156 = vmatprep.subr.bf16.mxu1 %v2316_v0 }
 0xde3   :  { %2158 = vmatpush3.bf16.msra.mxu1 %v2449_v18 }
 0xeb1   :  { %v1371_v61 = vpop.f32.mrb[12].mxu1 }
 0xeb2   :  { %v1375_v62 = vadd.f32 %v1371_v61, %v2481_v35  ;;  %v1376_v63 = vadd.f32 %v1371_v61, %v2475_v26  ;;  %v2064_v1 = vpop.f32.mrb[13].mxu1 }
 0xeb4   :  { %2264 = vtanh.f32 %v1375_v62  ;;  %v1869_v14 = vmul.f32 -1.442695, %v1375_v62  ;;  %v1870_v3 = vmul.f32 -1.442695, %v1376_v63 }
 0xeb5   :  { %2266 = vtanh.f32 %v1376_v63 }
 0xeb6   :  { %2268 = vpow2.f32 %v1869_v14 }
 0xeb7   :  { %2270 = vpow2.f32 %v1870_v3 }
 0xebe   :  { %v2265_v2 = vpop.eup %2264 }
 0xebf   :  { %v2267_v4 = vpop.eup %2266  ;;  %1386 = vrot.lane.b32.xlu0 %v2265_v2, %s2319_s3 }
 0xec0   :  { %1410 = vrot.lane.b32.xlu1 %v2267_v4, %s2319_s3  ;;  %v2269_v0 = vpop.eup %2268 }
 0xec1   :  { %v2271_v18 = vpop.eup %2270  ;;  %v1380_v5 = vadd.f32 1.0, %v2269_v0 }
 0xec2   :  { %v1404_v6 = vadd.f32 1.0, %v2271_v18 }
 0xec3   :  { %2272 = vrcp.f32 %v1380_v5 }
 0xec4   :  { %2274 = vrcp.f32 %v1404_v6 }
 0xecd   :  { %v2273_v26 = vpop.eup %2272 }
 0xece   :  { %v2275_v7 = vpop.eup %2274  ;;  %v1384_v16 = vmul.f32 %v2273_v26, %v1262_v48 }
 0xecf   :  { %v1408_v17 = vmul.f32 %v2275_v7, %v1286_v49 }
 0xf31   :  { %v1387_v35 = vpop.permute.xlu0 %1386 }
 0xf32   :  { %v1411_v8 = vpop.permute.xlu1 %1410  ;;  %v1389_v9 = vmul.f32 %v2273_v26, %v1387_v35 }
 0xf33   :  { %v1413_v10 = vmul.f32 %v2275_v7, %v1411_v8 }
 0xf34   :  { %1391 = vrot.lane.b32.xlu0 %v1389_v9, %s2320_s28 }
 0xf35   :  { %1415 = vrot.lane.b32.xlu1 %v1413_v10, %s2320_s28 }
 0xfa6   :  { %v1392_v19 = vpop.permute.xlu0 %1391 }
 0xfa7   :  { %v1416_v20 = vpop.permute.xlu1 %1415  ;;  %v1394_v21 = vadd.f32 %v1392_v19, %v1384_v16 }
 0xfa8   :  { %v1418_v22 = vadd.f32 %v1416_v20, %v1408_v17 }
 0xfa9   :  { %2276 = vtanh.f32 %v1394_v21 }
 0xfaa   :  { %2278 = vtanh.f32 %v1418_v22 }
 0xfb3   :  { %v2277_v24 = vpop.eup %2276 }
 0xfb4   :  { %v2279_v25 = vpop.eup %2278  ;;  %1397 = vrot.lane.b32.xlu0 %v2277_v24, %s2321_s29 }
 0xfb5   :  { %1421 = vrot.lane.b32.xlu1 %v2279_v25, %s2321_s29 }
0x1026   :  { %v1398_v27 = vpop.permute.xlu0 %1397 }
0x1027   :  { %v1422_v28 = vpop.permute.xlu1 %1421  ;;  %v1400_v30 = vmul.f32 %v2273_v26, %v1398_v27 }
0x1028   :  { %v1424_v31 = vmul.f32 %v2275_v7, %v1422_v28 }
0x1029   :  { %1426 = vrot.lane.b32.xlu0 %v1400_v30, %s2322_s30 }
0x102a   :  { %1430 = vrot.lane.b32.xlu1 %v1424_v31, %s2321_s29 }
0x109b   :  { %v2617_v33 = vpop.permute.xlu0 %1426 }
0x109c   :  { %v2619_v29 = vpop.permute.xlu1 %1430 }
0x109d   :  { %v1433_v32 = vsel %vm42_vm1, %v2617_v33, %v2619_v29 }
0x109e   :  { %2074 = vmatmul.mubr.msk.f32.vlgmr.msra.gmra.mrb[14].mxu0 %vm641_vm2, %v1433_v32 }
0x1171   :  { %v1503_v37 = vpop.f32.mrb[14].mxu0 }
0x1172   :  { %v1507_v39 = vadd.f32 %v1503_v37, %v2483_v38  ;;  %v1508_v40 = vadd.f32 %v1503_v37, %v2473_v23  ;;  %v2075_v41 = vpop.f32.mrb[15].mxu0 }
0x1174   :  { %2280 = vtanh.f32 %v1507_v39  ;;  %v1872_v46 = vmul.f32 -1.442695, %v1507_v39  ;;  %v1873_v47 = vmul.f32 -1.442695, %v1508_v40 }
0x1175   :  { %2282 = vtanh.f32 %v1508_v40 }
0x1176   :  { %2284 = vpow2.f32 %v1872_v46 }
0x1177   :  { %2286 = vpow2.f32 %v1873_v47 }
0x117e   :  { %v2281_v44 = vpop.eup %2280 }
0x117f   :  { %v2283_v45 = vpop.eup %2282  ;;  %1518 = vrot.lane.b32.xlu0 %v2281_v44, %s2319_s3 }
0x1180   :  { %1542 = vrot.lane.b32.xlu1 %v2283_v45, %s2319_s3  ;;  %v2285_v48 = vpop.eup %2284 }
0x1181   :  { %v2287_v49 = vpop.eup %2286  ;;  %v1512_v50 = vadd.f32 1.0, %v2285_v48 }
0x1182   :  { %v1536_v51 = vadd.f32 1.0, %v2287_v49 }
0x1183   :  { %2288 = vrcp.f32 %v1512_v50 }
0x1184   :  { %2290 = vrcp.f32 %v1536_v51  ;;  %v2323_v51 = vmov 0  }
0x1185   :  { %2174 = vset.pattern.permute.xlu1 %v2323_v51  ;;  %2175 = vset.pattern.permute.xlu0 %v2323_v51  ;;  %v2330_v51 = vmov 6  }
0x118d   :  { %v2289_v23 = vpop.eup %2288 }
0x118e   :  { %v2291_v52 = vpop.eup %2290  ;;  %v1516_v60 = vmul.f32 %v2289_v23, %v1394_v21 }
0x118f   :  { %v1540_v61 = vmul.f32 %v2291_v52, %v1418_v22 }
0x11f1   :  { %v1519_v38 = vpop.permute.xlu0 %1518 }
0x11f2   :  { %v1543_v53 = vpop.permute.xlu1 %1542  ;;  %v1521_v54 = vmul.f32 %v2289_v23, %v1519_v38  ;;  %v2656_v38 = vsel %vm42_vm1, %v2547_v34, %v2619_v29 }
0x11f3   :  { %v1545_v57 = vmul.f32 %v2291_v52, %v1543_v53 }
0x11f4   :  { %1523 = vrot.lane.b32.xlu0 %v1521_v54, %s2320_s28  ;;  %v2665_v54 = vsel %vm42_vm1, %v2571_v11, %v2596_v59 }
0x11f5   :  { %1547 = vrot.lane.b32.xlu1 %v1545_v57, %s2320_s28 }
0x1266   :  { %v1524_v62 = vpop.permute.xlu0 %1523 }
0x1267   :  { %v1548_v63 = vpop.permute.xlu1 %1547  ;;  %v1526_v1 = vadd.f32 %v1524_v62, %v1516_v60 }
0x1268   :  { %v1550_v2 = vadd.f32 %v1548_v63, %v1540_v61  ;;  %v2677_v61 = vsel %vm42_vm1, %v2594_v58, %v2573_v15 }
0x1269   :  { %2292 = vtanh.f32 %v1526_v1 }
0x126a   :  { %2294 = vtanh.f32 %v1550_v2 }
0x1273   :  { %v2293_v4 = vpop.eup %2292 }
0x1274   :  { %v2295_v14 = vpop.eup %2294  ;;  %1529 = vrot.lane.b32.xlu0 %v2293_v4, %s2321_s29  ;;  %v2693_v4 = vsel %vm42_vm1, %v2617_v33, %v2549_v36 }
0x1275   :  { %1553 = vrot.lane.b32.xlu1 %v2295_v14, %s2321_s29 }
0x12e6   :  { %v1530_v3 = vpop.permute.xlu0 %1529 }
0x12e7   :  { %v1554_v0 = vpop.permute.xlu1 %1553  ;;  %v1532_v18 = vmul.f32 %v2289_v23, %v1530_v3  ;;  %v12_v23 = vstv %s2728_s5 }
0x12e8   :  { %v1556_v5 = vmul.f32 %v2291_v52, %v1554_v0  ;;  %13 = vst [vmem:[#allocation2] sm:$0x1] %v12_v23  ;;  %v1877_v52 = vld [vmem:[%s2729_s4] ss:$0 sm:$0xff] }
0x12e9   :  { %1558 = vrot.lane.b32.xlu0 %v1532_v18, %s2322_s30  ;;  %v1721_v53 = vmul.f32 %v1877_v52, %v2656_v38  ;;  %v1725_v34 = vmul.f32 %v1877_v52, %v2665_v54  ;;  %v1733_v18 = vmul.f32 %v1877_v52, %v2693_v4 }
0x12ea   :  { %1562 = vrot.lane.b32.xlu1 %v1556_v5, %s2321_s29 }
0x12eb   :  { %v1722_v60 = vsel %vm1713_vm3, %v1721_v53, 0.0  ;;  %v1726_v11 = vsel %vm1713_vm3, %v1725_v34, 0.0 }
0x12ef   :  { %v1878_v58 = vld [vmem:[#allocation2] ss:$0 sm:$0xff] }
0x135b   :  { %v2635_v6 = vpop.permute.xlu0 %1558 }
0x135c   :  { %v1563_v26 = vpop.permute.xlu1 %1562  ;;  %v2685_v62 = vsel %vm42_vm1, %v2635_v6, %v2525_v56 }
0x135d   :  { %v1565_v35 = vsel %vm42_vm1, %v2635_v6, %v1563_v26  ;;  %v2669_v57 = vsel %vm42_vm1, %v2523_v55, %v1563_v26  ;;  %v1729_v55 = vmul.f32 %v1877_v52, %v2677_v61  ;;  %v1734_v6 = vsel %vm1713_vm3, %v1733_v18, 0.0 }
0x135e   :  { %2085 = vmatmul.mubr.msk.f32.vlgmr.msra.gmra.mrb[14].mxu1 %vm641_vm2, %v1565_v35  ;;  %v1717_v29 = vmul.f32 %v1877_v52, %v2669_v57 }
0x135f   :  { %v1730_v63 = vsel %vm1713_vm3, %v1729_v55, 0.0 }
0x1360   :  { %v1718_v59 = vsel %vm1713_vm3, %v1717_v29, 0.0 }
0x1431   :  { %v1635_v7 = vpop.f32.mrb[14].mxu1 }
0x1432   :  { %v1639_v8 = vadd.f32 %v1635_v7, %v2487_v43  ;;  %v1640_v9 = vadd.f32 %v1635_v7, %v2485_v42  ;;  %v2086_v10 = vpop.f32.mrb[15].mxu1 }
0x1434   :  { %2296 = vtanh.f32 %v1639_v8  ;;  %v1875_v19 = vmul.f32 -1.442695, %v1639_v8  ;;  %v1876_v20 = vmul.f32 -1.442695, %v1640_v9 }
0x1435   :  { %2298 = vtanh.f32 %v1640_v9 }
0x1436   :  { %2300 = vpow2.f32 %v1875_v19 }
0x1437   :  { %2302 = vpow2.f32 %v1876_v20 }
0x143e   :  { %v2297_v16 = vpop.eup %2296 }
0x143f   :  { %v2299_v17 = vpop.eup %2298  ;;  %1650 = vrot.lane.b32.xlu1 %v2297_v16, %s2319_s3 }
0x1440   :  { %1674 = vrot.lane.b32.xlu0 %v2299_v17, %s2319_s3  ;;  %v2301_v21 = vpop.eup %2300 }
0x1441   :  { %v2303_v22 = vpop.eup %2302  ;;  %v1644_v24 = vadd.f32 1.0, %v2301_v21 }
0x1442   :  { %v1668_v25 = vadd.f32 1.0, %v2303_v22 }
0x1443   :  { %2304 = vrcp.f32 %v1644_v24 }
0x1444   :  { %2306 = vrcp.f32 %v1668_v25 }
0x144d   :  { %v2305_v42 = vpop.eup %2304 }
0x144e   :  { %v2307_v27 = vpop.eup %2306  ;;  %v1648_v32 = vmul.f32 %v2305_v42, %v1526_v1  ;;  %v1737_v1 = vmul.f32 %v1877_v52, %v2685_v62 }
0x144f   :  { %v1672_v37 = vmul.f32 %v2307_v27, %v1550_v2 }
0x1450   :  { %v1738_v15 = vsel %vm1713_vm3, %v1737_v1, 0.0 }
0x14b1   :  { %v1651_v43 = vpop.permute.xlu1 %1650 }
0x14b2   :  { %v1675_v28 = vpop.permute.xlu0 %1674  ;;  %v1653_v30 = vmul.f32 %v2305_v42, %v1651_v43 }
0x14b3   :  { %v1677_v31 = vmul.f32 %v2307_v27, %v1675_v28 }
0x14b4   :  { %1655 = vrot.lane.b32.xlu1 %v1653_v30, %s2320_s28 }
0x14b5   :  { %1679 = vrot.lane.b32.xlu0 %v1677_v31, %s2320_s28 }
0x1526   :  { %v1656_v39 = vpop.permute.xlu1 %1655 }
0x1527   :  { %v1680_v40 = vpop.permute.xlu0 %1679  ;;  %v1658_v41 = vadd.f32 %v1656_v39, %v1648_v32 }
0x1528   :  { %v1682_v44 = vadd.f32 %v1680_v40, %v1672_v37  ;;  %v2324_v40 = vmov 1  }
0x1529   :  { %2308 = vtanh.f32 %v1658_v41 }
0x152a   :  { %2310 = vtanh.f32 %v1682_v44 }
0x1533   :  { %v2309_v45 = vpop.eup %2308 }
0x1534   :  { %v2311_v46 = vpop.eup %2310  ;;  %1661 = vrot.lane.b32.xlu1 %v2309_v45, %s2321_s29 }
0x1535   :  { %1685 = vrot.lane.b32.xlu0 %v2311_v46, %s2321_s29  ;;  %v2325_v46 = vmov 2  }
0x15a6   :  { %v1662_v47 = vpop.permute.xlu1 %1661 }
0x15a7   :  { %v1686_v48 = vpop.permute.xlu0 %1685  ;;  %v1664_v49 = vmul.f32 %v2305_v42, %v1662_v47  ;;  %v1770_v42 = vld [vmem:[%s2730_s6] sm:$0x3f]  ;;  %v2326_v47 = vmov 7  }
0x15a8   :  { %v1688_v50 = vmul.f32 %v2307_v27, %v1686_v48  ;;  %v2327_v48 = vmov 3  }
0x15a9   :  { %1701 = vrot.lane.b32.xlu1 %v1664_v49, %s2322_s30  ;;  %v2328_v49 = vmov 4  }
0x15aa   :  { %1690 = vrot.lane.b32.xlu0 %v1688_v50, %s2321_s29  ;;  %v2329_v50 = vmov 5  }
0x15c9   :  { %1723 = vadd.xlane.f32.xlu0 %v1722_v60 }
0x15cd   :  { %1727 = vadd.xlane.f32.xlu0 %v1726_v11  ;;  %1719 = vadd.xlane.f32.xlu1 %v1718_v59 }
0x15d1   :  { %1731 = vadd.xlane.f32.xlu1 %v1730_v63 }
0x15d5   :  { %1739 = vadd.xlane.f32.xlu1 %v1738_v15 }
0x15e6   :  { %1766 = vperm.xlu1 %2174, %v1878_v58  }
0x15ea   :  { %2176 = vset.pattern.permute.xlu1 %v2324_v40 }
0x161b   :  { %v1702_v14 = vpop.permute.xlu1 %1701 }
0x161c   :  { %v1691_v2 = vpop.permute.xlu0 %1690  ;;  %v2704_v5 = vsel %vm42_vm1, %v1702_v14, %v2501_v13 }
0x161d   :  { %v2697_v56 = vsel %vm42_vm1, %v2499_v12, %v1691_v2  ;;  %v1741_v36 = vmul.f32 %v1877_v52, %v2704_v5 }
0x161e   :  { %v1712_v3 = vmul.f32 %v1877_v52, %v2697_v56 }
0x161f   :  { %v1742_v12 = vsel %vm1713_vm3, %v1741_v36, 0.0 }
0x1620   :  { %v1714_v0 = vsel %vm1713_vm3, %v1712_v3, 0.0 }
0x1621   :  { %1715 = vadd.xlane.f32.xlu0 %v1714_v0 }
0x1625   :  { %1735 = vadd.xlane.f32.xlu0 %v1734_v6 }
0x1629   :  { %1743 = vadd.xlane.f32.xlu0 %v1742_v12 }
0x1656   :  { %v1724_v33 = vpop.xlane.xlu0 %1723 }
0x165a   :  { %v1720_v26 = vpop.xlane.xlu1 %1719  ;;  %v1728_v35 = vpop.xlane.xlu0 %1727 }
0x165e   :  { %v1732_v7 = vpop.xlane.xlu1 %1731 }
0x1662   :  { %v1740_v10 = vpop.xlane.xlu1 %1739 }
0x1666   :  { %v1767_v21 = vpop.permute.xlu1 %1766 }
0x16ae   :  { %v1716_v8 = vpop.xlane.xlu0 %1715 }
0x16af   :  { %v1746_v9 = vsel %vm1745_vm4, %v1716_v8, %v1720_v26 }
0x16b0   :  { %v1748_v13 = vsel %vm1747_vm5, %v1746_v9, %v1724_v33 }
0x16b1   :  { %v1750_v16 = vsel %vm1749_vm6, %v1748_v13, %v1728_v35 }
0x16b2   :  { %v1736_v17 = vpop.xlane.xlu0 %1735  ;;  %v1752_v19 = vsel %vm1751_vm7, %v1750_v16, %v1732_v7 }
0x16b3   :  { %v1754_v20 = vsel %vm1753_vm8, %v1752_v19, %v1736_v17 }
0x16b4   :  { %v1756_v24 = vsel %vm1755_vm9, %v1754_v20, %v1740_v10 }
0x16b6   :  { %v1744_v22 = vpop.xlane.xlu0 %1743 }
0x16b7   :  { %v1758_v25 = vsel %vm1757_vm10, %v1756_v24, %v1744_v22 }
0x16b8   :  { %v1769_v43 = vadd.f32 %v1767_v21, %v1758_v25 }
0x16ba   :  { %v1771_v27 = vadd.f32 %v1770_v42, %v1769_v43 }
0x16bc   :  { %v1773_v28 = vsel %vm1772_vm11, %v1771_v27, -inf }
0x16bd   :  { %1774 = vmax.xlane.f32.xlu0 %v1773_v28 }
0x174a   :  { %v1775_v30 = vpop.xlane.xlu0 %1774 }
0x174b   :  { %v1776_v31 = vsub.f32 %v1771_v27, %v1775_v30 }
0x174d   :  { %v1777_v32 = vmul.f32 1.442695, %v1776_v31 }
0x174f   :  { %2312 = vpow2.f32 %v1777_v32 }
0x1759   :  { %v2313_v37 = vpop.eup %2312 }
0x175a   :  { %v1779_v39 = vsel %vm1772_vm11, %v2313_v37, 0.0 }
0x175b   :  { %1780 = vadd.xlane.f32.xlu0 %v1779_v39 }
0x17e8   :  { %v1781_v41 = vpop.xlane.xlu0 %1780 }
0x17e9   :  { %2314 = vrcp.f32 %v1781_v41 }
0x17f3   :  { %v2315_v44 = vpop.eup %2314 }
0x17f4   :  { %v1783_v45 = vmul.f32 %v2315_v44, %v2313_v37 }
0x17f6   :  { %1792 = vperm.xlu1 %2176, %v1783_v45   ;;  %1786 = vperm.xlu0 %2175, %v1783_v45  }
0x17fa   :  { %2177 = vset.pattern.permute.xlu1 %v2325_v46  ;;  %2183 = vset.pattern.permute.xlu0 %v2326_v47 }
0x17fb   :  { %1798 = vperm.xlu1 %2177, %v1783_v45  }
0x17ff   :  { %2178 = vset.pattern.permute.xlu1 %v2327_v48 }
0x1800   :  { %1804 = vperm.xlu1 %2178, %v1783_v45  }
0x1804   :  { %2179 = vset.pattern.permute.xlu1 %v2328_v49 }
0x1805   :  { %1810 = vperm.xlu1 %2179, %v1783_v45  }
0x1809   :  { %2180 = vset.pattern.permute.xlu1 %v2329_v50 }
0x180a   :  { %1816 = vperm.xlu1 %2180, %v1783_v45  }
0x180e   :  { %2181 = vset.pattern.permute.xlu1 %v2330_v51 }
0x180f   :  { %1822 = vperm.xlu1 %2181, %v1783_v45  }
0x1813   :  { %2182 = vset.pattern.permute.xlu1 %v2326_v47 }
0x1814   :  { %1828 = vperm.xlu1 %2182, %v1783_v45  }
0x1875   :  { %v1793_v23 = vpop.permute.xlu1 %1792  ;;  %v1787_v60 = vpop.permute.xlu0 %1786 }
0x1876   :  { %v1795_v29 = vmul.f32 %v1793_v23, %v2669_v57  ;;  %v1789_v11 = vmul.f32 %v1787_v60, %v2697_v56 }
0x1878   :  { %v1796_v63 = vadd.f32 %v1795_v29, %v1789_v11 }
0x187a   :  { %v1799_v52 = vpop.permute.xlu1 %1798 }
0x187b   :  { %v1801_v59 = vmul.f32 %v1799_v52, %v2656_v38 }
0x187d   :  { %v1802_v15 = vadd.f32 %v1801_v59, %v1796_v63 }
0x187f   :  { %v1805_v53 = vpop.permute.xlu1 %1804 }
0x1880   :  { %v1807_v1 = vmul.f32 %v1805_v53, %v2665_v54 }
0x1882   :  { %v1808_v2 = vadd.f32 %v1807_v1, %v1802_v15 }
0x1884   :  { %v1811_v34 = vpop.permute.xlu1 %1810 }
0x1885   :  { %v1813_v58 = vmul.f32 %v1811_v34, %v2677_v61 }
0x1887   :  { %v1814_v0 = vadd.f32 %v1813_v58, %v1808_v2 }
0x1889   :  { %v1817_v55 = vpop.permute.xlu1 %1816 }
0x188a   :  { %v1819_v14 = vmul.f32 %v1817_v55, %v2693_v4 }
0x188c   :  { %v1820_v6 = vadd.f32 %v1819_v14, %v1814_v0 }
0x188e   :  { %v1823_v3 = vpop.permute.xlu1 %1822 }
0x188f   :  { %v1825_v18 = vmul.f32 %v1823_v3, %v2685_v62 }
0x1891   :  { %v1826_v36 = vadd.f32 %v1825_v18, %v1820_v6 }
0x1893   :  { %v1829_v57 = vpop.permute.xlu1 %1828 }
0x1894   :  { %v1831_v56 = vmul.f32 %v1829_v57, %v2704_v5 }
0x1896   :  { %v1832_v38 = vadd.f32 %v1831_v56, %v1826_v36 }
0x1898   :  { %1833 = vst.msk [vmem:[%s2731_s7] sm:$0x3f] %vm1713_vm3, %v1832_v38 }

</bundles_post_ra>
